<compile_context>
chip_gen: v7x
topology: tpu7x:2x2x1
jax: 0.10.0
libtpu: 0.0.40
codegen_flags: <defaults>
</compile_context>

<pallas_src>
import functools

import numpy as np
import jax
import jax.numpy as jnp
from jax import lax
from jax.experimental import pallas as pl
from jax.experimental.pallas import tpu as pltpu


K_SIZE = 5
OC = 32                       # ouput_channel
TAPS = K_SIZE * K_SIZE * 3    # 75
C_MID = 128                   # resnet10 out[-1]
C_FUSE = OC * TAPS            # 2400
C_TR = OC + 2                 # 34 (pos embedding concat)

# Combined backbone weight layout (rows):
#   0:128   backbone features (ReLU)
#   128     zero weight + bias 1.0  -> constant ones row after ReLU (bias folding)
#   129:136 zero padding
#   136     attention logit row (sigmoid gate)
#   137:144 zero padding
C_COMB = 144
ONES_ROW = 128
ATT_ROW = 136

_VMEM_LIMIT = 48 * 1024 * 1024   # <= v7x 64 MiB physical, > default scoped limits


def _round_up(x, m):
    return ((x + m - 1) // m) * m


def _pick_tile(n, target=1024):
    """Pad n up to a multiple of 128 and pick a lane tile that divides it."""
    npad = _round_up(max(n, 1), 128)
    for t in (target, 512, 256, 128):
        if t <= npad and npad % t == 0:
            return npad, t
    return npad, 128


def _detect_bf16_exp():
    """bf16 EUP exists on v6e / v7x; keep f32 exp on v5e and older."""
    try:
        kind = jax.devices()[0].device_kind.lower()
    except Exception:
        return False
    for tag in ("v2", "v3", "v4", "v5"):
        if tag in kind:
            return False
    return ("v6" in kind) or ("v7" in kind) or ("7x" in kind)


_BF16_EXP = _detect_bf16_exp()


# ----------------------------------------------------------------------------
# Fused hot path: (backbone + attention) matmul, fusion matmul (+ folded bias),
# softmax over 75 taps (lane-chunked, num/den), sigmoid gate, tap-weighted sum.
# Logits never touch HBM.
# ----------------------------------------------------------------------------
def _moire_fused_kernel(u_ref, wcomb_ref, bcomb_ref, wfuse_ref, o_ref, logits_ref,
                        *, chunk, bf16_exp):
    tl = u_ref.shape[-1]
    u16 = u_ref[...].astype(jnp.bfloat16)                          # (TAPS, TL)

    # TODO(synk): rows 0:128 stand in for resnet10; row 136 for attn backbone+FPEM_FFM.
    comb = jnp.dot(wcomb_ref[...], u16,
                   preferred_element_type=jnp.float32) + bcomb_ref[...]   # (144, TL)
    gate = jax.nn.sigmoid(comb[ATT_ROW:ATT_ROW + 1, :])            # (1, TL)
    fea_ext = jnp.maximum(comb, 0.0).astype(jnp.bfloat16)          # row 128 == 1.0

    # moire_fusion conv1x1 (+ folded BN + bias via ones row); rows tap-major (t*OC+oc).
    logits_ref[...] = jnp.dot(wfuse_ref[...], fea_ext,
                              preferred_element_type=jnp.float32)  # (C_FUSE, TL)

    exp_dtype = jnp.bfloat16 if bf16_exp else jnp.float32

    # Lane-chunked softmax epilogue (bounded vreg live set).
    for c0 in range(0, tl, chunk):
        def tap_slice(t):
            start = pl.multiple_of(t * OC, OC)
            return logits_ref[pl.ds(start, OC), pl.ds(c0, chunk)]

        m0 = logits_ref[0:OC, c0:c0 + chunk]
        m = lax.fori_loop(1, TAPS, lambda t, m: jnp.maximum(m, tap_slice(t)), m0)

        def body(t, carry):
            den, num = carry
            e = jnp.exp((tap_slice(t) - m).astype(exp_dtype)).astype(jnp.float32)
            u_t = u_ref[pl.ds(t, OC, stride=0), pl.ds(c0, chunk)]  # broadcast load
            return den + e, num + e * u_t

        zeros = jnp.zeros((OC, chunk), jnp.float32)
        den, num = lax.fori_loop(0, TAPS, body, (zeros, zeros))

        out = num * pl.reciprocal(den, approx=True) * gate[:, c0:c0 + chunk]
        o_ref[:, c0:c0 + chunk] = out.astype(o_ref.dtype)


def moire_adaptive_filter(unfold_img, params, lane_tile=1024):
    """(B, 75, L) unfolded image -> (B, 32, L) filtered moire features (fully fused)."""
    B, _, L = unfold_img.shape
    Lp, TL = _pick_tile(L, lane_tile)
    chunk = min(256, TL)
    u = jnp.pad(unfold_img, ((0, 0), (0, 0), (0, Lp - L)))
    wcomb = params["Wcomb"].astype(jnp.bfloat16)
    bcomb = params["bcomb"].reshape(C_COMB, 1).astype(jnp.float32)
    wfuse = params["Wfuse_ext"].astype(jnp.bfloat16)

    out = pl.pallas_call(
        functools.partial(_moire_fused_kernel, chunk=chunk, bf16_exp=_BF16_EXP),
        out_shape=jax.ShapeDtypeStruct((B, OC, Lp), jnp.float32),
        grid=(B, Lp // TL),
        in_specs=[
            pl.BlockSpec((None, TAPS, TL), lambda b, l: (b, 0, l)),
            pl.BlockSpec((C_COMB, TAPS), lambda b, l: (0, 0)),
            pl.BlockSpec((C_COMB, 1), lambda b, l: (0, 0)),
            pl.BlockSpec((C_FUSE, C_COMB), lambda b, l: (0, 0)),
        ],
        out_specs=pl.BlockSpec((None, OC, TL), lambda b, l: (b, 0, l)),
        scratch_shapes=[pltpu.VMEM((C_FUSE, TL), jnp.float32)],
        compiler_params=pltpu.CompilerParams(
            dimension_semantics=("parallel", "parallel"),
            vmem_limit_bytes=_VMEM_LIMIT),
    )(u, wcomb, bcomb, wfuse)
    return out[:, :, :L]


# ----------------------------------------------------------------------------
# Tiled (M, N, K) matmul with f32 accumulator, fused bias + activation epilogue.
# bf16 operands, f32 accumulate, configurable output dtype.
# ----------------------------------------------------------------------------
def _mm_kernel(a_ref, b_ref, bias_ref, o_ref, acc_ref, *, activation):
    @pl.when(pl.program_id(2) == 0)
    def _():
        acc_ref[...] = jnp.zeros_like(acc_ref)

    acc_ref[...] += jnp.dot(a_ref[...], b_ref[...],
                            preferred_element_type=jnp.float32)

    @pl.when(pl.program_id(2) == pl.num_programs(2) - 1)
    def _():
        r = acc_ref[...] + bias_ref[...]
        if activation == "relu":
            r = jnp.maximum(r, 0.0)
        o_ref[...] = r.astype(o_ref.dtype)


def matmul_tiled(a, b, bias=None, activation=None, out_dtype=jnp.float32,
                 tm=512, tn=1024, tk=512):
    M, K = a.shape
    K2, N = b.shape
    assert K == K2
    Mp0 = _round_up(M, 8)
    tm_ = min(tm, Mp0)
    Mp = _round_up(M, tm_)
    Kp, tk_ = _pick_tile(K, tk)
    Np, tn_ = _pick_tile(N, tn)
    a_p = jnp.pad(a.astype(jnp.bfloat16), ((0, Mp - M), (0, Kp - K)))
    b_p = jnp.pad(b.astype(jnp.bfloat16), ((0, Kp - K), (0, Np - N)))
    if bias is None:
        bias_p = jnp.zeros((1, Np), jnp.float32)
    else:
        bias_p = jnp.pad(bias.astype(jnp.float32), (0, Np - N)).reshape(1, Np)

    out = pl.pallas_call(
        functools.partial(_mm_kernel, activation=activation),
        out_shape=jax.ShapeDtypeStruct((Mp, Np), out_dtype),
        grid=(Mp // tm_, Np // tn_, Kp // tk_),
        in_specs=[pl.BlockSpec((tm_, tk_), lambda i, j, k: (i, k)),
                  pl.BlockSpec((tk_, tn_), lambda i, j, k: (k, j)),
                  pl.BlockSpec((1, tn_), lambda i, j, k: (0, j))],
        out_specs=pl.BlockSpec((tm_, tn_), lambda i, j, k: (i, j)),
        scratch_shapes=[pltpu.VMEM((tm_, tn_), jnp.float32)],
        compiler_params=pltpu.CompilerParams(
            dimension_semantics=("parallel", "parallel", "arbitrary"),
            vmem_limit_bytes=_VMEM_LIMIT),
    )(a_p, b_p, bias_p)
    return out[:M, :N]


# ----------------------------------------------------------------------------
# Batched 1x1 conv over (B, Cin, L) with fused bias; channel-first layout kept.
# ----------------------------------------------------------------------------
def _conv1x1_kernel(x_ref, w_ref, b_ref, o_ref, *, activation):
    y = jnp.dot(w_ref[...], x_ref[0],
                preferred_element_type=jnp.float32) + b_ref[...]
    if activation == "relu":
        y = jnp.maximum(y, 0.0)
    o_ref[0] = y.astype(o_ref.dtype)


def conv1x1_batched(x, w, bias, activation=None, out_dtype=jnp.float32,
                    lane_tile=1024):
    B, Cin, L = x.shape
    Cout = w.shape[0]
    Lp, TL = _pick_tile(L, lane_tile)
    x_p = jnp.pad(x.astype(jnp.bfloat16), ((0, 0), (0, 0), (0, Lp - L)))
    w16 = w.astype(jnp.bfloat16)
    b_col = bias.astype(jnp.float32).reshape(Cout, 1)
    out = pl.pallas_call(
        functools.partial(_conv1x1_kernel, activation=activation),
        out_shape=jax.ShapeDtypeStruct((B, Cout, Lp), out_dtype),
        grid=(B, Lp // TL),
        in_specs=[pl.BlockSpec((1, Cin, TL), lambda b, l: (b, 0, l)),
                  pl.BlockSpec((Cout, Cin), lambda b, l: (0, 0)),
                  pl.BlockSpec((Cout, 1), lambda b, l: (0, 0))],
        out_specs=pl.BlockSpec((1, Cout, TL), lambda b, l: (b, 0, l)),
        compiler_params=pltpu.CompilerParams(
            dimension_semantics=("parallel", "parallel"),
            vmem_limit_bytes=_VMEM_LIMIT),
    )(x_p, w16, b_col)
    return out[:, :, :L]


# ----------------------------------------------------------------------------
# Broadcast-A batched matmul: out[g] = A @ x[g]  (H-axis resize passes).
# ----------------------------------------------------------------------------
def _bmm_kernel(a_ref, x_ref, o_ref):
    o_ref[0] = jnp.dot(a_ref[...], x_ref[0],
                       preferred_element_type=jnp.float32).astype(o_ref.dtype)


def bmm_broadcast_a(a, x, out_dtype=jnp.float32, lane_tile=1024):
    G, K, N = x.shape
    M = a.shape[0]
    Np, TN = _pick_tile(N, lane_tile)
    x_p = jnp.pad(x.astype(jnp.bfloat16), ((0, 0), (0, 0), (0, Np - N)))
    a16 = a.astype(jnp.bfloat16)
    out = pl.pallas_call(
        _bmm_kernel,
        out_shape=jax.ShapeDtypeStruct((G, M, Np), out_dtype),
        grid=(G, Np // TN),
        in_specs=[pl.BlockSpec((M, K), lambda g, n: (0, 0)),
                  pl.BlockSpec((1, K, TN), lambda g, n: (g, 0, n))],
        out_specs=pl.BlockSpec((1, M, TN), lambda g, n: (g, 0, n)),
        compiler_params=pltpu.CompilerParams(
            dimension_semantics=("parallel", "parallel"),
            vmem_limit_bytes=_VMEM_LIMIT),
    )(a16, x_p)
    return out[:, :, :N]


# ----------------------------------------------------------------------------
# JAX glue: nn.Unfold (im2col) with PyTorch channel-major tap ordering.
# Only used for the 5x5/stride-4 input unfold (inherent to the algorithm).
# ----------------------------------------------------------------------------
def unfold_nchw(x, k, pad, stride):
    B, C, H, W = x.shape
    xp = jnp.pad(x, ((0, 0), (0, 0), (pad, pad), (pad, pad)))
    Hout = (H + 2 * pad - k) // stride + 1
    Wout = (W + 2 * pad - k) // stride + 1
    cols = []
    for ki in range(k):
        for kj in range(k):
            cols.append(xp[:, :,
                           ki:ki + stride * (Hout - 1) + 1:stride,
                           kj:kj + stride * (Wout - 1) + 1:stride])
    patches = jnp.stack(cols, axis=2)                  # (B, C, k*k, Hout, Wout)
    return patches.reshape(B, C * k * k, Hout * Wout)  # PyTorch unfold ordering


# ----------------------------------------------------------------------------
# Separable resize matrices (align_corners=True) and helpers.
# ----------------------------------------------------------------------------
def _bilinear_matrix(in_size, out_size):
    W = np.zeros((out_size, in_size), np.float32)
    for i in range(out_size):
        src = 0.0 if out_size == 1 else i * (in_size - 1) / (out_size - 1)
        i0 = min(int(np.floor(src)), in_size - 1)
        t = src - i0
        i1 = min(i0 + 1, in_size - 1)
        W[i, i0] += (1.0 - t)
        W[i, i1] += t
    return jnp.asarray(W)


def _bicubic_matrix(in_size, out_size, A=-0.75):
    def c1(x): return ((A + 2) * x - (A + 3)) * x * x + 1
    def c2(x): return ((A * x - 5 * A) * x + 8 * A) * x - 4 * A
    W = np.zeros((out_size, in_size), np.float32)
    for i in range(out_size):
        src = 0.0 if out_size == 1 else i * (in_size - 1) / (out_size - 1)
        i0 = int(np.floor(src))
        t = src - i0
        ws = [c2(t + 1.0), c1(t), c1(1.0 - t), c2(2.0 - t)]
        for k, w in enumerate(ws):
            idx = min(max(i0 - 1 + k, 0), in_size - 1)
            W[i, idx] += w
    return jnp.asarray(W)


def _shift_rows(m, shift):
    """Row r of result = m[r + shift], zero when out of range (conv zero padding)."""
    if shift == 0:
        return m
    rows = m.shape[0]
    out = jnp.zeros_like(m)
    if shift > 0:
        return out.at[:rows - shift].set(m[shift:])
    s = -shift
    return out.at[s:].set(m[:rows - s])


def resize_nchw(x, out_h, out_w, mode, out_dtype=jnp.float32):
    B, C, H, W = x.shape
    mat = _bilinear_matrix if mode == "bilinear" else _bicubic_matrix
    Mh = mat(H, out_h)                                 # (out_h, H)
    Mw = mat(W, out_w)                                 # (out_w, W)
    y = matmul_tiled(x.reshape(B * C * H, W), Mw.T,
                     out_dtype=jnp.bfloat16).reshape(B * C, H, out_w)
    z = bmm_broadcast_a(Mh, y, out_dtype=out_dtype)    # (B*C, out_h, out_w)
    return z.reshape(B, C, out_h, out_w)


# ----------------------------------------------------------------------------
# Parameters (deterministic, synthetic).
# ----------------------------------------------------------------------------
def init_params(key):
    ks = jax.random.split(key, 12)
    p = {}
    # TODO(synk): stand-in for resnet10 moire_backbone (128-ch, stride-4 features).
    Wb = 0.1 * jax.random.normal(ks[0], (C_MID, TAPS), jnp.float32)
    bb = jnp.zeros((C_MID,), jnp.float32)
    # TODO(synk): stand-in for attention_backbone + FPEM_FFM (1-ch attention map).
    Watt = 0.1 * jax.random.normal(ks[1], (1, TAPS), jnp.float32)
    batt = 0.0

    wcomb = jnp.zeros((C_COMB, TAPS), jnp.float32)
    wcomb = wcomb.at[:C_MID].set(Wb)
    wcomb = wcomb.at[ATT_ROW:ATT_ROW + 1].set(Watt)
    bcomb = jnp.zeros((C_COMB,), jnp.float32)
    bcomb = bcomb.at[:C_MID].set(bb)
    bcomb = bcomb.at[ONES_ROW].set(1.0)       # ReLU(0 + 1) == 1 -> bias-folding row
    bcomb = bcomb.at[ATT_ROW].set(batt)
    p["Wcomb"] = wcomb
    p["bcomb"] = bcomb

    # moire_fusion conv1x1 + eval-mode BatchNorm folded into W/b.
    Wf = 0.05 * jax.random.normal(ks[2], (C_FUSE, C_MID), jnp.float32)
    bf = 0.01 * jax.random.normal(ks[3], (C_FUSE,), jnp.float32)
    gamma = 1.0 + 0.1 * jax.random.normal(ks[4], (C_FUSE,), jnp.float32)
    beta = 0.1 * jax.random.normal(ks[5], (C_FUSE,), jnp.float32)
    rmean = 0.01 * jax.random.normal(ks[6], (C_FUSE,), jnp.float32)
    rvar = jnp.abs(1.0 + 0.1 * jax.random.normal(ks[7], (C_FUSE,), jnp.float32))
    scale = gamma / jnp.sqrt(rvar + 1e-5)
    Wf_eff = Wf * scale[:, None]                       # PyTorch order: row = oc*TAPS + t
    bf_eff = (bf - rmean) * scale + beta
    # Reorder to tap-major rows (t*OC + oc) so each tap is a 32-row aligned slice.
    # TODO(synk): verify channel ordering against real checkpoints before loading them.
    Wf_tap = jnp.transpose(Wf_eff.reshape(OC, TAPS, C_MID), (1, 0, 2)).reshape(C_FUSE, C_MID)
    bf_tap = bf_eff.reshape(OC, TAPS).T.reshape(C_FUSE)
    wfuse = jnp.zeros((C_FUSE, C_COMB), jnp.float32)
    wfuse = wfuse.at[:, :C_MID].set(Wf_tap)
    wfuse = wfuse.at[:, ONES_ROW].set(bf_tap)          # bias folded into the matmul
    p["Wfuse_ext"] = wfuse

    # TODO(synk): Performer(dim=34, depth=3, heads=2) not reproduced; per-token linear stand-in.
    p["Wp"] = 0.1 * jax.random.normal(ks[8], (C_TR, C_TR), jnp.float32)
    p["bp"] = jnp.zeros((C_TR,), jnp.float32)

    # moire_head conv3x3(34 -> 1), bias-free; stored as (9, 34) with rows ordered dy*3+dx.
    Whead = 0.05 * jax.random.normal(ks[9], (1, C_TR, 3, 3), jnp.float32)
    p["Khead_mat"] = jnp.transpose(Whead[0], (1, 2, 0)).reshape(9, C_TR)
    p["bhead9"] = jnp.zeros((9,), jnp.float32)
    return p


# ----------------------------------------------------------------------------
# Forward pass (mirrors TripleBranchWithSpecificConv_bak.forward).
# ----------------------------------------------------------------------------
def forward(x, params):
    B, _, img_H, img_W = x.shape
    MH, MW = img_H // 4, img_W // 4

    # nn.Unfold(kernel=5, padding=2, stride=4)
    unfold_img = unfold_nchw(x, K_SIZE, (K_SIZE - 1) // 2, 4)        # (B, 75, L)

    # Fully fused hot path (backbone + attention + fusion + softmax + gate).
    moire = moire_adaptive_filter(unfold_img, params)                # (B, 32, L)
    moire = moire.reshape(B, OC, MH, MW)

    # bilinear downsample to (H//2, W//3), concat pos embedding
    dst_h, dst_w = MH // 2, MW // 3
    trans = resize_nchw(moire, dst_h, dst_w, "bilinear", out_dtype=jnp.bfloat16)

    max_len = 100
    r = jnp.arange(max_len, dtype=jnp.float32) / max_len
    x_list = jnp.broadcast_to(r[None, None, :], (1, max_len, max_len))
    y_list = jnp.broadcast_to(r[None, :, None], (1, max_len, max_len))
    pos = jnp.concatenate([x_list, y_list], axis=0)[None]            # (1,2,100,100)
    pos = resize_nchw(pos, dst_h, dst_w, "bilinear", out_dtype=jnp.bfloat16)
    trans = jnp.concatenate(
        [trans, jnp.broadcast_to(pos, (B, 2, dst_h, dst_w))], axis=1)  # (B,34,h,w)

    # Performer stand-in: per-token linear in channel-first layout (no permutes).
    # TODO(synk): real Performer not reproduced.
    S = dst_h * dst_w
    tok = conv1x1_batched(trans.reshape(B, C_TR, S), params["Wp"], params["bp"],
                          out_dtype=jnp.bfloat16)                    # (B, 34, S)

    # moire_head conv3x3(34->1) on the bicubic-upsampled features, refactored as
    #   density = sum_{dy,dx} Mh_dy @ (sum_c K[c,dy,dx] * small_c) @ Mw_dx^T
    # so neither the full-res 34-ch tensor nor a 3x3 im2col ever hits HBM.
    T = conv1x1_batched(tok, params["Khead_mat"], params["bhead9"],
                        out_dtype=jnp.bfloat16)                      # (B, 9, S)
    T = T.reshape(B, 3, 3, dst_h, dst_w)                             # (B, dy, dx, h, w)

    Mh = _bicubic_matrix(dst_h, img_H)                               # (img_H, dst_h)
    Mw = _bicubic_matrix(dst_w, img_W)                               # (img_W, dst_w)
    y_parts = []
    for dx in range(3):
        Mw_dx = _shift_rows(Mw, dx - 1)                              # zero-padded shift
        y = matmul_tiled(T[:, :, dx].reshape(B * 3 * dst_h, dst_w), Mw_dx.T,
                         out_dtype=jnp.bfloat16)                     # (B*3*dst_h, img_W)
        y_parts.append(y.reshape(B, 3, dst_h, img_W))
    Ycat = jnp.stack(y_parts, axis=2).reshape(B, 9 * dst_h, img_W)   # g = dy*3+dx blocks
    Mh_cat = jnp.concatenate(
        [_shift_rows(Mh, dy - 1) for dy in range(3) for _ in range(3)], axis=1)
    density = bmm_broadcast_a(Mh_cat, Ycat, out_dtype=jnp.float32)   # (B, img_H, img_W)
    moire_density = density.reshape(B, 1, img_H, img_W)

    fea_loss = jnp.mean(moire_density) * 0.0
    return [moire_density], fea_loss


if __name__ == "__main__":
    key = jax.random.PRNGKey(0)
    x = jax.random.normal(key, (2, 3, 16, 16), jnp.float32)   # N,C,H,W
    params = init_params(jax.random.PRNGKey(42))

    outs, fea_loss = jax.jit(forward)(x, params)
    jax.block_until_ready(outs[0])
    jax.block_until_ready(fea_loss)

    assert outs[0].shape == (2, 1, 16, 16)
    assert jnp.isfinite(outs[0]).all()
    print("KERNEL_OK")
</pallas_src>

<mosaic_0001>
module attributes {stable_mosaic.version = 11 : i64} {
  func.func @_moire_fused_kernel(%arg0: i32, %arg1: i32, %arg2: memref<1x75x128xf32, #tpu.memory_space<vmem>>, %arg3: memref<144x75xbf16, #tpu.memory_space<vmem>>, %arg4: memref<144x1xf32, #tpu.memory_space<vmem>>, %arg5: memref<2400x144xbf16, #tpu.memory_space<vmem>>, %arg6: memref<1x32x128xf32, #tpu.memory_space<vmem>>, %arg7: memref<2400x128xf32, #tpu.memory_space<vmem>>) attributes {dimension_semantics = [#tpu.dimension_semantics<parallel>, #tpu.dimension_semantics<parallel>], iteration_bounds = array<i64: 2, 1>, scalar_prefetch = 0 : i64, scratch_operands = 1 : i64, tpu.core_type = #tpu.core_type<tc>, window_params = [{transform_indices = @transform_0, window_bounds = array<i64: 1, 75, 128>}, {pipeline_mode = #tpu.pipeline_mode<synchronous>, transform_indices = @transform_1, window_bounds = array<i64: 144, 75>}, {pipeline_mode = #tpu.pipeline_mode<synchronous>, transform_indices = @transform_2, window_bounds = array<i64: 144, 1>}, {pipeline_mode = #tpu.pipeline_mode<synchronous>, transform_indices = @transform_3, window_bounds = array<i64: 2400, 144>}, {transform_indices = @transform_4, window_bounds = array<i64: 1, 32, 128>}]} {
    %c0 = arith.constant 0 : index
    %c0_0 = arith.constant 0 : index
    %c0_1 = arith.constant 0 : index
    %0 = vector.load %arg2[%c0, %c0_0, %c0_1] : memref<1x75x128xf32, #tpu.memory_space<vmem>>, vector<1x75x128xf32>
    %1 = vector.shape_cast %0 : vector<1x75x128xf32> to vector<75x128xf32>
    %2 = arith.truncf %1 : vector<75x128xf32> to vector<75x128xbf16>
    %c0_2 = arith.constant 0 : index
    %c0_3 = arith.constant 0 : index
    %3 = vector.load %arg3[%c0_2, %c0_3] : memref<144x75xbf16, #tpu.memory_space<vmem>>, vector<144x75xbf16>
    %cst = arith.constant dense<0.000000e+00> : vector<144x128xf32>
    %4 = tpu.matmul %3, %2, %cst {dimension_numbers = #tpu.dot_dimension_numbers<[1], [0], [0], [1], [0, 0, 1, 1], [], []>} : vector<144x75xbf16>, vector<75x128xbf16>, vector<144x128xf32> -> vector<144x128xf32>
    %c0_4 = arith.constant 0 : index
    %c0_5 = arith.constant 0 : index
    %5 = vector.load %arg4[%c0_4, %c0_5] : memref<144x1xf32, #tpu.memory_space<vmem>>, vector<144x1xf32>
    %6 = vector.broadcast %5 : vector<144x1xf32> to vector<144x128xf32>
    %7 = arith.addf %4, %6 : vector<144x128xf32>
    %8 = vector.extract_strided_slice %7 {offsets = [136, 0], sizes = [1, 128], strides = [1, 1]} : vector<144x128xf32> to vector<1x128xf32>
    %9 = arith.negf %8 : vector<1x128xf32>
    %10 = math.exp %9 : vector<1x128xf32>
    %cst_6 = arith.constant 1.000000e+00 : f32
    %11 = vector.broadcast %cst_6 : f32 to vector<1x128xf32>
    %12 = arith.addf %11, %10 : vector<1x128xf32>
    %13 = arith.divf %11, %12 : vector<1x128xf32>
    %cst_7 = arith.constant 0.000000e+00 : f32
    %14 = vector.broadcast %cst_7 : f32 to vector<144x128xf32>
    %15 = arith.maximumf %7, %14 : vector<144x128xf32>
    %16 = arith.truncf %15 : vector<144x128xf32> to vector<144x128xbf16>
    %c0_8 = arith.constant 0 : index
    %c0_9 = arith.constant 0 : index
    %17 = vector.load %arg5[%c0_8, %c0_9] : memref<2400x144xbf16, #tpu.memory_space<vmem>>, vector<2400x144xbf16>
    %cst_10 = arith.constant dense<0.000000e+00> : vector<2400x128xf32>
    %18 = tpu.matmul %17, %16, %cst_10 {dimension_numbers = #tpu.dot_dimension_numbers<[1], [0], [0], [1], [0, 0, 1, 1], [], []>} : vector<2400x144xbf16>, vector<144x128xbf16>, vector<2400x128xf32> -> vector<2400x128xf32>
    %c0_11 = arith.constant 0 : index
    %c0_12 = arith.constant 0 : index
    %19 = vector.load %arg7[%c0_11, %c0_12] : memref<2400x128xf32, #tpu.memory_space<vmem>>, vector<2400x128xf32>
    tpu.vector_store %arg7[%c0_11, %c0_12], %18 {strides = array<i32>} : memref<2400x128xf32, #tpu.memory_space<vmem>>, vector<2400x128xf32>,
    %c0_13 = arith.constant 0 : index
    %c0_14 = arith.constant 0 : index
    %20 = vector.load %arg7[%c0_13, %c0_14] : memref<2400x128xf32, #tpu.memory_space<vmem>>, vector<32x128xf32>
    %c1_i32 = arith.constant 1 : i32
    %c74_i32 = arith.constant 74 : i32
    %21 = arith.addi %c1_i32, %c74_i32 : i32
    %c1_i32_15 = arith.constant 1 : i32
    %22 = scf.for %arg8 = %c1_i32 to %21 step %c1_i32_15 iter_args(%arg9 = %20) -> (vector<32x128xf32>)  : i32 {
      %c32_i32 = arith.constant 32 : i32
      %33 = arith.muli %arg8, %c32_i32 : i32
      %34 = tpu.assume_multiple %33, 32 : i32
      %35 = arith.index_cast %34 : i32 to index
      %c0_23 = arith.constant 0 : index
      %36 = vector.load %arg7[%35, %c0_23] : memref<2400x128xf32, #tpu.memory_space<vmem>>, vector<32x128xf32>
      %37 = arith.maximumf %arg9, %36 : vector<32x128xf32>
      scf.yield %37 : vector<32x128xf32>
    }
    %c74_i32_16 = arith.constant 74 : i32
    %cst_17 = arith.constant 0.000000e+00 : f32
    %23 = vector.broadcast %cst_17 : f32 to vector<32x128xf32>
    %c0_i32 = arith.constant 0 : i32
    %c75_i32 = arith.constant 75 : i32
    %24 = arith.addi %c0_i32, %c75_i32 : i32
    %c1_i32_18 = arith.constant 1 : i32
    %25:2 = scf.for %arg8 = %c0_i32 to %24 step %c1_i32_18 iter_args(%arg9 = %23, %arg10 = %23) -> (vector<32x128xf32>, vector<32x128xf32>)  : i32 {
      %c32_i32 = arith.constant 32 : i32
      %33 = arith.muli %arg8, %c32_i32 : i32
      %34 = tpu.assume_multiple %33, 32 : i32
      %35 = arith.index_cast %34 : i32 to index
      %c0_23 = arith.constant 0 : index
      %36 = vector.load %arg7[%35, %c0_23] : memref<2400x128xf32, #tpu.memory_space<vmem>>, vector<32x128xf32>
      %37 = arith.subf %36, %22 : vector<32x128xf32>
      %38 = math.exp %37 : vector<32x128xf32>
      %c0_24 = arith.constant 0 : index
      %39 = arith.index_cast %arg8 : i32 to index
      %c0_25 = arith.constant 0 : index
      %40 = tpu.strided_load %arg2[%c0_24, %39, %c0_25] {strides = array<i32: 1, 0, 1>} : memref<1x75x128xf32, #tpu.memory_space<vmem>>, vector<1x32x128xf32>
      %41 = vector.shape_cast %40 : vector<1x32x128xf32> to vector<32x128xf32>
      %42 = arith.addf %arg9, %38 : vector<32x128xf32>
      %43 = arith.mulf %38, %41 : vector<32x128xf32>
      %44 = arith.addf %arg10, %43 : vector<32x128xf32>
      scf.yield %42, %44 : vector<32x128xf32>, vector<32x128xf32>
    }
    %c75_i32_19 = arith.constant 75 : i32
    %26 = tpu.reciprocal %25#0 {approx = true} : vector<32x128xf32> -> vector<32x128xf32>
    %27 = arith.mulf %25#1, %26 : vector<32x128xf32>
    %28 = vector.broadcast %13 : vector<1x128xf32> to vector<32x128xf32>
    %29 = arith.mulf %27, %28 : vector<32x128xf32>
    %c0_20 = arith.constant 0 : index
    %c0_21 = arith.constant 0 : index
    %c0_22 = arith.constant 0 : index
    %30 = vector.load %arg6[%c0_20, %c0_21, %c0_22] : memref<1x32x128xf32, #tpu.memory_space<vmem>>, vector<1x32x128xf32>
    %31 = vector.shape_cast %30 : vector<1x32x128xf32> to vector<32x128xf32>
    %32 = vector.shape_cast %29 : vector<32x128xf32> to vector<1x32x128xf32>
    tpu.vector_store %arg6[%c0_20, %c0_21, %c0_22], %32 {strides = array<i32>} : memref<1x32x128xf32, #tpu.memory_space<vmem>>, vector<1x32x128xf32>,
    return
  }
  func.func @transform_0(%arg0: i32, %arg1: i32) -> (i32, i32, i32) {
    %c0_i32 = arith.constant 0 : i32
    %c0_i32_0 = arith.constant 0 : i32
    return %arg0, %c0_i32, %arg1 : i32, i32, i32
  }
  func.func @transform_1(%arg0: i32, %arg1: i32) -> (i32, i32) {
    %c0_i32 = arith.constant 0 : i32
    %c0_i32_0 = arith.constant 0 : i32
    %c0_i32_1 = arith.constant 0 : i32
    return %c0_i32, %c0_i32_0 : i32, i32
  }
  func.func @transform_2(%arg0: i32, %arg1: i32) -> (i32, i32) {
    %c0_i32 = arith.constant 0 : i32
    %c0_i32_0 = arith.constant 0 : i32
    %c0_i32_1 = arith.constant 0 : i32
    return %c0_i32, %c0_i32_0 : i32, i32
  }
  func.func @transform_3(%arg0: i32, %arg1: i32) -> (i32, i32) {
    %c0_i32 = arith.constant 0 : i32
    %c0_i32_0 = arith.constant 0 : i32
    %c0_i32_1 = arith.constant 0 : i32
    return %c0_i32, %c0_i32_0 : i32, i32
  }
  func.func @transform_4(%arg0: i32, %arg1: i32) -> (i32, i32, i32) {
    %c0_i32 = arith.constant 0 : i32
    %c0_i32_0 = arith.constant 0 : i32
    return %arg0, %c0_i32, %arg1 : i32, i32, i32
  }
}

module attributes {stable_mosaic.version = 11 : i64} {
  func.func @_mm_kernel(%arg0: i32, %arg1: i32, %arg2: i32, %arg3: memref<256x128xbf16, #tpu.memory_space<vmem>>, %arg4: memref<128x128xbf16, #tpu.memory_space<vmem>>, %arg5: memref<1x128xf32, #tpu.memory_space<vmem>>, %arg6: memref<256x128xbf16, #tpu.memory_space<vmem>>, %arg7: memref<256x128xf32, #tpu.memory_space<vmem>>) attributes {dimension_semantics = [#tpu.dimension_semantics<parallel>, #tpu.dimension_semantics<parallel>, #tpu.dimension_semantics<arbitrary>], iteration_bounds = array<i64: 1, 1, 1>, scalar_prefetch = 0 : i64, scratch_operands = 1 : i64, tpu.core_type = #tpu.core_type<tc>, window_params = [{transform_indices = @transform_0, window_bounds = array<i64: 256, 128>}, {transform_indices = @transform_1, window_bounds = array<i64: 128, 128>}, {transform_indices = @transform_2, window_bounds = array<i64: 1, 128>}, {transform_indices = @transform_3, window_bounds = array<i64: 256, 128>}]} {
    %c0_i32 = arith.constant 0 : i32
    %0 = arith.cmpi eq, %arg2, %c0_i32 : i32
    %1 = arith.extui %0 : i1 to i32
    %c0_i32_0 = arith.constant 0 : i32
    %2 = arith.cmpi ne, %1, %c0_i32_0 : i32
    scf.if %2 {
      %cst_10 = arith.constant 0.000000e+00 : f32
      %12 = vector.broadcast %cst_10 : f32 to vector<256x128xf32>
      %c0_11 = arith.constant 0 : index
      %c0_12 = arith.constant 0 : index
      %13 = vector.load %arg7[%c0_11, %c0_12] : memref<256x128xf32, #tpu.memory_space<vmem>>, vector<256x128xf32>
      tpu.vector_store %arg7[%c0_11, %c0_12], %12 {strides = array<i32>} : memref<256x128xf32, #tpu.memory_space<vmem>>, vector<256x128xf32>,
    } else {
    }
    %c0 = arith.constant 0 : index
    %c0_1 = arith.constant 0 : index
    %3 = vector.load %arg7[%c0, %c0_1] : memref<256x128xf32, #tpu.memory_space<vmem>>, vector<256x128xf32>
    %c0_2 = arith.constant 0 : index
    %c0_3 = arith.constant 0 : index
    %4 = vector.load %arg3[%c0_2, %c0_3] : memref<256x128xbf16, #tpu.memory_space<vmem>>, vector<256x128xbf16>
    %c0_4 = arith.constant 0 : index
    %c0_5 = arith.constant 0 : index
    %5 = vector.load %arg4[%c0_4, %c0_5] : memref<128x128xbf16, #tpu.memory_space<vmem>>, vector<128x128xbf16>
    %cst = arith.constant dense<0.000000e+00> : vector<256x128xf32>
    %6 = tpu.matmul %4, %5, %cst {dimension_numbers = #tpu.dot_dimension_numbers<[1], [0], [0], [1], [0, 0, 1, 1], [], []>} : vector<256x128xbf16>, vector<128x128xbf16>, vector<256x128xf32> -> vector<256x128xf32>
    %7 = arith.addf %3, %6 : vector<256x128xf32>
    %c0_6 = arith.constant 0 : index
    %c0_7 = arith.constant 0 : index
    %8 = vector.load %arg7[%c0_6, %c0_7] : memref<256x128xf32, #tpu.memory_space<vmem>>, vector<256x128xf32>
    tpu.vector_store %arg7[%c0_6, %c0_7], %7 {strides = array<i32>} : memref<256x128xf32, #tpu.memory_space<vmem>>, vector<256x128xf32>,
    %c0_i32_8 = arith.constant 0 : i32
    %9 = arith.cmpi eq, %arg2, %c0_i32_8 : i32
    %10 = arith.extui %9 : i1 to i32
    %c0_i32_9 = arith.constant 0 : i32
    %11 = arith.cmpi ne, %10, %c0_i32_9 : i32
    scf.if %11 {
      %c0_10 = arith.constant 0 : index
      %c0_11 = arith.constant 0 : index
      %12 = vector.load %arg7[%c0_10, %c0_11] : memref<256x128xf32, #tpu.memory_space<vmem>>, vector<256x128xf32>
      %c0_12 = arith.constant 0 : index
      %c0_13 = arith.constant 0 : index
      %13 = vector.load %arg5[%c0_12, %c0_13] : memref<1x128xf32, #tpu.memory_space<vmem>>, vector<1x128xf32>
      %14 = vector.broadcast %13 : vector<1x128xf32> to vector<256x128xf32>
      %15 = arith.addf %12, %14 : vector<256x128xf32>
      %16 = arith.truncf %15 : vector<256x128xf32> to vector<256x128xbf16>
      %c0_14 = arith.constant 0 : index
      %c0_15 = arith.constant 0 : index
      %17 = vector.load %arg6[%c0_14, %c0_15] : memref<256x128xbf16, #tpu.memory_space<vmem>>, vector<256x128xbf16>
      tpu.vector_store %arg6[%c0_14, %c0_15], %16 {strides = array<i32>} : memref<256x128xbf16, #tpu.memory_space<vmem>>, vector<256x128xbf16>,
    } else {
    }
    return
  }
  func.func @transform_0(%arg0: i32, %arg1: i32, %arg2: i32) -> (i32, i32) {
    %c0_i32 = arith.constant 0 : i32
    return %arg0, %arg2 : i32, i32
  }
  func.func @transform_1(%arg0: i32, %arg1: i32, %arg2: i32) -> (i32, i32) {
    %c0_i32 = arith.constant 0 : i32
    return %arg2, %arg1 : i32, i32
  }
  func.func @transform_2(%arg0: i32, %arg1: i32, %arg2: i32) -> (i32, i32) {
    %c0_i32 = arith.constant 0 : i32
    %c0_i32_0 = arith.constant 0 : i32
    return %c0_i32, %arg1 : i32, i32
  }
  func.func @transform_3(%arg0: i32, %arg1: i32, %arg2: i32) -> (i32, i32) {
    %c0_i32 = arith.constant 0 : i32
    return %arg0, %arg1 : i32, i32
  }
}

module attributes {stable_mosaic.version = 11 : i64} {
  func.func @_bmm_kernel(%arg0: i32, %arg1: i32, %arg2: memref<2x4xbf16, #tpu.memory_space<vmem>>, %arg3: memref<1x4x128xbf16, #tpu.memory_space<vmem>>, %arg4: memref<1x2x128xbf16, #tpu.memory_space<vmem>>) attributes {dimension_semantics = [#tpu.dimension_semantics<parallel>, #tpu.dimension_semantics<parallel>], iteration_bounds = array<i64: 64, 1>, scalar_prefetch = 0 : i64, scratch_operands = 0 : i64, tpu.core_type = #tpu.core_type<tc>, window_params = [{pipeline_mode = #tpu.pipeline_mode<synchronous>, transform_indices = @transform_0, window_bounds = array<i64: 2, 4>}, {transform_indices = @transform_1, window_bounds = array<i64: 1, 4, 128>}, {transform_indices = @transform_2, window_bounds = array<i64: 1, 2, 128>}]} {
    %c0 = arith.constant 0 : index
    %c0_0 = arith.constant 0 : index
    %0 = vector.load %arg2[%c0, %c0_0] : memref<2x4xbf16, #tpu.memory_space<vmem>>, vector<2x4xbf16>
    %c0_1 = arith.constant 0 : index
    %c0_2 = arith.constant 0 : index
    %c0_3 = arith.constant 0 : index
    %1 = vector.load %arg3[%c0_1, %c0_2, %c0_3] : memref<1x4x128xbf16, #tpu.memory_space<vmem>>, vector<1x4x128xbf16>
    %2 = vector.shape_cast %1 : vector<1x4x128xbf16> to vector<4x128xbf16>
    %cst = arith.constant dense<0.000000e+00> : vector<2x128xf32>
    %3 = tpu.matmul %0, %2, %cst {dimension_numbers = #tpu.dot_dimension_numbers<[1], [0], [0], [1], [0, 0, 1, 1], [], []>} : vector<2x4xbf16>, vector<4x128xbf16>, vector<2x128xf32> -> vector<2x128xf32>
    %4 = arith.truncf %3 : vector<2x128xf32> to vector<2x128xbf16>
    %c0_4 = arith.constant 0 : index
    %c0_5 = arith.constant 0 : index
    %c0_6 = arith.constant 0 : index
    %5 = vector.load %arg4[%c0_4, %c0_5, %c0_6] : memref<1x2x128xbf16, #tpu.memory_space<vmem>>, vector<1x2x128xbf16>
    %6 = vector.shape_cast %5 : vector<1x2x128xbf16> to vector<2x128xbf16>
    %7 = vector.shape_cast %4 : vector<2x128xbf16> to vector<1x2x128xbf16>
    tpu.vector_store %arg4[%c0_4, %c0_5, %c0_6], %7 {strides = array<i32>} : memref<1x2x128xbf16, #tpu.memory_space<vmem>>, vector<1x2x128xbf16>,
    return
  }
  func.func @transform_0(%arg0: i32, %arg1: i32) -> (i32, i32) {
    %c0_i32 = arith.constant 0 : i32
    %c0_i32_0 = arith.constant 0 : i32
    %c0_i32_1 = arith.constant 0 : i32
    return %c0_i32, %c0_i32_0 : i32, i32
  }
  func.func @transform_1(%arg0: i32, %arg1: i32) -> (i32, i32, i32) {
    %c0_i32 = arith.constant 0 : i32
    %c0_i32_0 = arith.constant 0 : i32
    return %arg0, %c0_i32, %arg1 : i32, i32, i32
  }
  func.func @transform_2(%arg0: i32, %arg1: i32) -> (i32, i32, i32) {
    %c0_i32 = arith.constant 0 : i32
    %c0_i32_0 = arith.constant 0 : i32
    return %arg0, %c0_i32, %arg1 : i32, i32, i32
  }
}

module attributes {stable_mosaic.version = 11 : i64} {
  func.func @_mm_kernel(%arg0: i32, %arg1: i32, %arg2: i32, %arg3: memref<200x128xbf16, #tpu.memory_space<vmem>>, %arg4: memref<128x128xbf16, #tpu.memory_space<vmem>>, %arg5: memref<1x128xf32, #tpu.memory_space<vmem>>, %arg6: memref<200x128xbf16, #tpu.memory_space<vmem>>, %arg7: memref<200x128xf32, #tpu.memory_space<vmem>>) attributes {dimension_semantics = [#tpu.dimension_semantics<parallel>, #tpu.dimension_semantics<parallel>, #tpu.dimension_semantics<arbitrary>], iteration_bounds = array<i64: 1, 1, 1>, scalar_prefetch = 0 : i64, scratch_operands = 1 : i64, tpu.core_type = #tpu.core_type<tc>, window_params = [{transform_indices = @transform_0, window_bounds = array<i64: 200, 128>}, {transform_indices = @transform_1, window_bounds = array<i64: 128, 128>}, {transform_indices = @transform_2, window_bounds = array<i64: 1, 128>}, {transform_indices = @transform_3, window_bounds = array<i64: 200, 128>}]} {
    %c0_i32 = arith.constant 0 : i32
    %0 = arith.cmpi eq, %arg2, %c0_i32 : i32
    %1 = arith.extui %0 : i1 to i32
    %c0_i32_0 = arith.constant 0 : i32
    %2 = arith.cmpi ne, %1, %c0_i32_0 : i32
    scf.if %2 {
      %cst_10 = arith.constant 0.000000e+00 : f32
      %12 = vector.broadcast %cst_10 : f32 to vector<200x128xf32>
      %c0_11 = arith.constant 0 : index
      %c0_12 = arith.constant 0 : index
      %13 = vector.load %arg7[%c0_11, %c0_12] : memref<200x128xf32, #tpu.memory_space<vmem>>, vector<200x128xf32>
      tpu.vector_store %arg7[%c0_11, %c0_12], %12 {strides = array<i32>} : memref<200x128xf32, #tpu.memory_space<vmem>>, vector<200x128xf32>,
    } else {
    }
    %c0 = arith.constant 0 : index
    %c0_1 = arith.constant 0 : index
    %3 = vector.load %arg7[%c0, %c0_1] : memref<200x128xf32, #tpu.memory_space<vmem>>, vector<200x128xf32>
    %c0_2 = arith.constant 0 : index
    %c0_3 = arith.constant 0 : index
    %4 = vector.load %arg3[%c0_2, %c0_3] : memref<200x128xbf16, #tpu.memory_space<vmem>>, vector<200x128xbf16>
    %c0_4 = arith.constant 0 : index
    %c0_5 = arith.constant 0 : index
    %5 = vector.load %arg4[%c0_4, %c0_5] : memref<128x128xbf16, #tpu.memory_space<vmem>>, vector<128x128xbf16>
    %cst = arith.constant dense<0.000000e+00> : vector<200x128xf32>
    %6 = tpu.matmul %4, %5, %cst {dimension_numbers = #tpu.dot_dimension_numbers<[1], [0], [0], [1], [0, 0, 1, 1], [], []>} : vector<200x128xbf16>, vector<128x128xbf16>, vector<200x128xf32> -> vector<200x128xf32>
    %7 = arith.addf %3, %6 : vector<200x128xf32>
    %c0_6 = arith.constant 0 : index
    %c0_7 = arith.constant 0 : index
    %8 = vector.load %arg7[%c0_6, %c0_7] : memref<200x128xf32, #tpu.memory_space<vmem>>, vector<200x128xf32>
    tpu.vector_store %arg7[%c0_6, %c0_7], %7 {strides = array<i32>} : memref<200x128xf32, #tpu.memory_space<vmem>>, vector<200x128xf32>,
    %c0_i32_8 = arith.constant 0 : i32
    %9 = arith.cmpi eq, %arg2, %c0_i32_8 : i32
    %10 = arith.extui %9 : i1 to i32
    %c0_i32_9 = arith.constant 0 : i32
    %11 = arith.cmpi ne, %10, %c0_i32_9 : i32
    scf.if %11 {
      %c0_10 = arith.constant 0 : index
      %c0_11 = arith.constant 0 : index
      %12 = vector.load %arg7[%c0_10, %c0_11] : memref<200x128xf32, #tpu.memory_space<vmem>>, vector<200x128xf32>
      %c0_12 = arith.constant 0 : index
      %c0_13 = arith.constant 0 : index
      %13 = vector.load %arg5[%c0_12, %c0_13] : memref<1x128xf32, #tpu.memory_space<vmem>>, vector<1x128xf32>
      %14 = vector.broadcast %13 : vector<1x128xf32> to vector<200x128xf32>
      %15 = arith.addf %12, %14 : vector<200x128xf32>
      %16 = arith.truncf %15 : vector<200x128xf32> to vector<200x128xbf16>
      %c0_14 = arith.constant 0 : index
      %c0_15 = arith.constant 0 : index
      %17 = vector.load %arg6[%c0_14, %c0_15] : memref<200x128xbf16, #tpu.memory_space<vmem>>, vector<200x128xbf16>
      tpu.vector_store %arg6[%c0_14, %c0_15], %16 {strides = array<i32>} : memref<200x128xbf16, #tpu.memory_space<vmem>>, vector<200x128xbf16>,
    } else {
    }
    return
  }
  func.func @transform_0(%arg0: i32, %arg1: i32, %arg2: i32) -> (i32, i32) {
    %c0_i32 = arith.constant 0 : i32
    return %arg0, %arg2 : i32, i32
  }
  func.func @transform_1(%arg0: i32, %arg1: i32, %arg2: i32) -> (i32, i32) {
    %c0_i32 = arith.constant 0 : i32
    return %arg2, %arg1 : i32, i32
  }
  func.func @transform_2(%arg0: i32, %arg1: i32, %arg2: i32) -> (i32, i32) {
    %c0_i32 = arith.constant 0 : i32
    %c0_i32_0 = arith.constant 0 : i32
    return %c0_i32, %arg1 : i32, i32
  }
  func.func @transform_3(%arg0: i32, %arg1: i32, %arg2: i32) -> (i32, i32) {
    %c0_i32 = arith.constant 0 : i32
    return %arg0, %arg1 : i32, i32
  }
}

module attributes {stable_mosaic.version = 11 : i64} {
  func.func @_bmm_kernel(%arg0: i32, %arg1: i32, %arg2: memref<2x100xbf16, #tpu.memory_space<vmem>>, %arg3: memref<1x100x128xbf16, #tpu.memory_space<vmem>>, %arg4: memref<1x2x128xbf16, #tpu.memory_space<vmem>>) attributes {dimension_semantics = [#tpu.dimension_semantics<parallel>, #tpu.dimension_semantics<parallel>], iteration_bounds = array<i64: 2, 1>, scalar_prefetch = 0 : i64, scratch_operands = 0 : i64, tpu.core_type = #tpu.core_type<tc>, window_params = [{pipeline_mode = #tpu.pipeline_mode<synchronous>, transform_indices = @transform_0, window_bounds = array<i64: 2, 100>}, {transform_indices = @transform_1, window_bounds = array<i64: 1, 100, 128>}, {transform_indices = @transform_2, window_bounds = array<i64: 1, 2, 128>}]} {
    %c0 = arith.constant 0 : index
    %c0_0 = arith.constant 0 : index
    %0 = vector.load %arg2[%c0, %c0_0] : memref<2x100xbf16, #tpu.memory_space<vmem>>, vector<2x100xbf16>
    %c0_1 = arith.constant 0 : index
    %c0_2 = arith.constant 0 : index
    %c0_3 = arith.constant 0 : index
    %1 = vector.load %arg3[%c0_1, %c0_2, %c0_3] : memref<1x100x128xbf16, #tpu.memory_space<vmem>>, vector<1x100x128xbf16>
    %2 = vector.shape_cast %1 : vector<1x100x128xbf16> to vector<100x128xbf16>
    %cst = arith.constant dense<0.000000e+00> : vector<2x128xf32>
    %3 = tpu.matmul %0, %2, %cst {dimension_numbers = #tpu.dot_dimension_numbers<[1], [0], [0], [1], [0, 0, 1, 1], [], []>} : vector<2x100xbf16>, vector<100x128xbf16>, vector<2x128xf32> -> vector<2x128xf32>
    %4 = arith.truncf %3 : vector<2x128xf32> to vector<2x128xbf16>
    %c0_4 = arith.constant 0 : index
    %c0_5 = arith.constant 0 : index
    %c0_6 = arith.constant 0 : index
    %5 = vector.load %arg4[%c0_4, %c0_5, %c0_6] : memref<1x2x128xbf16, #tpu.memory_space<vmem>>, vector<1x2x128xbf16>
    %6 = vector.shape_cast %5 : vector<1x2x128xbf16> to vector<2x128xbf16>
    %7 = vector.shape_cast %4 : vector<2x128xbf16> to vector<1x2x128xbf16>
    tpu.vector_store %arg4[%c0_4, %c0_5, %c0_6], %7 {strides = array<i32>} : memref<1x2x128xbf16, #tpu.memory_space<vmem>>, vector<1x2x128xbf16>,
    return
  }
  func.func @transform_0(%arg0: i32, %arg1: i32) -> (i32, i32) {
    %c0_i32 = arith.constant 0 : i32
    %c0_i32_0 = arith.constant 0 : i32
    %c0_i32_1 = arith.constant 0 : i32
    return %c0_i32, %c0_i32_0 : i32, i32
  }
  func.func @transform_1(%arg0: i32, %arg1: i32) -> (i32, i32, i32) {
    %c0_i32 = arith.constant 0 : i32
    %c0_i32_0 = arith.constant 0 : i32
    return %arg0, %c0_i32, %arg1 : i32, i32, i32
  }
  func.func @transform_2(%arg0: i32, %arg1: i32) -> (i32, i32, i32) {
    %c0_i32 = arith.constant 0 : i32
    %c0_i32_0 = arith.constant 0 : i32
    return %arg0, %c0_i32, %arg1 : i32, i32, i32
  }
}

module attributes {stable_mosaic.version = 11 : i64} {
  func.func @_conv1x1_kernel(%arg0: i32, %arg1: i32, %arg2: memref<1x34x128xbf16, #tpu.memory_space<vmem>>, %arg3: memref<34x34xbf16, #tpu.memory_space<vmem>>, %arg4: memref<34x1xf32, #tpu.memory_space<vmem>>, %arg5: memref<1x34x128xbf16, #tpu.memory_space<vmem>>) attributes {dimension_semantics = [#tpu.dimension_semantics<parallel>, #tpu.dimension_semantics<parallel>], iteration_bounds = array<i64: 2, 1>, scalar_prefetch = 0 : i64, scratch_operands = 0 : i64, tpu.core_type = #tpu.core_type<tc>, window_params = [{transform_indices = @transform_0, window_bounds = array<i64: 1, 34, 128>}, {pipeline_mode = #tpu.pipeline_mode<synchronous>, transform_indices = @transform_1, window_bounds = array<i64: 34, 34>}, {pipeline_mode = #tpu.pipeline_mode<synchronous>, transform_indices = @transform_2, window_bounds = array<i64: 34, 1>}, {transform_indices = @transform_3, window_bounds = array<i64: 1, 34, 128>}]} {
    %c0 = arith.constant 0 : index
    %c0_0 = arith.constant 0 : index
    %0 = vector.load %arg3[%c0, %c0_0] : memref<34x34xbf16, #tpu.memory_space<vmem>>, vector<34x34xbf16>
    %c0_1 = arith.constant 0 : index
    %c0_2 = arith.constant 0 : index
    %c0_3 = arith.constant 0 : index
    %1 = vector.load %arg2[%c0_1, %c0_2, %c0_3] : memref<1x34x128xbf16, #tpu.memory_space<vmem>>, vector<1x34x128xbf16>
    %2 = vector.shape_cast %1 : vector<1x34x128xbf16> to vector<34x128xbf16>
    %cst = arith.constant dense<0.000000e+00> : vector<34x128xf32>
    %3 = tpu.matmul %0, %2, %cst {dimension_numbers = #tpu.dot_dimension_numbers<[1], [0], [0], [1], [0, 0, 1, 1], [], []>} : vector<34x34xbf16>, vector<34x128xbf16>, vector<34x128xf32> -> vector<34x128xf32>
    %c0_4 = arith.constant 0 : index
    %c0_5 = arith.constant 0 : index
    %4 = vector.load %arg4[%c0_4, %c0_5] : memref<34x1xf32, #tpu.memory_space<vmem>>, vector<34x1xf32>
    %5 = vector.broadcast %4 : vector<34x1xf32> to vector<34x128xf32>
    %6 = arith.addf %3, %5 : vector<34x128xf32>
    %7 = arith.truncf %6 : vector<34x128xf32> to vector<34x128xbf16>
    %c0_6 = arith.constant 0 : index
    %c0_7 = arith.constant 0 : index
    %c0_8 = arith.constant 0 : index
    %8 = vector.load %arg5[%c0_6, %c0_7, %c0_8] : memref<1x34x128xbf16, #tpu.memory_space<vmem>>, vector<1x34x128xbf16>
    %9 = vector.shape_cast %8 : vector<1x34x128xbf16> to vector<34x128xbf16>
    %10 = vector.shape_cast %7 : vector<34x128xbf16> to vector<1x34x128xbf16>
    tpu.vector_store %arg5[%c0_6, %c0_7, %c0_8], %10 {strides = array<i32>} : memref<1x34x128xbf16, #tpu.memory_space<vmem>>, vector<1x34x128xbf16>,
    return
  }
  func.func @transform_0(%arg0: i32, %arg1: i32) -> (i32, i32, i32) {
    %c0_i32 = arith.constant 0 : i32
    %c0_i32_0 = arith.constant 0 : i32
    return %arg0, %c0_i32, %arg1 : i32, i32, i32
  }
  func.func @transform_1(%arg0: i32, %arg1: i32) -> (i32, i32) {
    %c0_i32 = arith.constant 0 : i32
    %c0_i32_0 = arith.constant 0 : i32
    %c0_i32_1 = arith.constant 0 : i32
    return %c0_i32, %c0_i32_0 : i32, i32
  }
  func.func @transform_2(%arg0: i32, %arg1: i32) -> (i32, i32) {
    %c0_i32 = arith.constant 0 : i32
    %c0_i32_0 = arith.constant 0 : i32
    %c0_i32_1 = arith.constant 0 : i32
    return %c0_i32, %c0_i32_0 : i32, i32
  }
  func.func @transform_3(%arg0: i32, %arg1: i32) -> (i32, i32, i32) {
    %c0_i32 = arith.constant 0 : i32
    %c0_i32_0 = arith.constant 0 : i32
    return %arg0, %c0_i32, %arg1 : i32, i32, i32
  }
}

module attributes {stable_mosaic.version = 11 : i64} {
  func.func @_conv1x1_kernel(%arg0: i32, %arg1: i32, %arg2: memref<1x34x128xbf16, #tpu.memory_space<vmem>>, %arg3: memref<9x34xbf16, #tpu.memory_space<vmem>>, %arg4: memref<9x1xf32, #tpu.memory_space<vmem>>, %arg5: memref<1x9x128xbf16, #tpu.memory_space<vmem>>) attributes {dimension_semantics = [#tpu.dimension_semantics<parallel>, #tpu.dimension_semantics<parallel>], iteration_bounds = array<i64: 2, 1>, scalar_prefetch = 0 : i64, scratch_operands = 0 : i64, tpu.core_type = #tpu.core_type<tc>, window_params = [{transform_indices = @transform_0, window_bounds = array<i64: 1, 34, 128>}, {pipeline_mode = #tpu.pipeline_mode<synchronous>, transform_indices = @transform_1, window_bounds = array<i64: 9, 34>}, {pipeline_mode = #tpu.pipeline_mode<synchronous>, transform_indices = @transform_2, window_bounds = array<i64: 9, 1>}, {transform_indices = @transform_3, window_bounds = array<i64: 1, 9, 128>}]} {
    %c0 = arith.constant 0 : index
    %c0_0 = arith.constant 0 : index
    %0 = vector.load %arg3[%c0, %c0_0] : memref<9x34xbf16, #tpu.memory_space<vmem>>, vector<9x34xbf16>
    %c0_1 = arith.constant 0 : index
    %c0_2 = arith.constant 0 : index
    %c0_3 = arith.constant 0 : index
    %1 = vector.load %arg2[%c0_1, %c0_2, %c0_3] : memref<1x34x128xbf16, #tpu.memory_space<vmem>>, vector<1x34x128xbf16>
    %2 = vector.shape_cast %1 : vector<1x34x128xbf16> to vector<34x128xbf16>
    %cst = arith.constant dense<0.000000e+00> : vector<9x128xf32>
    %3 = tpu.matmul %0, %2, %cst {dimension_numbers = #tpu.dot_dimension_numbers<[1], [0], [0], [1], [0, 0, 1, 1], [], []>} : vector<9x34xbf16>, vector<34x128xbf16>, vector<9x128xf32> -> vector<9x128xf32>
    %c0_4 = arith.constant 0 : index
    %c0_5 = arith.constant 0 : index
    %4 = vector.load %arg4[%c0_4, %c0_5] : memref<9x1xf32, #tpu.memory_space<vmem>>, vector<9x1xf32>
    %5 = vector.broadcast %4 : vector<9x1xf32> to vector<9x128xf32>
    %6 = arith.addf %3, %5 : vector<9x128xf32>
    %7 = arith.truncf %6 : vector<9x128xf32> to vector<9x128xbf16>
    %c0_6 = arith.constant 0 : index
    %c0_7 = arith.constant 0 : index
    %c0_8 = arith.constant 0 : index
    %8 = vector.load %arg5[%c0_6, %c0_7, %c0_8] : memref<1x9x128xbf16, #tpu.memory_space<vmem>>, vector<1x9x128xbf16>
    %9 = vector.shape_cast %8 : vector<1x9x128xbf16> to vector<9x128xbf16>
    %10 = vector.shape_cast %7 : vector<9x128xbf16> to vector<1x9x128xbf16>
    tpu.vector_store %arg5[%c0_6, %c0_7, %c0_8], %10 {strides = array<i32>} : memref<1x9x128xbf16, #tpu.memory_space<vmem>>, vector<1x9x128xbf16>,
    return
  }
  func.func @transform_0(%arg0: i32, %arg1: i32) -> (i32, i32, i32) {
    %c0_i32 = arith.constant 0 : i32
    %c0_i32_0 = arith.constant 0 : i32
    return %arg0, %c0_i32, %arg1 : i32, i32, i32
  }
  func.func @transform_1(%arg0: i32, %arg1: i32) -> (i32, i32) {
    %c0_i32 = arith.constant 0 : i32
    %c0_i32_0 = arith.constant 0 : i32
    %c0_i32_1 = arith.constant 0 : i32
    return %c0_i32, %c0_i32_0 : i32, i32
  }
  func.func @transform_2(%arg0: i32, %arg1: i32) -> (i32, i32) {
    %c0_i32 = arith.constant 0 : i32
    %c0_i32_0 = arith.constant 0 : i32
    %c0_i32_1 = arith.constant 0 : i32
    return %c0_i32, %c0_i32_0 : i32, i32
  }
  func.func @transform_3(%arg0: i32, %arg1: i32) -> (i32, i32, i32) {
    %c0_i32 = arith.constant 0 : i32
    %c0_i32_0 = arith.constant 0 : i32
    return %arg0, %c0_i32, %arg1 : i32, i32, i32
  }
}

module attributes {stable_mosaic.version = 11 : i64} {
  func.func @_mm_kernel(%arg0: i32, %arg1: i32, %arg2: i32, %arg3: memref<16x128xbf16, #tpu.memory_space<vmem>>, %arg4: memref<128x128xbf16, #tpu.memory_space<vmem>>, %arg5: memref<1x128xf32, #tpu.memory_space<vmem>>, %arg6: memref<16x128xbf16, #tpu.memory_space<vmem>>, %arg7: memref<16x128xf32, #tpu.memory_space<vmem>>) attributes {dimension_semantics = [#tpu.dimension_semantics<parallel>, #tpu.dimension_semantics<parallel>, #tpu.dimension_semantics<arbitrary>], iteration_bounds = array<i64: 1, 1, 1>, scalar_prefetch = 0 : i64, scratch_operands = 1 : i64, tpu.core_type = #tpu.core_type<tc>, window_params = [{transform_indices = @transform_0, window_bounds = array<i64: 16, 128>}, {transform_indices = @transform_1, window_bounds = array<i64: 128, 128>}, {transform_indices = @transform_2, window_bounds = array<i64: 1, 128>}, {transform_indices = @transform_3, window_bounds = array<i64: 16, 128>}]} {
    %c0_i32 = arith.constant 0 : i32
    %0 = arith.cmpi eq, %arg2, %c0_i32 : i32
    %1 = arith.extui %0 : i1 to i32
    %c0_i32_0 = arith.constant 0 : i32
    %2 = arith.cmpi ne, %1, %c0_i32_0 : i32
    scf.if %2 {
      %cst_10 = arith.constant 0.000000e+00 : f32
      %12 = vector.broadcast %cst_10 : f32 to vector<16x128xf32>
      %c0_11 = arith.constant 0 : index
      %c0_12 = arith.constant 0 : index
      %13 = vector.load %arg7[%c0_11, %c0_12] : memref<16x128xf32, #tpu.memory_space<vmem>>, vector<16x128xf32>
      tpu.vector_store %arg7[%c0_11, %c0_12], %12 {strides = array<i32>} : memref<16x128xf32, #tpu.memory_space<vmem>>, vector<16x128xf32>,
    } else {
    }
    %c0 = arith.constant 0 : index
    %c0_1 = arith.constant 0 : index
    %3 = vector.load %arg7[%c0, %c0_1] : memref<16x128xf32, #tpu.memory_space<vmem>>, vector<16x128xf32>
    %c0_2 = arith.constant 0 : index
    %c0_3 = arith.constant 0 : index
    %4 = vector.load %arg3[%c0_2, %c0_3] : memref<16x128xbf16, #tpu.memory_space<vmem>>, vector<16x128xbf16>
    %c0_4 = arith.constant 0 : index
    %c0_5 = arith.constant 0 : index
    %5 = vector.load %arg4[%c0_4, %c0_5] : memref<128x128xbf16, #tpu.memory_space<vmem>>, vector<128x128xbf16>
    %cst = arith.constant dense<0.000000e+00> : vector<16x128xf32>
    %6 = tpu.matmul %4, %5, %cst {dimension_numbers = #tpu.dot_dimension_numbers<[1], [0], [0], [1], [0, 0, 1, 1], [], []>} : vector<16x128xbf16>, vector<128x128xbf16>, vector<16x128xf32> -> vector<16x128xf32>
    %7 = arith.addf %3, %6 : vector<16x128xf32>
    %c0_6 = arith.constant 0 : index
    %c0_7 = arith.constant 0 : index
    %8 = vector.load %arg7[%c0_6, %c0_7] : memref<16x128xf32, #tpu.memory_space<vmem>>, vector<16x128xf32>
    tpu.vector_store %arg7[%c0_6, %c0_7], %7 {strides = array<i32>} : memref<16x128xf32, #tpu.memory_space<vmem>>, vector<16x128xf32>,
    %c0_i32_8 = arith.constant 0 : i32
    %9 = arith.cmpi eq, %arg2, %c0_i32_8 : i32
    %10 = arith.extui %9 : i1 to i32
    %c0_i32_9 = arith.constant 0 : i32
    %11 = arith.cmpi ne, %10, %c0_i32_9 : i32
    scf.if %11 {
      %c0_10 = arith.constant 0 : index
      %c0_11 = arith.constant 0 : index
      %12 = vector.load %arg7[%c0_10, %c0_11] : memref<16x128xf32, #tpu.memory_space<vmem>>, vector<16x128xf32>
      %c0_12 = arith.constant 0 : index
      %c0_13 = arith.constant 0 : index
      %13 = vector.load %arg5[%c0_12, %c0_13] : memref<1x128xf32, #tpu.memory_space<vmem>>, vector<1x128xf32>
      %14 = vector.broadcast %13 : vector<1x128xf32> to vector<16x128xf32>
      %15 = arith.addf %12, %14 : vector<16x128xf32>
      %16 = arith.truncf %15 : vector<16x128xf32> to vector<16x128xbf16>
      %c0_14 = arith.constant 0 : index
      %c0_15 = arith.constant 0 : index
      %17 = vector.load %arg6[%c0_14, %c0_15] : memref<16x128xbf16, #tpu.memory_space<vmem>>, vector<16x128xbf16>
      tpu.vector_store %arg6[%c0_14, %c0_15], %16 {strides = array<i32>} : memref<16x128xbf16, #tpu.memory_space<vmem>>, vector<16x128xbf16>,
    } else {
    }
    return
  }
  func.func @transform_0(%arg0: i32, %arg1: i32, %arg2: i32) -> (i32, i32) {
    %c0_i32 = arith.constant 0 : i32
    return %arg0, %arg2 : i32, i32
  }
  func.func @transform_1(%arg0: i32, %arg1: i32, %arg2: i32) -> (i32, i32) {
    %c0_i32 = arith.constant 0 : i32
    return %arg2, %arg1 : i32, i32
  }
  func.func @transform_2(%arg0: i32, %arg1: i32, %arg2: i32) -> (i32, i32) {
    %c0_i32 = arith.constant 0 : i32
    %c0_i32_0 = arith.constant 0 : i32
    return %c0_i32, %arg1 : i32, i32
  }
  func.func @transform_3(%arg0: i32, %arg1: i32, %arg2: i32) -> (i32, i32) {
    %c0_i32 = arith.constant 0 : i32
    return %arg0, %arg1 : i32, i32
  }
}

module attributes {stable_mosaic.version = 11 : i64} {
  func.func @_bmm_kernel(%arg0: i32, %arg1: i32, %arg2: memref<16x18xbf16, #tpu.memory_space<vmem>>, %arg3: memref<1x18x128xbf16, #tpu.memory_space<vmem>>, %arg4: memref<1x16x128xf32, #tpu.memory_space<vmem>>) attributes {dimension_semantics = [#tpu.dimension_semantics<parallel>, #tpu.dimension_semantics<parallel>], iteration_bounds = array<i64: 2, 1>, scalar_prefetch = 0 : i64, scratch_operands = 0 : i64, tpu.core_type = #tpu.core_type<tc>, window_params = [{pipeline_mode = #tpu.pipeline_mode<synchronous>, transform_indices = @transform_0, window_bounds = array<i64: 16, 18>}, {transform_indices = @transform_1, window_bounds = array<i64: 1, 18, 128>}, {transform_indices = @transform_2, window_bounds = array<i64: 1, 16, 128>}]} {
    %c0 = arith.constant 0 : index
    %c0_0 = arith.constant 0 : index
    %0 = vector.load %arg2[%c0, %c0_0] : memref<16x18xbf16, #tpu.memory_space<vmem>>, vector<16x18xbf16>
    %c0_1 = arith.constant 0 : index
    %c0_2 = arith.constant 0 : index
    %c0_3 = arith.constant 0 : index
    %1 = vector.load %arg3[%c0_1, %c0_2, %c0_3] : memref<1x18x128xbf16, #tpu.memory_space<vmem>>, vector<1x18x128xbf16>
    %2 = vector.shape_cast %1 : vector<1x18x128xbf16> to vector<18x128xbf16>
    %cst = arith.constant dense<0.000000e+00> : vector<16x128xf32>
    %3 = tpu.matmul %0, %2, %cst {dimension_numbers = #tpu.dot_dimension_numbers<[1], [0], [0], [1], [0, 0, 1, 1], [], []>} : vector<16x18xbf16>, vector<18x128xbf16>, vector<16x128xf32> -> vector<16x128xf32>
    %c0_4 = arith.constant 0 : index
    %c0_5 = arith.constant 0 : index
    %c0_6 = arith.constant 0 : index
    %4 = vector.load %arg4[%c0_4, %c0_5, %c0_6] : memref<1x16x128xf32, #tpu.memory_space<vmem>>, vector<1x16x128xf32>
    %5 = vector.shape_cast %4 : vector<1x16x128xf32> to vector<16x128xf32>
    %6 = vector.shape_cast %3 : vector<16x128xf32> to vector<1x16x128xf32>
    tpu.vector_store %arg4[%c0_4, %c0_5, %c0_6], %6 {strides = array<i32>} : memref<1x16x128xf32, #tpu.memory_space<vmem>>, vector<1x16x128xf32>,
    return
  }
  func.func @transform_0(%arg0: i32, %arg1: i32) -> (i32, i32) {
    %c0_i32 = arith.constant 0 : i32
    %c0_i32_0 = arith.constant 0 : i32
    %c0_i32_1 = arith.constant 0 : i32
    return %c0_i32, %c0_i32_0 : i32, i32
  }
  func.func @transform_1(%arg0: i32, %arg1: i32) -> (i32, i32, i32) {
    %c0_i32 = arith.constant 0 : i32
    %c0_i32_0 = arith.constant 0 : i32
    return %arg0, %c0_i32, %arg1 : i32, i32, i32
  }
  func.func @transform_2(%arg0: i32, %arg1: i32) -> (i32, i32, i32) {
    %c0_i32 = arith.constant 0 : i32
    %c0_i32_0 = arith.constant 0 : i32
    return %arg0, %c0_i32, %arg1 : i32, i32, i32
  }
}

</mosaic_0001>

<bundles_post_ra>
// kernel: forward.13
= control target key start
LH: loop header
LB: loop body
LE: loop exit
PB: predicated region body
PF: predicated region fallthrough
CT: control target
= control target key end

     0   :  { %s373_s9 = smov 0   ;;  %s375_s10 = smov 0   ;;  %s406_s0 = inlined_call_operand.vmem [shape: bf16[2,4], index: 0, kind: input, shape index: {}]   ;;  %s407_s1 = inlined_call_operand.vmem [shape: bf16[64,4,128], index: 1, kind: input, shape index: {}]   ;;  %s408_s2 = inlined_call_operand.vmem [shape: bf16[64,2,128], index: 2, kind: output, shape index: {}]  }
   0x1   :  { %s377_s11 = smov 0  }
   0x2 LB: > { %s24_s12 = sadd.s32 1, %s350_s10  ;;  %p293_p0 = scmp.ge.s32.totalorder %s354_s11, 1  ;;  %s354_s11 = sphi %s377_s11, %s12_s11   ;;  %s350_s10 = sphi %s375_s10, %s410_s10   ;;  %s346_s9 = sphi %s373_s9, %s409_s9  }
   0x3   : > { %p26_p1 = scmp.ge.s32.totalorder %s24_s12, 64  ;;  %p130_p2 = scmp.lt.s32.totalorder %s354_s11, 65 }
   0x5   : > { %s412_s12 = smov (%p26_p1, %s24_s12), 0  ;;  %p131_p3 = pnand %p293_p0, %p130_p2 }
   0x6   : > { %p155_p4 = scmp.lt.s32.totalorder (!%p131_p3), %s346_s9, 63  ;;  %v356_v0 = vmov (!%p131_p3), 0.0   ;;  %vm357_vm0 = vmmov (!%p131_p3), 0   ;;  %vm175_vm1 = vcmask (!%p131_p3), 1041408   ;;  %v169_v3 = vld [vmem:[%s406_s0] sm:$0x1] (!%p131_p3) }
   0x7   : > { %134 = sbr.rel (%p131_p3) target bundleno = 237 (0xed), region = 28  ;;  %300 = vmatprep.subr.bf16.mxu0 (!%p131_p3), %v356_v0  ;;  %302 = vmatprep.mubr.msk.bf16.mxu0 (!%p131_p3), %vm357_vm0, %v356_v0  ;;  %vm171_vm2 = vcmask (!%p131_p3), 31744  }
   0xe   : > { %s414_s9 = smov (!%p155_p4, %s346_s9), 63 }
   0xf   : > { %s294_s13 = sshll.u32 %s414_s9, 1  ;;  %s167_s21 = scalar_lea.vmem %s408_s2, %s414_s9 }
  0x10   : > { %s161_s16 = scalar_lea.vmem %s407_s1, %s294_s13 }
  0x11   : > { %v170_v1 = vld [vmem:[%s161_s16] sm:$0x3] }
  0x12   : > { %v177_v2 = vsel %vm175_vm1, %v170_v1, 0 }
  0x13   : > { %301 = vmatpush3.bf16.msra.mxu0 %v177_v2 }
  0x16   : > { %303 = vmatmul.mubr.msk.bf16.vlgmr.msra.gmra.mrb[0].mxu0 %vm171_vm2, %v169_v3 }
  0xe9   : > { %v213_v4 = vpop.f32.mrb[0].mxu0 }
  0xea   : > { %v219_v5 = vpack.c.bf16 %v213_v4, %v213_v4  ;;  %v304_v6 = vpop.f32.mrb[1].mxu0 }
  0xeb   : > { %v216_v7 = vpop.f32.mrb[2].mxu0 }
  0xec   : > { %220 = vst [vmem:[%s167_s21] sm:$0x1] %v219_v5  ;;  %v305_v8 = vpop.f32.mrb[3].mxu0 }
  0xed PF: > { %s12_s11 = sadd.s32 1, %s354_s11   ;;  %s409_s9 = smov %s350_s10 }
  0xee   : > { %p9_p5 = scmp.ge.s32.totalorder %s12_s11, 66   ;;  %s410_s10 = smov %s412_s12 }
  0xf0   :  { %11 = sbr.rel (!%p9_p5) target bundleno = 2 (0x2), region = 58 }

// kernel: forward.12
= control target key start
LH: loop header
LB: loop body
LE: loop exit
PB: predicated region body
PF: predicated region fallthrough
CT: control target
= control target key end

     0   :  { %s1211_s1 = inlined_call_operand.vmem [shape: bf16[128,128], index: 1, kind: input, shape index: {}]   ;;  %s1212_s0 = inlined_call_operand.vmem [shape: bf16[256,128], index: 0, kind: input, shape index: {}]   ;;  %s1213_s2 = inlined_call_operand.vmem [shape: f32[1,128], index: 2, kind: input, shape index: {}]   ;;  %s1214_s3 = inlined_call_operand.vmem [shape: bf16[256,128], index: 3, kind: output, shape index: {}]  }
   0x1   :  { %v1010_v0 = vld [vmem:[%s1211_s1] sm:$0xff]   ;;  %v1011_v1 = vld [vmem:[%s1211_s1 + $0x8] sm:$0xff]   ;;  %v1012_v2 = vld [vmem:[%s1211_s1 + $0x10] sm:$0xff]  }
   0x2   :  { %946 = vmatprep.subr.bf16.mxu0 %v1010_v0  ;;  %994 = vmatprep.subr.bf16.mxu1 %v1010_v0  ;;  %v1013_v3 = vld [vmem:[%s1211_s1 + $0x18] sm:$0xff]   ;;  %v1018_v4 = vld [vmem:[%s1212_s0] sm:$0xff]   ;;  %v1015_v7 = vld [vmem:[%s1211_s1 + $0x28] sm:$0xff]  }
   0x3   :  { %947 = vmatpush3.bf16.msra.mxu0 %v1010_v0  ;;  %1002 = vmatpush3.bf16.msra.mxu1 %v1010_v0  ;;  %v1019_v5 = vld [vmem:[%s1212_s0 + $0x40] sm:$0xff]   ;;  %v1016_v8 = vld [vmem:[%s1211_s1 + $0x30] sm:$0xff]   ;;  %v1017_v9 = vld [vmem:[%s1211_s1 + $0x38] sm:$0xff]  }
   0x4   :  { %948 = vmatprep.subr.bf16.mxu0 %v1011_v1  ;;  %995 = vmatprep.subr.bf16.mxu1 %v1011_v1  ;;  %v1014_v6 = vld [vmem:[%s1211_s1 + $0x20] sm:$0xff]   ;;  %v1020_v10 = vld [vmem:[%s1212_s0 + $0x8] sm:$0xff]   ;;  %v1022_v12 = vld [vmem:[%s1212_s0 + $0x10] sm:$0xff]  }
   0x5   :  { %962 = vmatprep.mubr.bf16.mxu0 %v1018_v4  ;;  %978 = vmatprep.mubr.bf16.mxu1 %v1019_v5  ;;  %v1021_v11 = vld [vmem:[%s1212_s0 + $0x48] sm:$0xff]   ;;  %v1023_v13 = vld [vmem:[%s1212_s0 + $0x50] sm:$0xff]   ;;  %v1024_v14 = vld [vmem:[%s1212_s0 + $0x18] sm:$0xff]  }
   0x6   :  { %v1025_v15 = vld [vmem:[%s1212_s0 + $0x58] sm:$0xff]   ;;  %v1026_v16 = vld [vmem:[%s1212_s0 + $0x20] sm:$0xff]   ;;  %v1028_v18 = vld [vmem:[%s1212_s0 + $0x28] sm:$0xff]  }
   0x7   :  { %949 = vmatpush3.bf16.msra.mxu0 %v1011_v1  ;;  %1003 = vmatpush3.bf16.msra.mxu1 %v1011_v1  ;;  %v1027_v17 = vld [vmem:[%s1212_s0 + $0x60] sm:$0xff]   ;;  %v1029_v19 = vld [vmem:[%s1212_s0 + $0x68] sm:$0xff]   ;;  %v1030_v20 = vld [vmem:[%s1212_s0 + $0x30] sm:$0xff]  }
   0x8   :  { %950 = vmatprep.subr.bf16.mxu0 %v1012_v2  ;;  %996 = vmatprep.subr.bf16.mxu1 %v1012_v2  ;;  %v1031_v21 = vld [vmem:[%s1212_s0 + $0x70] sm:$0xff]   ;;  %v1032_v22 = vld [vmem:[%s1212_s0 + $0x38] sm:$0xff]   ;;  %v1129_v25 = vld [vmem:[%s1213_s2] ss:$0 sm:$0xff] }
   0x9   :  { %v1033_v23 = vld [vmem:[%s1212_s0 + $0x78] sm:$0xff]  }
   0xb   :  { %951 = vmatpush3.bf16.msra.mxu0 %v1012_v2  ;;  %1004 = vmatpush3.bf16.msra.mxu1 %v1012_v2 }
   0xc   :  { %952 = vmatprep.subr.bf16.mxu0 %v1013_v3  ;;  %997 = vmatprep.subr.bf16.mxu1 %v1013_v3 }
   0xf   :  { %953 = vmatpush3.bf16.msra.mxu0 %v1013_v3  ;;  %1005 = vmatpush3.bf16.msra.mxu1 %v1013_v3 }
  0x10   :  { %954 = vmatprep.subr.bf16.mxu0 %v1014_v6  ;;  %998 = vmatprep.subr.bf16.mxu1 %v1014_v6 }
  0x13   :  { %955 = vmatpush3.bf16.msra.mxu0 %v1014_v6  ;;  %1006 = vmatpush3.bf16.msra.mxu1 %v1014_v6 }
  0x14   :  { %956 = vmatprep.subr.bf16.mxu0 %v1015_v7  ;;  %999 = vmatprep.subr.bf16.mxu1 %v1015_v7 }
  0x17   :  { %957 = vmatpush3.bf16.msra.mxu0 %v1015_v7  ;;  %1007 = vmatpush3.bf16.msra.mxu1 %v1015_v7 }
  0x18   :  { %958 = vmatprep.subr.bf16.mxu0 %v1016_v8  ;;  %1000 = vmatprep.subr.bf16.mxu1 %v1016_v8 }
  0x1b   :  { %959 = vmatpush3.bf16.msra.mxu0 %v1016_v8  ;;  %1008 = vmatpush3.bf16.msra.mxu1 %v1016_v8 }
  0x1c   :  { %960 = vmatprep.subr.bf16.mxu0 %v1017_v9  ;;  %1001 = vmatprep.subr.bf16.mxu1 %v1017_v9 }
  0x1f   :  { %961 = vmatpush3.bf16.msra.mxu0 %v1017_v9  ;;  %1009 = vmatpush3.bf16.msra.mxu1 %v1017_v9 }
  0x22   :  { %963 = vmatmul.mubr.bf16.vlgmr.msra.gmra.mrb[0].mxu0 %v1020_v10  ;;  %979 = vmatmul.mubr.bf16.vlgmr.msra.gmra.mrb[0].mxu1 %v1021_v11 }
  0x23   :  { %966 = vmatprep.mubr.bf16.mxu0 %v1022_v12  ;;  %982 = vmatprep.mubr.bf16.mxu1 %v1023_v13 }
  0x2a   :  { %967 = vmatmul.mubr.bf16.gmra.mrb[4].mxu0 %v1024_v14  ;;  %983 = vmatmul.mubr.bf16.gmra.mrb[4].mxu1 %v1025_v15 }
  0x2b   :  { %970 = vmatprep.mubr.bf16.mxu0 %v1026_v16  ;;  %986 = vmatprep.mubr.bf16.mxu1 %v1027_v17 }
  0x32   :  { %971 = vmatmul.mubr.bf16.gmra.mrb[8].mxu0 %v1028_v18  ;;  %987 = vmatmul.mubr.bf16.gmra.mrb[8].mxu1 %v1029_v19 }
  0x33   :  { %974 = vmatprep.mubr.bf16.mxu0 %v1030_v20  ;;  %990 = vmatprep.mubr.bf16.mxu1 %v1031_v21 }
  0x3a   :  { %975 = vmatmul.mubr.bf16.gmra.mrb[12].mxu0 %v1032_v22  ;;  %991 = vmatmul.mubr.bf16.gmra.mrb[12].mxu1 %v1033_v23 }
  0xf5   :  { %v964_v24 = vpop.f32.mrb[0].mxu0  ;;  %v980_v26 = vpop.f32.mrb[0].mxu1 }
  0xf6   :  { %v309_v27 = vpop.f32.mrb[1].mxu0  ;;  %v373_v28 = vpop.f32.mrb[1].mxu1  ;;  %v544_v31 = vadd.f32 %v964_v24, %v1129_v25  ;;  %v560_v32 = vadd.f32 %v980_v26, %v1129_v25 }
  0xf7   :  { %v965_v29 = vpop.f32.mrb[2].mxu0  ;;  %v981_v30 = vpop.f32.mrb[2].mxu1  ;;  %v542_v37 = vadd.f32 %v1129_v25, %v309_v27  ;;  %v558_v38 = vadd.f32 %v1129_v25, %v373_v28 }
  0xf8   :  { %v545_v33 = vadd.f32 %v965_v29, %v1129_v25  ;;  %v561_v34 = vadd.f32 %v981_v30, %v1129_v25  ;;  %v312_v35 = vpop.f32.mrb[3].mxu0  ;;  %v376_v36 = vpop.f32.mrb[3].mxu1 }
  0xf9   :  { %v543_v39 = vadd.f32 %v1129_v25, %v312_v35  ;;  %v559_v40 = vadd.f32 %v1129_v25, %v376_v36 }
  0xfa   :  { %v835_v41 = vpack.c.bf16 %v545_v33, %v544_v31  ;;  %v875_v42 = vpack.c.bf16 %v561_v34, %v560_v32 }
  0xfb   :  { %v830_v43 = vpack.c.bf16 %v543_v39, %v542_v37  ;;  %v870_v44 = vpack.c.bf16 %v559_v40, %v558_v38 }
  0xfc   :  { %907 = vst [vmem:[%s1214_s3 + $0x8] sm:$0xff] %v835_v41   ;;  %915 = vst [vmem:[%s1214_s3 + $0x48] sm:$0xff] %v875_v42  }
  0xfd   :  { %831 = vst [vmem:[%s1214_s3] sm:$0xff] %v830_v43   ;;  %914 = vst [vmem:[%s1214_s3 + $0x40] sm:$0xff] %v870_v44   ;;  %v968_v45 = vpop.f32.mrb[4].mxu0  ;;  %v984_v46 = vpop.f32.mrb[4].mxu1 }
  0xfe   :  { %v325_v47 = vpop.f32.mrb[5].mxu0  ;;  %v389_v48 = vpop.f32.mrb[5].mxu1  ;;  %v548_v51 = vadd.f32 %v968_v45, %v1129_v25  ;;  %v564_v52 = vadd.f32 %v984_v46, %v1129_v25 }
  0xff   :  { %v969_v49 = vpop.f32.mrb[6].mxu0  ;;  %v985_v50 = vpop.f32.mrb[6].mxu1  ;;  %v546_v57 = vadd.f32 %v1129_v25, %v325_v47  ;;  %v562_v58 = vadd.f32 %v1129_v25, %v389_v48 }
 0x100   :  { %v549_v53 = vadd.f32 %v969_v49, %v1129_v25  ;;  %v565_v54 = vadd.f32 %v985_v50, %v1129_v25  ;;  %v328_v55 = vpop.f32.mrb[7].mxu0  ;;  %v392_v56 = vpop.f32.mrb[7].mxu1 }
 0x101   :  { %v547_v59 = vadd.f32 %v1129_v25, %v328_v55  ;;  %v563_v60 = vadd.f32 %v1129_v25, %v392_v56 }
 0x102   :  { %v845_v61 = vpack.c.bf16 %v549_v53, %v548_v51  ;;  %v885_v62 = vpack.c.bf16 %v565_v54, %v564_v52 }
 0x103   :  { %v840_v63 = vpack.c.bf16 %v547_v59, %v546_v57  ;;  %v880_v0 = vpack.c.bf16 %v563_v60, %v562_v58 }
 0x104   :  { %909 = vst [vmem:[%s1214_s3 + $0x18] sm:$0xff] %v845_v61   ;;  %917 = vst [vmem:[%s1214_s3 + $0x58] sm:$0xff] %v885_v62  }
 0x105   :  { %908 = vst [vmem:[%s1214_s3 + $0x10] sm:$0xff] %v840_v63   ;;  %916 = vst [vmem:[%s1214_s3 + $0x50] sm:$0xff] %v880_v0   ;;  %v972_v1 = vpop.f32.mrb[8].mxu0  ;;  %v988_v2 = vpop.f32.mrb[8].mxu1 }
 0x106   :  { %v341_v3 = vpop.f32.mrb[9].mxu0  ;;  %v405_v4 = vpop.f32.mrb[9].mxu1  ;;  %v552_v7 = vadd.f32 %v972_v1, %v1129_v25  ;;  %v568_v8 = vadd.f32 %v988_v2, %v1129_v25 }
 0x107   :  { %v973_v5 = vpop.f32.mrb[10].mxu0  ;;  %v989_v6 = vpop.f32.mrb[10].mxu1  ;;  %v550_v13 = vadd.f32 %v1129_v25, %v341_v3  ;;  %v566_v14 = vadd.f32 %v1129_v25, %v405_v4 }
 0x108   :  { %v553_v9 = vadd.f32 %v973_v5, %v1129_v25  ;;  %v569_v10 = vadd.f32 %v989_v6, %v1129_v25  ;;  %v344_v11 = vpop.f32.mrb[11].mxu0  ;;  %v408_v12 = vpop.f32.mrb[11].mxu1 }
 0x109   :  { %v551_v15 = vadd.f32 %v1129_v25, %v344_v11  ;;  %v567_v16 = vadd.f32 %v1129_v25, %v408_v12 }
 0x10a   :  { %v855_v17 = vpack.c.bf16 %v553_v9, %v552_v7  ;;  %v895_v18 = vpack.c.bf16 %v569_v10, %v568_v8 }
 0x10b   :  { %v850_v19 = vpack.c.bf16 %v551_v15, %v550_v13  ;;  %v890_v20 = vpack.c.bf16 %v567_v16, %v566_v14 }
 0x10c   :  { %911 = vst [vmem:[%s1214_s3 + $0x28] sm:$0xff] %v855_v17   ;;  %919 = vst [vmem:[%s1214_s3 + $0x68] sm:$0xff] %v895_v18  }
 0x10d   :  { %910 = vst [vmem:[%s1214_s3 + $0x20] sm:$0xff] %v850_v19   ;;  %918 = vst [vmem:[%s1214_s3 + $0x60] sm:$0xff] %v890_v20   ;;  %v976_v21 = vpop.f32.mrb[12].mxu0  ;;  %v992_v22 = vpop.f32.mrb[12].mxu1 }
 0x10e   :  { %v357_v23 = vpop.f32.mrb[13].mxu0  ;;  %v421_v24 = vpop.f32.mrb[13].mxu1  ;;  %v556_v28 = vadd.f32 %v976_v21, %v1129_v25  ;;  %v572_v29 = vadd.f32 %v992_v22, %v1129_v25 }
 0x10f   :  { %v977_v26 = vpop.f32.mrb[14].mxu0  ;;  %v993_v27 = vpop.f32.mrb[14].mxu1  ;;  %v554_v34 = vadd.f32 %v1129_v25, %v357_v23  ;;  %v570_v35 = vadd.f32 %v1129_v25, %v421_v24 }
 0x110   :  { %v557_v30 = vadd.f32 %v977_v26, %v1129_v25  ;;  %v573_v31 = vadd.f32 %v993_v27, %v1129_v25  ;;  %v360_v32 = vpop.f32.mrb[15].mxu0  ;;  %v424_v33 = vpop.f32.mrb[15].mxu1 }
 0x111   :  { %v555_v36 = vadd.f32 %v1129_v25, %v360_v32  ;;  %v571_v37 = vadd.f32 %v1129_v25, %v424_v33 }
 0x112   :  { %v865_v38 = vpack.c.bf16 %v557_v30, %v556_v28  ;;  %v905_v39 = vpack.c.bf16 %v573_v31, %v572_v29 }
 0x113   :  { %v860_v40 = vpack.c.bf16 %v555_v36, %v554_v34  ;;  %v900_v41 = vpack.c.bf16 %v571_v37, %v570_v35 }
 0x114   :  { %913 = vst [vmem:[%s1214_s3 + $0x38] sm:$0xff] %v865_v38   ;;  %921 = vst [vmem:[%s1214_s3 + $0x78] sm:$0xff] %v905_v39  }
 0x115   :  { %912 = vst [vmem:[%s1214_s3 + $0x30] sm:$0xff] %v860_v40   ;;  %920 = vst [vmem:[%s1214_s3 + $0x70] sm:$0xff] %v900_v41  }

// kernel: forward.14
= control target key start
LH: loop header
LB: loop body
LE: loop exit
PB: predicated region body
PF: predicated region fallthrough
CT: control target
= control target key end

     0   :  { %v881_v0 = vmov 0.0   ;;  %vm882_vm0 = vmmov 0   ;;  %s1077_s1 = inlined_call_operand.vmem [shape: bf16[128,128], index: 1, kind: input, shape index: {}]   ;;  %s1078_s0 = inlined_call_operand.vmem [shape: bf16[200,128], index: 0, kind: input, shape index: {}]   ;;  %s1079_s2 = inlined_call_operand.vmem [shape: f32[1,128], index: 2, kind: input, shape index: {}]   ;;  %s1080_s3 = inlined_call_operand.vmem [shape: bf16[200,128], index: 3, kind: output, shape index: {}]  }
   0x1   :  { %774 = vmatprep.subr.bf16.mxu0 %v881_v0  ;;  %v860_v1 = vld [vmem:[%s1077_s1] sm:$0xff]   ;;  %842 = vmatprep.subr.bf16.mxu1 %v881_v0  ;;  %v861_v2 = vld [vmem:[%s1077_s1 + $0x8] sm:$0xff]   ;;  %v862_v3 = vld [vmem:[%s1077_s1 + $0x10] sm:$0xff]  }
   0x2   :  { %790 = vmatprep.mubr.msk.bf16.mxu0 %vm882_vm0, %v881_v0  ;;  %818 = vmatprep.mubr.msk.bf16.mxu1 %vm882_vm0, %v881_v0  ;;  %v863_v4 = vld [vmem:[%s1077_s1 + $0x18] sm:$0xff]   ;;  %v864_v5 = vld [vmem:[%s1077_s1 + $0x20] sm:$0xff]   ;;  %v865_v6 = vld [vmem:[%s1077_s1 + $0x28] sm:$0xff]  }
   0x3   :  { %775 = vmatpush3.bf16.msra.mxu0 %v860_v1  ;;  %850 = vmatpush3.bf16.msra.mxu1 %v860_v1  ;;  %v866_v7 = vld [vmem:[%s1077_s1 + $0x30] sm:$0xff]   ;;  %v867_v8 = vld [vmem:[%s1077_s1 + $0x38] sm:$0xff]   ;;  %v868_v9 = vld [vmem:[%s1078_s0] sm:$0xff]  }
   0x4   :  { %776 = vmatprep.subr.bf16.mxu0 %v881_v0  ;;  %843 = vmatprep.subr.bf16.mxu1 %v881_v0  ;;  %v869_v10 = vld [vmem:[%s1078_s0 + $0x38] sm:$0xff]   ;;  %v870_v11 = vld [vmem:[%s1078_s0 + $0x8] sm:$0xff]   ;;  %v871_v12 = vld [vmem:[%s1078_s0 + $0x40] sm:$0xff]  }
   0x5   :  { %v872_v13 = vld [vmem:[%s1078_s0 + $0x10] sm:$0xff]   ;;  %v873_v14 = vld [vmem:[%s1078_s0 + $0x48] sm:$0xff]   ;;  %v874_v15 = vld [vmem:[%s1078_s0 + $0x18] sm:$0xff]  }
   0x6   :  { %v875_v16 = vld [vmem:[%s1078_s0 + $0x50] sm:$0xff]   ;;  %v876_v17 = vld [vmem:[%s1078_s0 + $0x20] sm:$0xff]   ;;  %v877_v18 = vld [vmem:[%s1078_s0 + $0x58] sm:$0xff]  }
   0x7   :  { %777 = vmatpush3.bf16.msra.mxu0 %v861_v2  ;;  %851 = vmatpush3.bf16.msra.mxu1 %v861_v2  ;;  %v878_v19 = vld [vmem:[%s1078_s0 + $0x28] sm:$0xff]   ;;  %v879_v20 = vld [vmem:[%s1078_s0 + $0x60] ss:$0 sps:$4 sm:$0xff]   ;;  %v880_v21 = vld [vmem:[%s1078_s0 + $0x30] sm:$0xff]  }
   0x8   :  { %778 = vmatprep.subr.bf16.mxu0 %v881_v0  ;;  %844 = vmatprep.subr.bf16.mxu1 %v881_v0  ;;  %v1011_v23 = vld [vmem:[%s1079_s2] ss:$0 sm:$0xff] }
   0xb   :  { %779 = vmatpush3.bf16.msra.mxu0 %v862_v3  ;;  %852 = vmatpush3.bf16.msra.mxu1 %v862_v3 }
   0xc   :  { %780 = vmatprep.subr.bf16.mxu0 %v881_v0  ;;  %845 = vmatprep.subr.bf16.mxu1 %v881_v0 }
   0xf   :  { %781 = vmatpush3.bf16.msra.mxu0 %v863_v4  ;;  %853 = vmatpush3.bf16.msra.mxu1 %v863_v4 }
  0x10   :  { %782 = vmatprep.subr.bf16.mxu0 %v881_v0  ;;  %846 = vmatprep.subr.bf16.mxu1 %v881_v0 }
  0x13   :  { %783 = vmatpush3.bf16.msra.mxu0 %v864_v5  ;;  %854 = vmatpush3.bf16.msra.mxu1 %v864_v5 }
  0x14   :  { %784 = vmatprep.subr.bf16.mxu0 %v881_v0  ;;  %847 = vmatprep.subr.bf16.mxu1 %v881_v0 }
  0x17   :  { %785 = vmatpush3.bf16.msra.mxu0 %v865_v6  ;;  %855 = vmatpush3.bf16.msra.mxu1 %v865_v6 }
  0x18   :  { %786 = vmatprep.subr.bf16.mxu0 %v881_v0  ;;  %848 = vmatprep.subr.bf16.mxu1 %v881_v0 }
  0x1b   :  { %787 = vmatpush3.bf16.msra.mxu0 %v866_v7  ;;  %856 = vmatpush3.bf16.msra.mxu1 %v866_v7 }
  0x1c   :  { %788 = vmatprep.subr.bf16.mxu0 %v881_v0  ;;  %849 = vmatprep.subr.bf16.mxu1 %v881_v0 }
  0x1f   :  { %789 = vmatpush3.bf16.msra.mxu0 %v867_v8  ;;  %857 = vmatpush3.bf16.msra.mxu1 %v867_v8 }
  0x22   :  { %791 = vmatmul.mubr.bf16.vlgmr.msra.gmra.mrb[0].mxu0 %v868_v9  ;;  %819 = vmatmul.mubr.bf16.vlgmr.msra.gmra.mrb[0].mxu1 %v869_v10 }
  0x23   :  { %794 = vmatprep.mubr.msk.bf16.mxu0 %vm882_vm0, %v881_v0  ;;  %822 = vmatprep.mubr.msk.bf16.mxu1 %vm882_vm0, %v881_v0 }
  0x2a   :  { %795 = vmatmul.mubr.bf16.gmra.mrb[4].mxu0 %v870_v11  ;;  %823 = vmatmul.mubr.bf16.gmra.mrb[4].mxu1 %v871_v12 }
  0x2b   :  { %798 = vmatprep.mubr.msk.bf16.mxu0 %vm882_vm0, %v881_v0  ;;  %826 = vmatprep.mubr.msk.bf16.mxu1 %vm882_vm0, %v881_v0 }
  0x32   :  { %799 = vmatmul.mubr.bf16.gmra.mrb[8].mxu0 %v872_v13  ;;  %827 = vmatmul.mubr.bf16.gmra.mrb[8].mxu1 %v873_v14 }
  0x33   :  { %802 = vmatprep.mubr.msk.bf16.mxu0 %vm882_vm0, %v881_v0  ;;  %830 = vmatprep.mubr.msk.bf16.mxu1 %vm882_vm0, %v881_v0 }
  0x3a   :  { %803 = vmatmul.mubr.bf16.gmra.mrb[12].mxu0 %v874_v15  ;;  %831 = vmatmul.mubr.bf16.gmra.mrb[12].mxu1 %v875_v16 }
  0x3b   :  { %806 = vmatprep.mubr.msk.bf16.mxu0 %vm882_vm0, %v881_v0  ;;  %834 = vmatprep.mubr.msk.bf16.mxu1 %vm882_vm0, %v881_v0 }
  0x42   :  { %807 = vmatmul.mubr.bf16.gmra.mrb[16].mxu0 %v876_v17  ;;  %835 = vmatmul.mubr.bf16.gmra.mrb[16].mxu1 %v877_v18 }
  0x43   :  { %810 = vmatprep.mubr.msk.bf16.mxu0 %vm882_vm0, %v881_v0  ;;  %838 = vmatprep.mubr.msk.bf16.mxu1 %vm882_vm0, %v881_v0 }
  0x4a   :  { %811 = vmatmul.mubr.bf16.gmra.mrb[20].mxu0 %v878_v19  ;;  %839 = vmatmul.mubr.bf16.gmra.mrb[20].mxu1 %v879_v20 }
  0x4b   :  { %814 = vmatprep.mubr.msk.bf16.mxu0 %vm882_vm0, %v881_v0 }
  0x52   :  { %815 = vmatmul.mubr.bf16.gmra.mrb[24].mxu0 %v880_v21 }
  0xf5   :  { %v268_v22 = vpop.f32.mrb[0].mxu0  ;;  %v324_v24 = vpop.f32.mrb[0].mxu1 }
  0xf6   :  { %v792_v25 = vpop.f32.mrb[1].mxu0  ;;  %v469_v26 = vadd.f32 %v1011_v23, %v324_v24  ;;  %v820_v27 = vpop.f32.mrb[1].mxu1  ;;  %v455_v30 = vadd.f32 %v1011_v23, %v268_v22 }
  0xf7   :  { %v271_v28 = vpop.f32.mrb[2].mxu0  ;;  %v327_v29 = vpop.f32.mrb[2].mxu1 }
  0xf8   :  { %v456_v31 = vadd.f32 %v1011_v23, %v271_v28  ;;  %v793_v32 = vpop.f32.mrb[3].mxu0  ;;  %v470_v33 = vadd.f32 %v1011_v23, %v327_v29  ;;  %v821_v34 = vpop.f32.mrb[3].mxu1 }
  0xfa   :  { %v685_v35 = vpack.c.bf16 %v456_v31, %v455_v30  ;;  %v720_v36 = vpack.c.bf16 %v470_v33, %v469_v26 }
  0xfc   :  { %686 = vst [vmem:[%s1080_s3] sm:$0xff] %v685_v35   ;;  %748 = vst [vmem:[%s1080_s3 + $0x38] sm:$0xff] %v720_v36  }
  0xfd   :  { %v276_v37 = vpop.f32.mrb[4].mxu0  ;;  %v332_v38 = vpop.f32.mrb[4].mxu1 }
  0xfe   :  { %v796_v39 = vpop.f32.mrb[5].mxu0  ;;  %v471_v40 = vadd.f32 %v1011_v23, %v332_v38  ;;  %v824_v41 = vpop.f32.mrb[5].mxu1  ;;  %v457_v44 = vadd.f32 %v1011_v23, %v276_v37 }
  0xff   :  { %v279_v42 = vpop.f32.mrb[6].mxu0  ;;  %v335_v43 = vpop.f32.mrb[6].mxu1 }
 0x100   :  { %v458_v45 = vadd.f32 %v1011_v23, %v279_v42  ;;  %v797_v46 = vpop.f32.mrb[7].mxu0  ;;  %v472_v47 = vadd.f32 %v1011_v23, %v335_v43  ;;  %v825_v48 = vpop.f32.mrb[7].mxu1 }
 0x102   :  { %v690_v49 = vpack.c.bf16 %v458_v45, %v457_v44  ;;  %v725_v50 = vpack.c.bf16 %v472_v47, %v471_v40 }
 0x104   :  { %742 = vst [vmem:[%s1080_s3 + $0x8] sm:$0xff] %v690_v49   ;;  %749 = vst [vmem:[%s1080_s3 + $0x40] sm:$0xff] %v725_v50  }
 0x105   :  { %v284_v51 = vpop.f32.mrb[8].mxu0  ;;  %v340_v52 = vpop.f32.mrb[8].mxu1 }
 0x106   :  { %v800_v53 = vpop.f32.mrb[9].mxu0  ;;  %v473_v54 = vadd.f32 %v1011_v23, %v340_v52  ;;  %v828_v55 = vpop.f32.mrb[9].mxu1  ;;  %v459_v58 = vadd.f32 %v1011_v23, %v284_v51 }
 0x107   :  { %v287_v56 = vpop.f32.mrb[10].mxu0  ;;  %v343_v57 = vpop.f32.mrb[10].mxu1 }
 0x108   :  { %v460_v59 = vadd.f32 %v1011_v23, %v287_v56  ;;  %v801_v60 = vpop.f32.mrb[11].mxu0  ;;  %v474_v61 = vadd.f32 %v1011_v23, %v343_v57  ;;  %v829_v62 = vpop.f32.mrb[11].mxu1 }
 0x10a   :  { %v695_v63 = vpack.c.bf16 %v460_v59, %v459_v58  ;;  %v730_v0 = vpack.c.bf16 %v474_v61, %v473_v54 }
 0x10c   :  { %743 = vst [vmem:[%s1080_s3 + $0x10] sm:$0xff] %v695_v63   ;;  %750 = vst [vmem:[%s1080_s3 + $0x48] sm:$0xff] %v730_v0  }
 0x10d   :  { %v292_v1 = vpop.f32.mrb[12].mxu0  ;;  %v348_v2 = vpop.f32.mrb[12].mxu1 }
 0x10e   :  { %v804_v3 = vpop.f32.mrb[13].mxu0  ;;  %v475_v4 = vadd.f32 %v1011_v23, %v348_v2  ;;  %v832_v5 = vpop.f32.mrb[13].mxu1  ;;  %v461_v8 = vadd.f32 %v1011_v23, %v292_v1 }
 0x10f   :  { %v295_v6 = vpop.f32.mrb[14].mxu0  ;;  %v351_v7 = vpop.f32.mrb[14].mxu1 }
 0x110   :  { %v462_v9 = vadd.f32 %v1011_v23, %v295_v6  ;;  %v805_v10 = vpop.f32.mrb[15].mxu0  ;;  %v476_v11 = vadd.f32 %v1011_v23, %v351_v7  ;;  %v833_v12 = vpop.f32.mrb[15].mxu1 }
 0x112   :  { %v700_v13 = vpack.c.bf16 %v462_v9, %v461_v8  ;;  %v735_v14 = vpack.c.bf16 %v476_v11, %v475_v4 }
 0x114   :  { %744 = vst [vmem:[%s1080_s3 + $0x18] sm:$0xff] %v700_v13   ;;  %751 = vst [vmem:[%s1080_s3 + $0x50] sm:$0xff] %v735_v14  }
 0x115   :  { %v300_v15 = vpop.f32.mrb[16].mxu0  ;;  %v356_v16 = vpop.f32.mrb[16].mxu1 }
 0x116   :  { %v808_v17 = vpop.f32.mrb[17].mxu0  ;;  %v477_v18 = vadd.f32 %v1011_v23, %v356_v16  ;;  %v836_v19 = vpop.f32.mrb[17].mxu1  ;;  %v463_v22 = vadd.f32 %v1011_v23, %v300_v15 }
 0x117   :  { %v303_v20 = vpop.f32.mrb[18].mxu0  ;;  %v359_v21 = vpop.f32.mrb[18].mxu1 }
 0x118   :  { %v464_v24 = vadd.f32 %v1011_v23, %v303_v20  ;;  %v809_v25 = vpop.f32.mrb[19].mxu0  ;;  %v478_v26 = vadd.f32 %v1011_v23, %v359_v21  ;;  %v837_v27 = vpop.f32.mrb[19].mxu1 }
 0x11a   :  { %v705_v28 = vpack.c.bf16 %v464_v24, %v463_v22  ;;  %v740_v29 = vpack.c.bf16 %v478_v26, %v477_v18 }
 0x11c   :  { %745 = vst [vmem:[%s1080_s3 + $0x20] sm:$0xff] %v705_v28   ;;  %752 = vst [vmem:[%s1080_s3 + $0x58] sm:$0xff] %v740_v29  }
 0x11d   :  { %v308_v30 = vpop.f32.mrb[20].mxu0  ;;  %v364_v31 = vpop.f32.mrb[20].mxu1 }
 0x11e   :  { %v812_v32 = vpop.f32.mrb[21].mxu0  ;;  %v479_v33 = vadd.f32 %v1011_v23, %v364_v31  ;;  %v840_v34 = vpop.f32.mrb[21].mxu1  ;;  %v465_v37 = vadd.f32 %v1011_v23, %v308_v30 }
 0x11f   :  { %v311_v35 = vpop.f32.mrb[22].mxu0  ;;  %v367_v36 = vpop.f32.mrb[22].mxu1 }
 0x120   :  { %v466_v38 = vadd.f32 %v1011_v23, %v311_v35  ;;  %v813_v39 = vpop.f32.mrb[23].mxu0  ;;  %v681_v40 = vpack.c.bf16 %v479_v33, %v479_v33  ;;  %v841_v41 = vpop.f32.mrb[23].mxu1 }
 0x122   :  { %v710_v42 = vpack.c.bf16 %v466_v38, %v465_v37  ;;  %605 = vst [vmem:[%s1080_s3 + $0x60] sm:$0xf] %v681_v40 }
 0x124   :  { %746 = vst [vmem:[%s1080_s3 + $0x28] sm:$0xff] %v710_v42  }
 0x125   :  { %v316_v43 = vpop.f32.mrb[24].mxu0 }
 0x126   :  { %v816_v44 = vpop.f32.mrb[25].mxu0  ;;  %v467_v46 = vadd.f32 %v1011_v23, %v316_v43 }
 0x127   :  { %v319_v45 = vpop.f32.mrb[26].mxu0 }
 0x128   :  { %v468_v47 = vadd.f32 %v1011_v23, %v319_v45  ;;  %v817_v48 = vpop.f32.mrb[27].mxu0 }
 0x12a   :  { %v715_v49 = vpack.c.bf16 %v468_v47, %v467_v46 }
 0x12c   :  { %747 = vst [vmem:[%s1080_s3 + $0x30] sm:$0xff] %v715_v49  }

// kernel: forward.15
= control target key start
LH: loop header
LB: loop body
LE: loop exit
PB: predicated region body
PF: predicated region fallthrough
CT: control target
= control target key end

     0   :  { %s463_s9 = smov 0   ;;  %s465_s10 = smov 0   ;;  %s503_s0 = inlined_call_operand.vmem [shape: bf16[2,100], index: 0, kind: input, shape index: {}]   ;;  %s504_s1 = inlined_call_operand.vmem [shape: bf16[2,100,128], index: 1, kind: input, shape index: {}]   ;;  %s505_s2 = inlined_call_operand.vmem [shape: bf16[2,2,128], index: 2, kind: output, shape index: {}]  }
   0x1   :  { %s467_s11 = smov 0  }
   0x2 LB: > { %s24_s12 = sadd.s32 1, %s440_s10  ;;  %p350_p0 = scmp.ge.s32.totalorder %s444_s11, 1  ;;  %s444_s11 = sphi %s467_s11, %s12_s11   ;;  %s440_s10 = sphi %s465_s10, %s507_s10   ;;  %s436_s9 = sphi %s463_s9, %s506_s9  }
   0x3   : > { %p26_p1 = scmp.ge.s32.totalorder %s24_s12, 2  ;;  %p131_p2 = scmp.lt.s32.totalorder %s444_s11, 3 }
   0x5   : > { %s509_s12 = smov (%p26_p1, %s24_s12), 0  ;;  %p132_p3 = pnand %p350_p0, %p131_p2 }
   0x6   : > { %p157_p4 = scmp.lt.s32.totalorder (!%p132_p3), %s436_s9, 1  ;;  %v446_v0 = vmov (!%p132_p3), 0.0   ;;  %vm447_vm0 = vmmov (!%p132_p3), 0   ;;  %vm229_vm1 = vcmask (!%p132_p3), 1041408   ;;  %v172_v9 = vld [vmem:[%s503_s0] sm:$0x1] (!%p132_p3) }
   0x7   : > { %135 = sbr.rel (%p132_p3) target bundleno = 261 (0x105), region = 28  ;;  %370 = vmatprep.subr.bf16.mxu0 (!%p132_p3), %v446_v0  ;;  %384 = vmatprep.mubr.msk.bf16.mxu0 (!%p132_p3), %vm447_vm0, %v446_v0  ;;  %vm225_vm2 = vcmask (!%p132_p3), 818176  }
   0xe   : > { %s511_s9 = smov (!%p157_p4, %s436_s9), 1 }
   0xf   : > { %s388_s13 = smul.u32 52, %s511_s9  ;;  %s170_s21 = scalar_lea.vmem %s505_s2, %s511_s9 }
  0x11   : > { %s164_s16 = scalar_lea.vmem %s504_s1, %s388_s13 }
  0x12   : > { %v415_v1 = vld [vmem:[%s164_s16] sm:$0xff]   ;;  %v416_v2 = vld [vmem:[%s164_s16 + $0x8] sm:$0xff]   ;;  %v417_v3 = vld [vmem:[%s164_s16 + $0x10] sm:$0xff]  }
  0x13   : > { %371 = vmatpush3.bf16.msra.mxu0 %v415_v1  ;;  %v418_v4 = vld [vmem:[%s164_s16 + $0x18] sm:$0xff]   ;;  %v419_v5 = vld [vmem:[%s164_s16 + $0x20] sm:$0xff]   ;;  %v420_v6 = vld [vmem:[%s164_s16 + $0x28] sm:$0xff]  }
  0x14   : > { %372 = vmatprep.subr.bf16.mxu0 %v446_v0  ;;  %v421_v7 = vld [vmem:[%s164_s16 + $0x30] ss:$0 sps:$4 sm:$0x33]  }
  0x15   : > { %v231_v8 = vsel %vm229_vm1, %v421_v7, 0 }
  0x17   : > { %373 = vmatpush3.bf16.msra.mxu0 %v416_v2 }
  0x18   : > { %374 = vmatprep.subr.bf16.mxu0 %v446_v0 }
  0x1b   : > { %375 = vmatpush3.bf16.msra.mxu0 %v417_v3 }
  0x1c   : > { %376 = vmatprep.subr.bf16.mxu0 %v446_v0 }
  0x1f   : > { %377 = vmatpush3.bf16.msra.mxu0 %v418_v4 }
  0x20   : > { %378 = vmatprep.subr.bf16.mxu0 %v446_v0 }
  0x23   : > { %379 = vmatpush3.bf16.msra.mxu0 %v419_v5 }
  0x24   : > { %380 = vmatprep.subr.bf16.mxu0 %v446_v0 }
  0x27   : > { %381 = vmatpush3.bf16.msra.mxu0 %v420_v6 }
  0x28   : > { %382 = vmatprep.subr.bf16.mxu0 %v446_v0 }
  0x2b   : > { %383 = vmatpush3.bf16.msra.mxu0 %v231_v8 }
  0x2e   : > { %385 = vmatmul.mubr.msk.bf16.vlgmr.msra.gmra.mrb[0].mxu0 %vm225_vm2, %v172_v9 }
 0x101   : > { %v267_v10 = vpop.f32.mrb[0].mxu0 }
 0x102   : > { %v273_v11 = vpack.c.bf16 %v267_v10, %v267_v10  ;;  %v386_v12 = vpop.f32.mrb[1].mxu0 }
 0x103   : > { %v270_v13 = vpop.f32.mrb[2].mxu0 }
 0x104   : > { %274 = vst [vmem:[%s170_s21] sm:$0x1] %v273_v11  ;;  %v387_v14 = vpop.f32.mrb[3].mxu0 }
 0x105 PF: > { %s12_s11 = sadd.s32 1, %s444_s11   ;;  %s506_s9 = smov %s440_s10 }
 0x106   : > { %p9_p5 = scmp.ge.s32.totalorder %s12_s11, 4   ;;  %s507_s10 = smov %s509_s12 }
 0x108   :  { %11 = sbr.rel (!%p9_p5) target bundleno = 2 (0x2), region = 58 }

// kernel: forward.11
= control target key start
LH: loop header
LB: loop body
LE: loop exit
PB: predicated region body
PF: predicated region fallthrough
CT: control target
= control target key end

     0   :  { %s5794_s15 = smov 0   ;;  %s5796_s16 = smov 0   ;;  %s7099_s0 = inlined_call_operand.vmem [shape: f32[2,75,128], index: 0, kind: input, shape index: {}]   ;;  %s7100_s1 = inlined_call_operand.vmem [shape: bf16[144,75], index: 1, kind: input, shape index: {}]   ;;  %s7101_s2 = inlined_call_operand.vmem [shape: f32[144,1], index: 2, kind: input, shape index: {}]   ;;  %s7102_s3 = inlined_call_operand.vmem [shape: bf16[2400,144], index: 3, kind: input, shape index: {}]   ;;  %s7103_s4 = inlined_call_operand.vmem [shape: f32[2,32,128], index: 4, kind: output, shape index: {}]  }
   0x1   :  { %s5798_s17 = smov 0  }
   0x2 LB: > { %s26_s18 = sadd.s32 1, %s5703_s16  ;;  %p4451_p0 = scmp.ge.s32.totalorder %s5707_s17, 1  ;;  %s5707_s17 = sphi %s5798_s17, %s14_s17   ;;  %s5703_s16 = sphi %s5796_s16, %s7114_s16   ;;  %s5699_s15 = sphi %s5794_s15, %s7113_s15  }
   0x3   : > { %p28_p1 = scmp.ge.s32.totalorder %s26_s18, 2  ;;  %p181_p2 = scmp.lt.s32.totalorder %s5707_s17, 3 }
   0x5   : > { %s7116_s18 = smov (%p28_p1, %s26_s18), 0  ;;  %p182_p3 = pnand %p4451_p0, %p181_p2 }
   0x6   : > { %p213_p4 = scmp.lt.s32.totalorder (!%p182_p3), %s5699_s15, 1  ;;  %v5765_v0 = vmov (!%p182_p3), 0.0   ;;  %vm5766_vm0 = vmmov (!%p182_p3), 0   ;;  %v5767_v4 = vmov (!%p182_p3), 0   ;;  %vm444_vm1 = vcmask (!%p182_p3), 1044480   ;;  %v263_v10 = vld [vmem:[%s7101_s2] sm:$0xff] (!%p182_p3) }
   0x7   : > { %185 = sbr.rel (%p182_p3) target bundleno = 1219 (0x4c3), region = 36  ;;  %4943 = vmatprep.subr.bf16.mxu0 (!%p182_p3), %v5765_v0  ;;  %4953 = vmatprep.mubr.msk.bf16.mxu0 (!%p182_p3), %vm5766_vm0, %v5765_v0  ;;  %v265_v14 = vld [vmem:[%s7101_s2 + $0x10] sm:$0xff] (!%p182_p3)  ;;  %v264_v17 = vld [vmem:[%s7101_s2 + $0x8] sm:$0xff] (!%p182_p3)  ;;  %vm445_vm2 = vcmask (!%p182_p3), 1045504   ;;  %v5768_v18 = vmov (!%p182_p3), 65535   ;;  %v266_v20 = vld [vmem:[%s7101_s2 + $0x18] sm:$0xff] (!%p182_p3) }
   0x8   : > { %5148 = vset.pattern.permute.xlu0 (!%p182_p3), %v5767_v4  ;;  %5149 = vset.pattern.permute.xlu1 (!%p182_p3), %v5767_v4  ;;  %v446_v19 = vsel (!%p182_p3), %vm444_vm1, 4294967295, %v5768_v18  ;;  %v267_v24 = vld [vmem:[%s7101_s2 + $0x20] sm:$0xff] (!%p182_p3)  ;;  %v268_v25 = vld [vmem:[%s7101_s2 + $0x28] sm:$0xff] (!%p182_p3)  ;;  %v269_v26 = vld [vmem:[%s7101_s2 + $0x30] sm:$0xff] (!%p182_p3)  ;;  %vm416_vm3 = vcmask (!%p182_p3), 613376   ;;  %vm2239_vm4 = vcmask (!%p182_p3), 130048  }
   0x9   : > { %4989 = vmatprep.subr.bf16.mxu1 (!%p182_p3), %v5767_v4  ;;  %283 = vperm.xlu0 (!%p182_p3), %5148, %v263_v10   ;;  %v447_v23 = vsel (!%p182_p3), %vm445_vm2, %v446_v19, 0  ;;  %v270_v28 = vld [vmem:[%s7101_s2 + $0x38] sm:$0xff] (!%p182_p3)  ;;  %v5150_v29 = vld [vmem:[%s7100_s1] sm:$0xff] (!%p182_p3)   ;;  %v272_v31 = vld [vmem:[%s7101_s2 + $0x48] sm:$0xff] (!%p182_p3)  ;;  %s5725_s30 = smov (!%p182_p3), 1  }
   0xa   : > { %293 = vperm.xlu1 (!%p182_p3), %5149, %v265_v14   ;;  %v271_v30 = vld [vmem:[%s7101_s2 + $0x40] sm:$0xff] (!%p182_p3)  ;;  %v273_v32 = vld [vmem:[%s7101_s2 + $0x50] sm:$0xff] (!%p182_p3)  ;;  %v274_v33 = vld [vmem:[%s7101_s2 + $0x58] sm:$0xff] (!%p182_p3) }
   0xb   : > { %v5151_v34 = vld [vmem:[%s7100_s1 + $0x8] sm:$0xff] (!%p182_p3)   ;;  %v275_v35 = vld [vmem:[%s7101_s2 + $0x60] sm:$0xff] (!%p182_p3)  ;;  %v277_v37 = vld [vmem:[%s7101_s2 + $0x70] sm:$0xff] (!%p182_p3) }
   0xc   : > { %v276_v36 = vld [vmem:[%s7101_s2 + $0x68] sm:$0xff] (!%p182_p3)  ;;  %v278_v38 = vld [vmem:[%s7101_s2 + $0x78] sm:$0xff] (!%p182_p3)  ;;  %v5152_v39 = vld [vmem:[%s7100_s1 + $0x10] sm:$0xff] (!%p182_p3)  }
   0xd   : > { %288 = vperm.xlu0 (!%p182_p3), %5148, %v264_v17   ;;  %v279_v40 = vld [vmem:[%s7101_s2 + $0x80] sm:$0xff] (!%p182_p3)  ;;  %v280_v41 = vld [vmem:[%s7101_s2 + $0x88] sm:$0xff] (!%p182_p3)  ;;  %v5153_v42 = vld [vmem:[%s7100_s1 + $0x18] sm:$0xff] (!%p182_p3)  }
   0xe   : > { %s7118_s15 = smov (!%p213_p4, %s5699_s15), 1  ;;  %298 = vperm.xlu1 %5149, %v266_v20   ;;  %v5154_v43 = vld [vmem:[%s7100_s1 + $0x20] sm:$0xff]   ;;  %v5155_v44 = vld [vmem:[%s7100_s1 + $0x28] sm:$0xff]   ;;  %v5156_v45 = vld [vmem:[%s7100_s1 + $0x30] sm:$0xff]  }
   0xf   : > { %s5007_s19 = smul.u32 80, %s7118_s15  ;;  %s4928_s20 = sshll.u32 %s7118_s15, 5  ;;  %v5157_v46 = vld [vmem:[%s7100_s1 + $0x38] sm:$0xff]   ;;  %v5158_v47 = vld [vmem:[%s7100_s1 + $0x40] sm:$0xff]  }
  0x10   : > { %s5818_s23 = scalar_lea.vmem %s7103_s4, %s4928_s20  ;;  %v5161_v48 = vld [vmem:[%s7102_s3 + $0x474] ss:$8 sps:$4 sm:$0xff]   ;;  %v5185_v58 = vld [vmem:[%s7102_s3 + $0x4] ss:$8 sps:$4 sm:$0xff]  }
  0x11   : > { %s5823_s26 = scalar_lea.vmem %s7099_s0, %s5007_s19  ;;  %303 = vperm.xlu0 %5148, %v267_v24   ;;  %4845 = vmatprep.mubr.msk.bf16.mxu1 %vm2239_vm4, %v5161_v48 }
  0x12   : > { %v230_v1 = vld [vmem:[%s5823_s26] sm:$0xff]  ;;  %v231_v2 = vld [vmem:[%s5823_s26 + $0x8] sm:$0xff]  ;;  %v232_v3 = vld [vmem:[%s5823_s26 + $0x10] sm:$0xff]  ;;  %308 = vperm.xlu1 %5149, %v268_v25  }
  0x13   : > { %v240_v5 = vpack.c.bf16 %v231_v2, %v230_v1  ;;  %v233_v6 = vld [vmem:[%s5823_s26 + $0x18] sm:$0xff]  ;;  %v234_v8 = vld [vmem:[%s5823_s26 + $0x20] sm:$0xff]  ;;  %v235_v9 = vld [vmem:[%s5823_s26 + $0x28] sm:$0xff] }
  0x14   : > { %v241_v7 = vpack.c.bf16 %v233_v6, %v232_v3  ;;  %v242_v11 = vpack.c.bf16 %v235_v9, %v234_v8  ;;  %v236_v12 = vld [vmem:[%s5823_s26 + $0x30] sm:$0xff]  ;;  %v237_v13 = vld [vmem:[%s5823_s26 + $0x38] sm:$0xff]  ;;  %v238_v15 = vld [vmem:[%s5823_s26 + $0x40] sm:$0xff] }
  0x15   : > { %4944 = vmatpush3.bf16.msra.mxu0 %v240_v5  ;;  %v239_v16 = vld [vmem:[%s5823_s26 + $0x48] sm:$0x7]  ;;  %v243_v21 = vpack.c.bf16 %v237_v13, %v236_v12  ;;  %313 = vperm.xlu0 %5148, %v269_v26  }
  0x16   : > { %4945 = vmatprep.subr.bf16.mxu0 %v5765_v0  ;;  %v244_v22 = vpack.c.bf16 %v239_v16, %v238_v15  ;;  %318 = vperm.xlu1 %5149, %v270_v28  }
  0x18   : > { %v449_v27 = vand.u32 %v447_v23, %v244_v22 }
  0x19   : > { %4946 = vmatpush3.bf16.msra.mxu0 %v241_v7  ;;  %323 = vperm.xlu0 %5148, %v271_v30  }
  0x1a   : > { %4947 = vmatprep.subr.bf16.mxu0 %v5765_v0  ;;  %328 = vperm.xlu1 %5149, %v272_v31  }
  0x1d   : > { %4948 = vmatpush3.bf16.msra.mxu0 %v242_v11  ;;  %333 = vperm.xlu0 %5148, %v273_v32  }
  0x1e   : > { %4949 = vmatprep.subr.bf16.mxu0 %v5765_v0  ;;  %338 = vperm.xlu1 %5149, %v274_v33  }
  0x21   : > { %4950 = vmatpush3.bf16.msra.mxu0 %v243_v21  ;;  %343 = vperm.xlu0 %5148, %v275_v35  }
  0x22   : > { %4951 = vmatprep.subr.bf16.mxu0 %v5765_v0  ;;  %348 = vperm.xlu1 %5149, %v276_v36  }
  0x25   : > { %4952 = vmatpush3.bf16.msra.mxu0 %v449_v27  ;;  %353 = vperm.xlu0 %5148, %v277_v37  }
  0x26   : > { %2690 = vmatprep.subr.bf16.mxu0 %v5767_v4  ;;  %358 = vperm.xlu1 %5149, %v278_v38  }
  0x28   : > { %4954 = vmatmul.mubr.msk.bf16.vlgmr.msra.gmra.mrb[0].mxu0 %vm416_vm3, %v5150_v29 }
  0x29   : > { %4957 = vmatprep.mubr.msk.bf16.mxu0 %vm5766_vm0, %v5765_v0  ;;  %363 = vperm.xlu0 %5148, %v279_v40  }
  0x2a   : > { %368 = vperm.xlu1 %5149, %v280_v41  }
  0x30   : > { %4958 = vmatmul.mubr.msk.bf16.gmra.mrb[4].mxu0 %vm416_vm3, %v5151_v34 }
  0x31   : > { %4961 = vmatprep.mubr.msk.bf16.mxu0 %vm5766_vm0, %v5765_v0 }
  0x38   : > { %4962 = vmatmul.mubr.msk.bf16.gmra.mrb[8].mxu0 %vm416_vm3, %v5152_v39 }
  0x39   : > { %4965 = vmatprep.mubr.msk.bf16.mxu0 %vm5766_vm0, %v5765_v0 }
  0x40   : > { %4966 = vmatmul.mubr.msk.bf16.gmra.mrb[12].mxu0 %vm416_vm3, %v5153_v42 }
  0x41   : > { %4969 = vmatprep.mubr.msk.bf16.mxu0 %vm5766_vm0, %v5765_v0 }
  0x48   : > { %4970 = vmatmul.mubr.msk.bf16.gmra.mrb[16].mxu0 %vm416_vm3, %v5154_v43 }
  0x49   : > { %4973 = vmatprep.mubr.msk.bf16.mxu0 %vm5766_vm0, %v5765_v0 }
  0x50   : > { %4974 = vmatmul.mubr.msk.bf16.gmra.mrb[20].mxu0 %vm416_vm3, %v5155_v44 }
  0x51   : > { %4977 = vmatprep.mubr.msk.bf16.mxu0 %vm5766_vm0, %v5765_v0 }
  0x58   : > { %4978 = vmatmul.mubr.msk.bf16.gmra.mrb[24].mxu0 %vm416_vm3, %v5156_v45 }
  0x59   : > { %4981 = vmatprep.mubr.msk.bf16.mxu0 %vm5766_vm0, %v5765_v0 }
  0x60   : > { %4982 = vmatmul.mubr.msk.bf16.gmra.mrb[28].mxu0 %vm416_vm3, %v5157_v46 }
  0x61   : > { %4985 = vmatprep.mubr.msk.bf16.mxu0 %vm5766_vm0, %v5765_v0 }
  0x68   : > { %4986 = vmatmul.mubr.msk.bf16.gmra.mrb[32].mxu0 %vm416_vm3, %v5158_v47 }
  0x69   : > { %4774 = vmatprep.mubr.msk.bf16.mxu0 %vm2239_vm4, %v5185_v58 }
  0x88   : > { %v284_v49 = vpop.permute.xlu0 %283 }
  0x89   : > { %v294_v57 = vpop.permute.xlu1 %293 }
  0x8c   : > { %v289_v51 = vpop.permute.xlu0 %288 }
  0x8d   : > { %v299_v1 = vpop.permute.xlu1 %298 }
  0x90   : > { %v304_v9 = vpop.permute.xlu0 %303 }
  0x91   : > { %v309_v13 = vpop.permute.xlu1 %308 }
  0x94   : > { %v314_v20 = vpop.permute.xlu0 %313 }
  0x95   : > { %v319_v24 = vpop.permute.xlu1 %318 }
  0x98   : > { %v324_v31 = vpop.permute.xlu0 %323 }
  0x99   : > { %v329_v35 = vpop.permute.xlu1 %328 }
  0x9c   : > { %v334_v42 = vpop.permute.xlu0 %333 }
  0x9d   : > { %v339_v46 = vpop.permute.xlu1 %338 }
  0xfb   : > { %v485_v50 = vpop.f32.mrb[0].mxu0 }
  0xfc   : > { %v486_v52 = vadd.f32 %v485_v50, %v284_v49  ;;  %v4955_v53 = vpop.f32.mrb[1].mxu0 }
  0xfd   : > { %v488_v54 = vpop.f32.mrb[2].mxu0  ;;  %v344_v53 = vpop.permute.xlu0 %343 }
  0xfe   : > { %v489_v55 = vadd.f32 %v488_v54, %v289_v51  ;;  %v4956_v56 = vpop.f32.mrb[3].mxu0  ;;  %v562_v59 = vmax.f32 %v486_v52, 0.0 }
 0x100   : > { %v563_v60 = vmax.f32 %v489_v55, 0.0 }
 0x102   : > { %v580_v61 = vpack.c.bf16 %v563_v60, %v562_v59 }
 0x103   : > { %v493_v62 = vpop.f32.mrb[4].mxu0 }
 0x104   : > { %v494_v63 = vadd.f32 %v493_v62, %v294_v57  ;;  %v4959_v0 = vpop.f32.mrb[5].mxu0  ;;  %2691 = vmatpush1.bf16.msra.mxu0 %v580_v61  ;;  %4998 = vmatpush1.bf16.msra.mxu1 %v580_v61  ;;  %v349_v57 = vpop.permute.xlu1 %348 }
 0x105   : > { %v496_v2 = vpop.f32.mrb[6].mxu0  ;;  %2692 = vmatprep.subr.bf16.mxu0 %v5767_v4  ;;  %4990 = vmatprep.subr.bf16.mxu1 %v5767_v4  ;;  %v354_v0 = vpop.permute.xlu0 %353 }
 0x106   : > { %v497_v3 = vadd.f32 %v496_v2, %v299_v1  ;;  %v4960_v5 = vpop.f32.mrb[7].mxu0  ;;  %v564_v6 = vmax.f32 %v494_v63, 0.0 }
 0x108   : > { %v565_v7 = vmax.f32 %v497_v3, 0.0  ;;  %v359_v5 = vpop.permute.xlu1 %358 }
 0x10a   : > { %v581_v8 = vpack.c.bf16 %v565_v7, %v564_v6 }
 0x10b   : > { %v501_v10 = vpop.f32.mrb[8].mxu0 }
 0x10c   : > { %v502_v11 = vadd.f32 %v501_v10, %v304_v9  ;;  %v4963_v12 = vpop.f32.mrb[9].mxu0  ;;  %2693 = vmatpush1.bf16.msra.mxu0 %v581_v8  ;;  %4999 = vmatpush1.bf16.msra.mxu1 %v581_v8 }
 0x10d   : > { %v504_v14 = vpop.f32.mrb[10].mxu0  ;;  %2694 = vmatprep.subr.bf16.mxu0 %v5767_v4  ;;  %4991 = vmatprep.subr.bf16.mxu1 %v5767_v4  ;;  %v364_v12 = vpop.permute.xlu0 %363 }
 0x10e   : > { %v505_v15 = vadd.f32 %v504_v14, %v309_v13  ;;  %v4964_v16 = vpop.f32.mrb[11].mxu0  ;;  %v566_v17 = vmax.f32 %v502_v11, 0.0 }
 0x10f   : > { %v369_v16 = vpop.permute.xlu1 %368 }
 0x110   : > { %v567_v18 = vmax.f32 %v505_v15, 0.0 }
 0x112   : > { %v582_v19 = vpack.c.bf16 %v567_v18, %v566_v17 }
 0x113   : > { %v509_v21 = vpop.f32.mrb[12].mxu0 }
 0x114   : > { %v510_v22 = vadd.f32 %v509_v21, %v314_v20  ;;  %v4967_v23 = vpop.f32.mrb[13].mxu0  ;;  %2695 = vmatpush1.bf16.msra.mxu0 %v582_v19  ;;  %5000 = vmatpush1.bf16.msra.mxu1 %v582_v19 }
 0x115   : > { %v512_v25 = vpop.f32.mrb[14].mxu0  ;;  %2696 = vmatprep.subr.bf16.mxu0 %v5767_v4  ;;  %4992 = vmatprep.subr.bf16.mxu1 %v5767_v4 }
 0x116   : > { %v513_v26 = vadd.f32 %v512_v25, %v319_v24  ;;  %v4968_v27 = vpop.f32.mrb[15].mxu0  ;;  %v568_v28 = vmax.f32 %v510_v22, 0.0  ;;  %v5159_v24 = vld [vmem:[%s7102_s3 + $0x470] ss:$8 sps:$4 sm:$0xff]   ;;  %v5183_v25 = vld [vmem:[%s7102_s3] ss:$8 sps:$4 sm:$0xff]  }
 0x117   : > { %v5164_v27 = vld [vmem:[%s7102_s3 + $0x480] ss:$8 sps:$4 sm:$0xff]  }
 0x118   : > { %v569_v29 = vmax.f32 %v513_v26, 0.0  ;;  %v5189_v26 = vld [vmem:[%s7102_s3 + $0x14] ss:$8 sps:$4 sm:$0xff]  }
 0x11a   : > { %v583_v30 = vpack.c.bf16 %v569_v29, %v568_v28  ;;  %v5191_v28 = vld [vmem:[%s7102_s3 + $0x10] ss:$8 sps:$4 sm:$0xff]  }
 0x11b   : > { %v517_v32 = vpop.f32.mrb[16].mxu0 }
 0x11c   : > { %v518_v33 = vadd.f32 %v517_v32, %v324_v31  ;;  %v4971_v34 = vpop.f32.mrb[17].mxu0  ;;  %2697 = vmatpush1.bf16.msra.mxu0 %v583_v30  ;;  %5001 = vmatpush1.bf16.msra.mxu1 %v583_v30  ;;  %v5165_v30 = vld [vmem:[%s7102_s3 + $0x494] ss:$8 sps:$4 sm:$0xff]   ;;  %v5195_v31 = vld [vmem:[%s7102_s3 + $0x24] ss:$8 sps:$4 sm:$0xff]  }
 0x11d   : > { %v520_v36 = vpop.f32.mrb[18].mxu0  ;;  %2698 = vmatprep.subr.bf16.mxu0 %v5767_v4  ;;  %4993 = vmatprep.subr.bf16.mxu1 %v5767_v4  ;;  %v5197_v34 = vld [vmem:[%s7102_s3 + $0x20] ss:$8 sps:$4 sm:$0xff]  }
 0x11e   : > { %v521_v37 = vadd.f32 %v520_v36, %v329_v35  ;;  %v4972_v38 = vpop.f32.mrb[19].mxu0  ;;  %v570_v39 = vmax.f32 %v518_v33, 0.0  ;;  %v5167_v33 = vld [vmem:[%s7102_s3 + $0x490] ss:$8 sps:$4 sm:$0xff]   ;;  %v5168_v35 = vld [vmem:[%s7102_s3 + $0x4a4] ss:$8 sps:$4 sm:$0xff]  }
 0x11f   : > { %v5201_v36 = vld [vmem:[%s7102_s3 + $0x34] ss:$8 sps:$4 sm:$0xff]   ;;  %v5170_v38 = vld [vmem:[%s7102_s3 + $0x4a0] ss:$8 sps:$4 sm:$0xff]  }
 0x120   : > { %v571_v40 = vmax.f32 %v521_v37, 0.0 }
 0x122   : > { %v584_v41 = vpack.c.bf16 %v571_v40, %v570_v39  ;;  %v5203_v39 = vld [vmem:[%s7102_s3 + $0x30] ss:$8 sps:$4 sm:$0xff]   ;;  %v5171_v40 = vld [vmem:[%s7102_s3 + $0x4b4] ss:$8 sps:$4 sm:$0xff]  }
 0x123   : > { %v525_v43 = vpop.f32.mrb[20].mxu0 }
 0x124   : > { %v526_v44 = vadd.f32 %v525_v43, %v334_v42  ;;  %v4975_v45 = vpop.f32.mrb[21].mxu0  ;;  %2699 = vmatpush1.bf16.msra.mxu0 %v584_v41  ;;  %5002 = vmatpush1.bf16.msra.mxu1 %v584_v41  ;;  %v5207_v41 = vld [vmem:[%s7102_s3 + $0x44] ss:$8 sps:$4 sm:$0xff]   ;;  %v5173_v42 = vld [vmem:[%s7102_s3 + $0x4b0] ss:$8 sps:$4 sm:$0xff]  }
 0x125   : > { %v528_v47 = vpop.f32.mrb[22].mxu0  ;;  %2700 = vmatprep.subr.bf16.mxu0 %v5767_v4  ;;  %4994 = vmatprep.subr.bf16.mxu1 %v5767_v4  ;;  %v5209_v43 = vld [vmem:[%s7102_s3 + $0x40] ss:$8 sps:$4 sm:$0xff]   ;;  %v5213_v45 = vld [vmem:[%s7102_s3 + $0x54] ss:$8 sps:$4 sm:$0xff]  }
 0x126   : > { %v529_v48 = vadd.f32 %v528_v47, %v339_v46  ;;  %v4976_v49 = vpop.f32.mrb[23].mxu0  ;;  %v572_v50 = vmax.f32 %v526_v44, 0.0  ;;  %v5174_v44 = vld [vmem:[%s7102_s3 + $0x4c4] ss:$8 sps:$4 sm:$0xff]   ;;  %v5176_v46 = vld [vmem:[%s7102_s3 + $0x4c0] ss:$8 sps:$4 sm:$0xff]  }
 0x127   : > { %v5215_v47 = vld [vmem:[%s7102_s3 + $0x50] ss:$8 sps:$4 sm:$0xff]   ;;  %v5219_v49 = vld [vmem:[%s7102_s3 + $0x64] ss:$8 sps:$4 sm:$0xff]  }
 0x128   : > { %v573_v51 = vmax.f32 %v529_v48, 0.0  ;;  %v5177_v48 = vld [vmem:[%s7102_s3 + $0x4d4] ss:$8 sps:$4 sm:$0xff]  }
 0x12a   : > { %v585_v52 = vpack.c.bf16 %v573_v51, %v572_v50  ;;  %v5179_v50 = vld [vmem:[%s7102_s3 + $0x4d0] ss:$8 sps:$4 sm:$0xff]   ;;  %v5221_v51 = vld [vmem:[%s7102_s3 + $0x60] ss:$8 sps:$4 sm:$0xff]  }
 0x12b   : > { %v533_v54 = vpop.f32.mrb[24].mxu0 }
 0x12c   : > { %v534_v55 = vadd.f32 %v533_v54, %v344_v53  ;;  %v4979_v56 = vpop.f32.mrb[25].mxu0  ;;  %2701 = vmatpush1.bf16.msra.mxu0 %v585_v52  ;;  %5003 = vmatpush1.bf16.msra.mxu1 %v585_v52  ;;  %v5180_v52 = vld [vmem:[%s7102_s3 + $0x4e4] ss:$8 sps:$4 sm:$0xff]   ;;  %v5225_v53 = vld [vmem:[%s7102_s3 + $0x74] ss:$8 sps:$4 sm:$0xff]  }
 0x12d   : > { %v536_v58 = vpop.f32.mrb[26].mxu0  ;;  %2702 = vmatprep.subr.bf16.mxu0 %v5767_v4  ;;  %4995 = vmatprep.subr.bf16.mxu1 %v5767_v4  ;;  %v5182_v54 = vld [vmem:[%s7102_s3 + $0x4e0] ss:$8 sps:$4 sm:$0xff]   ;;  %v5186_v56 = vld [vmem:[%s7102_s3 + $0x4f4] ss:$8 sps:$4 sm:$0xff]  }
 0x12e   : > { %v537_v59 = vadd.f32 %v536_v58, %v349_v57  ;;  %v4980_v60 = vpop.f32.mrb[27].mxu0  ;;  %v574_v61 = vmax.f32 %v534_v55, 0.0  ;;  %v5227_v55 = vld [vmem:[%s7102_s3 + $0x70] ss:$8 sps:$4 sm:$0xff]   ;;  %v5231_v57 = vld [vmem:[%s7102_s3 + $0x84] ss:$8 sps:$4 sm:$0xff]  }
 0x12f   : > { %v5188_v58 = vld [vmem:[%s7102_s3 + $0x4f0] ss:$8 sps:$4 sm:$0xff]   ;;  %v5192_v60 = vld [vmem:[%s7102_s3 + $0x504] ss:$8 sps:$4 sm:$0xff]  }
 0x130   : > { %v575_v62 = vmax.f32 %v537_v59, 0.0  ;;  %v5233_v59 = vld [vmem:[%s7102_s3 + $0x80] ss:$8 sps:$4 sm:$0xff]  }
 0x132   : > { %v586_v63 = vpack.c.bf16 %v575_v62, %v574_v61  ;;  %v5237_v61 = vld [vmem:[%s7102_s3 + $0x94] ss:$8 sps:$4 sm:$0xff]   ;;  %v5194_v62 = vld [vmem:[%s7102_s3 + $0x500] ss:$8 sps:$4 sm:$0xff]  }
 0x133   : > { %v541_v1 = vpop.f32.mrb[28].mxu0 }
 0x134   : > { %v542_v2 = vadd.f32 %v541_v1, %v354_v0  ;;  %v4983_v3 = vpop.f32.mrb[29].mxu0  ;;  %2703 = vmatpush1.bf16.msra.mxu0 %v586_v63  ;;  %5004 = vmatpush1.bf16.msra.mxu1 %v586_v63  ;;  %v5239_v63 = vld [vmem:[%s7102_s3 + $0x90] ss:$8 sps:$4 sm:$0xff]   ;;  %v5198_v0 = vld [vmem:[%s7102_s3 + $0x514] ss:$8 sps:$4 sm:$0xff]  }
 0x135   : > { %v544_v6 = vpop.f32.mrb[30].mxu0  ;;  %2704 = vmatprep.subr.bf16.mxu0 %v5767_v4  ;;  %4996 = vmatprep.subr.bf16.mxu1 %v5767_v4  ;;  %v5243_v1 = vld [vmem:[%s7102_s3 + $0xa4] ss:$8 sps:$4 sm:$0xff]   ;;  %v5245_v3 = vld [vmem:[%s7102_s3 + $0xa0] ss:$8 sps:$4 sm:$0xff]  }
 0x136   : > { %v545_v7 = vadd.f32 %v544_v6, %v359_v5  ;;  %v4984_v8 = vpop.f32.mrb[31].mxu0  ;;  %v576_v9 = vmax.f32 %v542_v2, 0.0  ;;  %v5200_v2 = vld [vmem:[%s7102_s3 + $0x510] ss:$8 sps:$4 sm:$0xff]   ;;  %v5204_v5 = vld [vmem:[%s7102_s3 + $0x524] ss:$8 sps:$4 sm:$0xff]  }
 0x137   : > { %v5249_v6 = vld [vmem:[%s7102_s3 + $0xb4] ss:$8 sps:$4 sm:$0xff]   ;;  %v5251_v8 = vld [vmem:[%s7102_s3 + $0xb0] ss:$8 sps:$4 sm:$0xff]  }
 0x138   : > { %v577_v10 = vmax.f32 %v545_v7, 0.0  ;;  %v5206_v7 = vld [vmem:[%s7102_s3 + $0x520] ss:$8 sps:$4 sm:$0xff]  }
 0x13a   : > { %v587_v11 = vpack.c.bf16 %v577_v10, %v576_v9  ;;  %v5210_v9 = vld [vmem:[%s7102_s3 + $0x534] ss:$8 sps:$4 sm:$0xff]   ;;  %v5255_v10 = vld [vmem:[%s7102_s3 + $0xc4] ss:$8 sps:$4 sm:$0xff]  }
 0x13b   : > { %v549_v13 = vpop.f32.mrb[32].mxu0 }
 0x13c   : > { %v550_v14 = vadd.f32 %v549_v13, %v364_v12  ;;  %v4987_v15 = vpop.f32.mrb[33].mxu0  ;;  %2705 = vmatpush1.bf16.msra.mxu0 %v587_v11  ;;  %5005 = vmatpush1.bf16.msra.mxu1 %v587_v11  ;;  %v5212_v11 = vld [vmem:[%s7102_s3 + $0x530] ss:$8 sps:$4 sm:$0xff]   ;;  %v5257_v12 = vld [vmem:[%s7102_s3 + $0xc0] ss:$8 sps:$4 sm:$0xff]  }
 0x13d   : > { %v552_v17 = vpop.f32.mrb[34].mxu0  ;;  %2706 = vmatprep.subr.bf16.mxu0 %v5767_v4  ;;  %4997 = vmatprep.subr.bf16.mxu1 %v5767_v4  ;;  %v5162_v4 = vld [vmem:[%s7102_s3 + $0x484] ss:$8 sps:$4 sm:$0xff]   ;;  %v5218_v15 = vld [vmem:[%s7102_s3 + $0x540] ss:$8 sps:$4 sm:$0xff]  }
 0x13e   : > { %v553_v18 = vadd.f32 %v552_v17, %v369_v16  ;;  %v4988_v19 = vpop.f32.mrb[35].mxu0  ;;  %v578_v20 = vmax.f32 %v550_v14, 0.0  ;;  %v5216_v13 = vld [vmem:[%s7102_s3 + $0x544] ss:$8 sps:$4 sm:$0xff]   ;;  %v5261_v14 = vld [vmem:[%s7102_s3 + $0xd4] ss:$8 sps:$4 sm:$0xff]  }
 0x13f   : > { %v5263_v16 = vld [vmem:[%s7102_s3 + $0xd0] ss:$8 sps:$4 sm:$0xff]   ;;  %v5222_v17 = vld [vmem:[%s7102_s3 + $0x554] ss:$8 sps:$4 sm:$0xff]  }
 0x140   : > { %v4473_v21 = vmul.f32 -1.442695, %v553_v18  ;;  %v579_v22 = vmax.f32 %v553_v18, 0.0  ;;  %v5267_v18 = vld [vmem:[%s7102_s3 + $0xe4] ss:$8 sps:$4 sm:$0xff]  }
 0x141   : > { %v5224_v19 = vld [vmem:[%s7102_s3 + $0x550] ss:$8 sps:$4 sm:$0xff]  }
 0x142   : > { %5609 = vpow2.f32 %v4473_v21  ;;  %v588_v23 = vpack.c.bf16 %v579_v22, %v578_v20  ;;  %v5269_v20 = vld [vmem:[%s7102_s3 + $0xe0] ss:$8 sps:$4 sm:$0xff]   ;;  %v5228_v21 = vld [vmem:[%s7102_s3 + $0x564] ss:$8 sps:$4 sm:$0xff]   ;;  %v5273_v22 = vld [vmem:[%s7102_s3 + $0xf4] ss:$8 sps:$4 sm:$0xff]  }
 0x144   : > { %2707 = vmatpush1.bf16.msra.mxu0 %v588_v23  ;;  %5006 = vmatpush1.bf16.msra.mxu1 %v588_v23  ;;  %v5230_v23 = vld [vmem:[%s7102_s3 + $0x560] ss:$8 sps:$4 sm:$0xff]  }
 0x147   : > { %3291 = vmatmul.mubr.bf16.vlgmr.msra.gmra.mrb[0].mxu1 %v5159_v24  ;;  %2723 = vmatmul.mubr.bf16.vlgmr.msra.gmra.mrb[36].mxu0 %v5183_v25  ;;  %v5275_v24 = vld [vmem:[%s7102_s3 + $0xf0] ss:$8 sps:$4 sm:$0xff]   ;;  %v5234_v25 = vld [vmem:[%s7102_s3 + $0x574] ss:$8 sps:$4 sm:$0xff]  }
 0x148   : > { %4846 = vmatprep.mubr.msk.bf16.mxu1 %vm2239_vm4, %v5162_v4  ;;  %4775 = vmatprep.mubr.msk.bf16.mxu0 %vm2239_vm4, %v5189_v26  ;;  %v5279_v4 = vld [vmem:[%s7102_s3 + $0x104] ss:$8 sps:$4 sm:$0xff]   ;;  %v5236_v26 = vld [vmem:[%s7102_s3 + $0x570] ss:$8 sps:$4 sm:$0xff]  }
 0x14c   : > { %v5610_v29 = vpop.eup %5609 }
 0x14d   : > { %v559_v32 = vadd.f32 1.0, %v5610_v29  ;;  %v5285_v29 = vld [vmem:[%s7102_s3 + $0x114] ss:$8 sps:$4 sm:$0xff]  }
 0x14f   : > { %5611 = vrcp.f32 %v559_v32  ;;  %3299 = vmatmul.mubr.bf16.gmra.mrb[4].mxu1 %v5164_v27  ;;  %2731 = vmatmul.mubr.bf16.gmra.mrb[40].mxu0 %v5191_v28  ;;  %v5281_v27 = vld [vmem:[%s7102_s3 + $0x100] ss:$8 sps:$4 sm:$0xff]   ;;  %v5240_v28 = vld [vmem:[%s7102_s3 + $0x584] ss:$8 sps:$4 sm:$0xff]   ;;  %v5246_v32 = vld [vmem:[%s7102_s3 + $0x594] ss:$8 sps:$4 sm:$0xff]  }
 0x150   : > { %4847 = vmatprep.mubr.msk.bf16.mxu1 %vm2239_vm4, %v5165_v30  ;;  %4776 = vmatprep.mubr.msk.bf16.mxu0 %vm2239_vm4, %v5195_v31  ;;  %v5242_v30 = vld [vmem:[%s7102_s3 + $0x580] ss:$8 sps:$4 sm:$0xff]   ;;  %v5287_v31 = vld [vmem:[%s7102_s3 + $0x110] ss:$8 sps:$4 sm:$0xff]  }
 0x157   : > { %3307 = vmatmul.mubr.bf16.gmra.mrb[8].mxu1 %v5167_v33  ;;  %2739 = vmatmul.mubr.bf16.gmra.mrb[44].mxu0 %v5197_v34  ;;  %v5291_v33 = vld [vmem:[%s7102_s3 + $0x124] ss:$8 sps:$4 sm:$0xff]   ;;  %v5248_v34 = vld [vmem:[%s7102_s3 + $0x590] ss:$8 sps:$4 sm:$0xff]  }
 0x158   : > { %4848 = vmatprep.mubr.msk.bf16.mxu1 %vm2239_vm4, %v5168_v35  ;;  %4777 = vmatprep.mubr.msk.bf16.mxu0 %vm2239_vm4, %v5201_v36  ;;  %v5293_v35 = vld [vmem:[%s7102_s3 + $0x120] ss:$8 sps:$4 sm:$0xff]   ;;  %v5252_v36 = vld [vmem:[%s7102_s3 + $0x5a4] ss:$8 sps:$4 sm:$0xff]  }
 0x159   : > { %v6015_v37 = vpop.eup %5611 }
 0x15f   : > { %3315 = vmatmul.mubr.bf16.gmra.mrb[12].mxu1 %v5170_v38  ;;  %2747 = vmatmul.mubr.bf16.gmra.mrb[48].mxu0 %v5203_v39  ;;  %v5297_v38 = vld [vmem:[%s7102_s3 + $0x134] ss:$8 sps:$4 sm:$0xff]   ;;  %v5254_v39 = vld [vmem:[%s7102_s3 + $0x5a0] ss:$8 sps:$4 sm:$0xff]  }
 0x160   : > { %4849 = vmatprep.mubr.msk.bf16.mxu1 %vm2239_vm4, %v5171_v40  ;;  %4778 = vmatprep.mubr.msk.bf16.mxu0 %vm2239_vm4, %v5207_v41  ;;  %v5299_v40 = vld [vmem:[%s7102_s3 + $0x130] ss:$8 sps:$4 sm:$0xff]   ;;  %v5258_v41 = vld [vmem:[%s7102_s3 + $0x5b4] ss:$8 sps:$4 sm:$0xff]  }
 0x167   : > { %3323 = vmatmul.mubr.bf16.gmra.mrb[16].mxu1 %v5173_v42  ;;  %2755 = vmatmul.mubr.bf16.gmra.mrb[52].mxu0 %v5209_v43  ;;  %v5303_v42 = vld [vmem:[%s7102_s3 + $0x144] ss:$8 sps:$4 sm:$0xff]   ;;  %v5260_v43 = vld [vmem:[%s7102_s3 + $0x5b0] ss:$8 sps:$4 sm:$0xff]  }
 0x168   : > { %4850 = vmatprep.mubr.msk.bf16.mxu1 %vm2239_vm4, %v5174_v44  ;;  %4779 = vmatprep.mubr.msk.bf16.mxu0 %vm2239_vm4, %v5213_v45  ;;  %v5305_v44 = vld [vmem:[%s7102_s3 + $0x140] ss:$8 sps:$4 sm:$0xff]   ;;  %v5264_v45 = vld [vmem:[%s7102_s3 + $0x5c4] ss:$8 sps:$4 sm:$0xff]  }
 0x16f   : > { %3331 = vmatmul.mubr.bf16.gmra.mrb[20].mxu1 %v5176_v46  ;;  %2763 = vmatmul.mubr.bf16.gmra.mrb[56].mxu0 %v5215_v47  ;;  %v5309_v46 = vld [vmem:[%s7102_s3 + $0x154] ss:$8 sps:$4 sm:$0xff]   ;;  %v5266_v47 = vld [vmem:[%s7102_s3 + $0x5c0] ss:$8 sps:$4 sm:$0xff]  }
 0x170   : > { %4851 = vmatprep.mubr.msk.bf16.mxu1 %vm2239_vm4, %v5177_v48  ;;  %4780 = vmatprep.mubr.msk.bf16.mxu0 %vm2239_vm4, %v5219_v49  ;;  %v5311_v48 = vld [vmem:[%s7102_s3 + $0x150] ss:$8 sps:$4 sm:$0xff]   ;;  %v5270_v49 = vld [vmem:[%s7102_s3 + $0x5d4] ss:$8 sps:$4 sm:$0xff]  }
 0x177   : > { %3339 = vmatmul.mubr.bf16.gmra.mrb[24].mxu1 %v5179_v50  ;;  %2771 = vmatmul.mubr.bf16.gmra.mrb[60].mxu0 %v5221_v51  ;;  %v5315_v50 = vld [vmem:[%s7102_s3 + $0x164] ss:$8 sps:$4 sm:$0xff]   ;;  %v5272_v51 = vld [vmem:[%s7102_s3 + $0x5d0] ss:$8 sps:$4 sm:$0xff]  }
 0x178   : > { %4852 = vmatprep.mubr.msk.bf16.mxu1 %vm2239_vm4, %v5180_v52  ;;  %4781 = vmatprep.mubr.msk.bf16.mxu0 %vm2239_vm4, %v5225_v53  ;;  %v5317_v52 = vld [vmem:[%s7102_s3 + $0x160] ss:$8 sps:$4 sm:$0xff]   ;;  %v5276_v53 = vld [vmem:[%s7102_s3 + $0x5e4] ss:$8 sps:$4 sm:$0xff]  }
 0x17f   : > { %3347 = vmatmul.mubr.bf16.gmra.mrb[28].mxu1 %v5182_v54  ;;  %2779 = vmatmul.mubr.bf16.gmra.mrb[64].mxu0 %v5227_v55  ;;  %v5321_v54 = vld [vmem:[%s7102_s3 + $0x174] ss:$8 sps:$4 sm:$0xff]   ;;  %v5278_v55 = vld [vmem:[%s7102_s3 + $0x5e0] ss:$8 sps:$4 sm:$0xff]  }
 0x180   : > { %4853 = vmatprep.mubr.msk.bf16.mxu1 %vm2239_vm4, %v5186_v56  ;;  %4782 = vmatprep.mubr.msk.bf16.mxu0 %vm2239_vm4, %v5231_v57  ;;  %v5323_v56 = vld [vmem:[%s7102_s3 + $0x170] ss:$8 sps:$4 sm:$0xff]   ;;  %v5282_v57 = vld [vmem:[%s7102_s3 + $0x5f4] ss:$8 sps:$4 sm:$0xff]  }
 0x187   : > { %3355 = vmatmul.mubr.bf16.gmra.mrb[32].mxu1 %v5188_v58  ;;  %2787 = vmatmul.mubr.bf16.gmra.mrb[68].mxu0 %v5233_v59  ;;  %v5327_v58 = vld [vmem:[%s7102_s3 + $0x184] ss:$8 sps:$4 sm:$0xff]   ;;  %v5284_v59 = vld [vmem:[%s7102_s3 + $0x5f0] ss:$8 sps:$4 sm:$0xff]  }
 0x188   : > { %4854 = vmatprep.mubr.msk.bf16.mxu1 %vm2239_vm4, %v5192_v60  ;;  %4783 = vmatprep.mubr.msk.bf16.mxu0 %vm2239_vm4, %v5237_v61  ;;  %v5329_v60 = vld [vmem:[%s7102_s3 + $0x180] ss:$8 sps:$4 sm:$0xff]   ;;  %v5288_v61 = vld [vmem:[%s7102_s3 + $0x604] ss:$8 sps:$4 sm:$0xff]  }
 0x18f   : > { %3363 = vmatmul.mubr.bf16.gmra.mrb[36].mxu1 %v5194_v62  ;;  %2795 = vmatmul.mubr.bf16.gmra.mrb[72].mxu0 %v5239_v63  ;;  %v5333_v62 = vld [vmem:[%s7102_s3 + $0x194] ss:$8 sps:$4 sm:$0xff]   ;;  %v5290_v63 = vld [vmem:[%s7102_s3 + $0x600] ss:$8 sps:$4 sm:$0xff]  }
 0x190   : > { %4855 = vmatprep.mubr.msk.bf16.mxu1 %vm2239_vm4, %v5198_v0  ;;  %4784 = vmatprep.mubr.msk.bf16.mxu0 %vm2239_vm4, %v5243_v1  ;;  %v5335_v0 = vld [vmem:[%s7102_s3 + $0x190] ss:$8 sps:$4 sm:$0xff]   ;;  %v5294_v1 = vld [vmem:[%s7102_s3 + $0x614] ss:$8 sps:$4 sm:$0xff]  }
 0x197   : > { %3371 = vmatmul.mubr.bf16.gmra.mrb[40].mxu1 %v5200_v2  ;;  %2803 = vmatmul.mubr.bf16.gmra.mrb[76].mxu0 %v5245_v3  ;;  %v5339_v2 = vld [vmem:[%s7102_s3 + $0x1a4] ss:$8 sps:$4 sm:$0xff]   ;;  %v5296_v3 = vld [vmem:[%s7102_s3 + $0x610] ss:$8 sps:$4 sm:$0xff]  }
 0x198   : > { %4856 = vmatprep.mubr.msk.bf16.mxu1 %vm2239_vm4, %v5204_v5  ;;  %4785 = vmatprep.mubr.msk.bf16.mxu0 %vm2239_vm4, %v5249_v6  ;;  %v5341_v5 = vld [vmem:[%s7102_s3 + $0x1a0] ss:$8 sps:$4 sm:$0xff]   ;;  %v5300_v6 = vld [vmem:[%s7102_s3 + $0x624] ss:$8 sps:$4 sm:$0xff]  }
 0x19f   : > { %3379 = vmatmul.mubr.bf16.gmra.mrb[44].mxu1 %v5206_v7  ;;  %2811 = vmatmul.mubr.bf16.gmra.mrb[80].mxu0 %v5251_v8  ;;  %v5345_v7 = vld [vmem:[%s7102_s3 + $0x1b4] ss:$8 sps:$4 sm:$0xff]  }
 0x1a0   : > { %4857 = vmatprep.mubr.msk.bf16.mxu1 %vm2239_vm4, %v5210_v9  ;;  %4786 = vmatprep.mubr.msk.bf16.mxu0 %vm2239_vm4, %v5255_v10 }
 0x1a7   : > { %3387 = vmatmul.mubr.bf16.gmra.mrb[48].mxu1 %v5212_v11  ;;  %2819 = vmatmul.mubr.bf16.gmra.mrb[84].mxu0 %v5257_v12  ;;  %v5302_v11 = vld [vmem:[%s7102_s3 + $0x620] ss:$8 sps:$4 sm:$0xff]  }
 0x1a8   : > { %4858 = vmatprep.mubr.msk.bf16.mxu1 %vm2239_vm4, %v5216_v13  ;;  %4787 = vmatprep.mubr.msk.bf16.mxu0 %vm2239_vm4, %v5261_v14  ;;  %v5347_v13 = vld [vmem:[%s7102_s3 + $0x1b0] ss:$8 sps:$4 sm:$0xff]  }
 0x1af   : > { %3395 = vmatmul.mubr.bf16.gmra.mrb[52].mxu1 %v5218_v15  ;;  %2827 = vmatmul.mubr.bf16.gmra.mrb[88].mxu0 %v5263_v16  ;;  %v5306_v15 = vld [vmem:[%s7102_s3 + $0x634] ss:$8 sps:$4 sm:$0xff]  }
 0x1b0   : > { %4859 = vmatprep.mubr.msk.bf16.mxu1 %vm2239_vm4, %v5222_v17  ;;  %4788 = vmatprep.mubr.msk.bf16.mxu0 %vm2239_vm4, %v5267_v18  ;;  %v5351_v17 = vld [vmem:[%s7102_s3 + $0x1c4] ss:$8 sps:$4 sm:$0xff]  }
 0x1b7   : > { %3403 = vmatmul.mubr.bf16.gmra.mrb[56].mxu1 %v5224_v19  ;;  %2835 = vmatmul.mubr.bf16.gmra.mrb[92].mxu0 %v5269_v20 }
 0x1b8   : > { %4860 = vmatprep.mubr.msk.bf16.mxu1 %vm2239_vm4, %v5228_v21  ;;  %4789 = vmatprep.mubr.msk.bf16.mxu0 %vm2239_vm4, %v5273_v22 }
 0x1bf   : > { %3411 = vmatmul.mubr.bf16.gmra.mrb[60].mxu1 %v5230_v23  ;;  %2843 = vmatmul.mubr.bf16.gmra.mrb[96].mxu0 %v5275_v24  ;;  %v5308_v23 = vld [vmem:[%s7102_s3 + $0x630] ss:$8 sps:$4 sm:$0xff]  }
 0x1c0   : > { %4861 = vmatprep.mubr.msk.bf16.mxu1 %vm2239_vm4, %v5234_v25  ;;  %4790 = vmatprep.mubr.msk.bf16.mxu0 %vm2239_vm4, %v5279_v4  ;;  %v5353_v25 = vld [vmem:[%s7102_s3 + $0x1c0] ss:$8 sps:$4 sm:$0xff]  }
 0x1c7   : > { %3419 = vmatmul.mubr.bf16.gmra.mrb[64].mxu1 %v5236_v26  ;;  %2851 = vmatmul.mubr.bf16.gmra.mrb[100].mxu0 %v5281_v27  ;;  %v5312_v26 = vld [vmem:[%s7102_s3 + $0x644] ss:$8 sps:$4 sm:$0xff]  }
 0x1c8   : > { %4862 = vmatprep.mubr.msk.bf16.mxu1 %vm2239_vm4, %v5240_v28  ;;  %4791 = vmatprep.mubr.msk.bf16.mxu0 %vm2239_vm4, %v5285_v29  ;;  %v5357_v28 = vld [vmem:[%s7102_s3 + $0x1d4] ss:$8 sps:$4 sm:$0xff]  }
 0x1cf   : > { %3427 = vmatmul.mubr.bf16.gmra.mrb[68].mxu1 %v5242_v30  ;;  %2859 = vmatmul.mubr.bf16.gmra.mrb[104].mxu0 %v5287_v31 }
 0x1d0   : > { %4863 = vmatprep.mubr.msk.bf16.mxu1 %vm2239_vm4, %v5246_v32  ;;  %4792 = vmatprep.mubr.msk.bf16.mxu0 %vm2239_vm4, %v5291_v33 }
 0x1d7   : > { %3435 = vmatmul.mubr.bf16.gmra.mrb[72].mxu1 %v5248_v34  ;;  %2867 = vmatmul.mubr.bf16.gmra.mrb[108].mxu0 %v5293_v35  ;;  %v5314_v34 = vld [vmem:[%s7102_s3 + $0x640] ss:$8 sps:$4 sm:$0xff]  }
 0x1d8   : > { %4864 = vmatprep.mubr.msk.bf16.mxu1 %vm2239_vm4, %v5252_v36  ;;  %4793 = vmatprep.mubr.msk.bf16.mxu0 %vm2239_vm4, %v5297_v38  ;;  %v5359_v36 = vld [vmem:[%s7102_s3 + $0x1d0] ss:$8 sps:$4 sm:$0xff]  }
 0x1df   : > { %3443 = vmatmul.mubr.bf16.gmra.mrb[76].mxu1 %v5254_v39  ;;  %2875 = vmatmul.mubr.bf16.gmra.mrb[112].mxu0 %v5299_v40  ;;  %v5318_v39 = vld [vmem:[%s7102_s3 + $0x654] ss:$8 sps:$4 sm:$0xff]  }
 0x1e0   : > { %4865 = vmatprep.mubr.msk.bf16.mxu1 %vm2239_vm4, %v5258_v41  ;;  %4794 = vmatprep.mubr.msk.bf16.mxu0 %vm2239_vm4, %v5303_v42  ;;  %v5363_v41 = vld [vmem:[%s7102_s3 + $0x1e4] ss:$8 sps:$4 sm:$0xff]  }
 0x1e7   : > { %3451 = vmatmul.mubr.bf16.gmra.mrb[80].mxu1 %v5260_v43  ;;  %2883 = vmatmul.mubr.bf16.gmra.mrb[116].mxu0 %v5305_v44 }
 0x1e8   : > { %4866 = vmatprep.mubr.msk.bf16.mxu1 %vm2239_vm4, %v5264_v45  ;;  %4795 = vmatprep.mubr.msk.bf16.mxu0 %vm2239_vm4, %v5309_v46 }
 0x1ef   : > { %3459 = vmatmul.mubr.bf16.gmra.mrb[84].mxu1 %v5266_v47  ;;  %2891 = vmatmul.mubr.bf16.gmra.mrb[120].mxu0 %v5311_v48  ;;  %v5320_v47 = vld [vmem:[%s7102_s3 + $0x650] ss:$8 sps:$4 sm:$0xff]  }
 0x1f0   : > { %4867 = vmatprep.mubr.msk.bf16.mxu1 %vm2239_vm4, %v5270_v49  ;;  %4796 = vmatprep.mubr.msk.bf16.mxu0 %vm2239_vm4, %v5315_v50  ;;  %v5365_v49 = vld [vmem:[%s7102_s3 + $0x1e0] ss:$8 sps:$4 sm:$0xff]  }
 0x1f7   : > { %3467 = vmatmul.mubr.bf16.gmra.mrb[88].mxu1 %v5272_v51  ;;  %2899 = vmatmul.mubr.bf16.gmra.mrb[124].mxu0 %v5317_v52  ;;  %v5324_v51 = vld [vmem:[%s7102_s3 + $0x664] ss:$8 sps:$4 sm:$0xff]  }
 0x1f8   : > { %4868 = vmatprep.mubr.msk.bf16.mxu1 %vm2239_vm4, %v5276_v53  ;;  %4797 = vmatprep.mubr.msk.bf16.mxu0 %vm2239_vm4, %v5321_v54  ;;  %v5369_v53 = vld [vmem:[%s7102_s3 + $0x1f4] ss:$8 sps:$4 sm:$0xff]  }
 0x1ff   : > { %3475 = vmatmul.mubr.bf16.gmra.mrb[92].mxu1 %v5278_v55  ;;  %2907 = vmatmul.mubr.bf16.gmra.mrb[128].mxu0 %v5323_v56 }
 0x200   : > { %4869 = vmatprep.mubr.msk.bf16.mxu1 %vm2239_vm4, %v5282_v57  ;;  %4798 = vmatprep.mubr.msk.bf16.mxu0 %vm2239_vm4, %v5327_v58 }
 0x207   : > { %3483 = vmatmul.mubr.bf16.gmra.mrb[96].mxu1 %v5284_v59  ;;  %2915 = vmatmul.mubr.bf16.gmra.mrb[132].mxu0 %v5329_v60  ;;  %v5326_v59 = vld [vmem:[%s7102_s3 + $0x660] ss:$8 sps:$4 sm:$0xff]  }
 0x208   : > { %4870 = vmatprep.mubr.msk.bf16.mxu1 %vm2239_vm4, %v5288_v61  ;;  %4799 = vmatprep.mubr.msk.bf16.mxu0 %vm2239_vm4, %v5333_v62  ;;  %v5371_v61 = vld [vmem:[%s7102_s3 + $0x1f0] ss:$8 sps:$4 sm:$0xff]  }
 0x20f   : > { %3491 = vmatmul.mubr.bf16.gmra.mrb[100].mxu1 %v5290_v63  ;;  %2923 = vmatmul.mubr.bf16.gmra.mrb[136].mxu0 %v5335_v0  ;;  %v5330_v63 = vld [vmem:[%s7102_s3 + $0x674] ss:$8 sps:$4 sm:$0xff]  }
 0x210   : > { %4871 = vmatprep.mubr.msk.bf16.mxu1 %vm2239_vm4, %v5294_v1  ;;  %4800 = vmatprep.mubr.msk.bf16.mxu0 %vm2239_vm4, %v5339_v2  ;;  %v5375_v1 = vld [vmem:[%s7102_s3 + $0x204] ss:$8 sps:$4 sm:$0xff]  }
 0x217   : > { %3499 = vmatmul.mubr.bf16.gmra.mrb[104].mxu1 %v5296_v3  ;;  %2931 = vmatmul.mubr.bf16.gmra.mrb[140].mxu0 %v5341_v5 }
 0x218   : > { %4872 = vmatprep.mubr.msk.bf16.mxu1 %vm2239_vm4, %v5300_v6  ;;  %4801 = vmatprep.mubr.msk.bf16.mxu0 %vm2239_vm4, %v5345_v7 }
 0x21a   : > { %v3292_v8 = vpop.f32.mrb[0].mxu1  ;;  %v6353_v9 = vpop.f32.mrb[36].mxu0  }
 0x21b   : > { %4065 = vst [vmem:[#allocation2 + $0x470] sm:$0xff] %v3292_v8  ;;  %v3294_v10 = vpop.f32.mrb[1].mxu1  ;;  %3923 = vst [vmem:[#allocation2] sm:$0xff] %v6353_v9  ;;  %v2726_v12 = vpop.f32.mrb[37].mxu0  ;;  %v5332_v8 = vld [vmem:[%s7102_s3 + $0x670] ss:$8 sps:$4 sm:$0xff]  }
 0x21c   : > { %v3295_v14 = vpop.f32.mrb[2].mxu1  ;;  %v6365_v16 = vpop.f32.mrb[38].mxu0  }
 0x21d   : > { %4066 = vst [vmem:[#allocation2 + $0x478] sm:$0xff] %v3295_v14  ;;  %v3297_v18 = vpop.f32.mrb[3].mxu1  ;;  %3924 = vst [vmem:[#allocation2 + $0x8] sm:$0xff] %v6365_v16  ;;  %v2729_v19 = vpop.f32.mrb[39].mxu0 }
 0x21f   : > { %3507 = vmatmul.mubr.bf16.gmra.mrb[108].mxu1 %v5302_v11  ;;  %2939 = vmatmul.mubr.bf16.gmra.mrb[144].mxu0 %v5347_v13  ;;  %v5377_v11 = vld [vmem:[%s7102_s3 + $0x200] ss:$8 sps:$4 sm:$0xff]   ;;  %v5336_v13 = vld [vmem:[%s7102_s3 + $0x684] ss:$8 sps:$4 sm:$0xff]  }
 0x220   : > { %4873 = vmatprep.mubr.msk.bf16.mxu1 %vm2239_vm4, %v5306_v15  ;;  %4802 = vmatprep.mubr.msk.bf16.mxu0 %vm2239_vm4, %v5351_v17  ;;  %v5381_v15 = vld [vmem:[%s7102_s3 + $0x214] ss:$8 sps:$4 sm:$0xff]  }
 0x222   : > { %v3300_v20 = vpop.f32.mrb[4].mxu1  ;;  %v6373_v21 = vpop.f32.mrb[40].mxu0  }
 0x223   : > { %4067 = vst [vmem:[#allocation2 + $0x480] sm:$0xff] %v3300_v20  ;;  %v3302_v22 = vpop.f32.mrb[5].mxu1  ;;  %3925 = vst [vmem:[#allocation2 + $0x10] sm:$0xff] %v6373_v21  ;;  %v2734_v24 = vpop.f32.mrb[41].mxu0 }
 0x224   : > { %v3303_v4 = vpop.f32.mrb[6].mxu1  ;;  %v6385_v27 = vpop.f32.mrb[42].mxu0  }
 0x225   : > { %4068 = vst [vmem:[#allocation2 + $0x488] sm:$0xff] %v3303_v4  ;;  %v3305_v29 = vpop.f32.mrb[7].mxu1  ;;  %3926 = vst [vmem:[#allocation2 + $0x18] sm:$0xff] %v6385_v27  ;;  %v2737_v30 = vpop.f32.mrb[43].mxu0 }
 0x226   : > { %v5387_v29 = vld [vmem:[%s7102_s3 + $0x224] ss:$8 sps:$4 sm:$0xff]  }
 0x227   : > { %3515 = vmatmul.mubr.bf16.gmra.mrb[112].mxu1 %v5308_v23  ;;  %2947 = vmatmul.mubr.bf16.gmra.mrb[148].mxu0 %v5353_v25  ;;  %v5338_v23 = vld [vmem:[%s7102_s3 + $0x680] ss:$8 sps:$4 sm:$0xff]   ;;  %v5383_v25 = vld [vmem:[%s7102_s3 + $0x210] ss:$8 sps:$4 sm:$0xff]  }
 0x228   : > { %4874 = vmatprep.mubr.msk.bf16.mxu1 %vm2239_vm4, %v5312_v26  ;;  %4803 = vmatprep.mubr.msk.bf16.mxu0 %vm2239_vm4, %v5357_v28  ;;  %v5342_v26 = vld [vmem:[%s7102_s3 + $0x694] ss:$8 sps:$4 sm:$0xff]  }
 0x22a   : > { %v3308_v31 = vpop.f32.mrb[8].mxu1  ;;  %v2740_v32 = vpop.f32.mrb[44].mxu0 }
 0x22b   : > { %4069 = vst [vmem:[#allocation2 + $0x490] sm:$0xff] %v3308_v31  ;;  %v3310_v33 = vpop.f32.mrb[9].mxu1  ;;  %3927 = vst [vmem:[#allocation2 + $0x20] sm:$0xff] %v2740_v32  ;;  %v2742_v35 = vpop.f32.mrb[45].mxu0 }
 0x22c   : > { %v3311_v38 = vpop.f32.mrb[10].mxu1  ;;  %v2743_v40 = vpop.f32.mrb[46].mxu0  ;;  %v5344_v35 = vld [vmem:[%s7102_s3 + $0x690] ss:$8 sps:$4 sm:$0xff]  }
 0x22d   : > { %4070 = vst [vmem:[#allocation2 + $0x498] sm:$0xff] %v3311_v38  ;;  %v3313_v42 = vpop.f32.mrb[11].mxu1  ;;  %3928 = vst [vmem:[#allocation2 + $0x28] sm:$0xff] %v2743_v40  ;;  %v2745_v43 = vpop.f32.mrb[47].mxu0  ;;  %v5389_v38 = vld [vmem:[%s7102_s3 + $0x220] ss:$8 sps:$4 sm:$0xff]  }
 0x22e   : > { %v5348_v40 = vld [vmem:[%s7102_s3 + $0x6a4] ss:$8 sps:$4 sm:$0xff]   ;;  %v5393_v42 = vld [vmem:[%s7102_s3 + $0x234] ss:$8 sps:$4 sm:$0xff]  }
 0x22f   : > { %3523 = vmatmul.mubr.bf16.gmra.mrb[116].mxu1 %v5314_v34  ;;  %2955 = vmatmul.mubr.bf16.gmra.mrb[152].mxu0 %v5359_v36 }
 0x230   : > { %4875 = vmatprep.mubr.msk.bf16.mxu1 %vm2239_vm4, %v5318_v39  ;;  %4804 = vmatprep.mubr.msk.bf16.mxu0 %vm2239_vm4, %v5363_v41 }
 0x232   : > { %v3316_v44 = vpop.f32.mrb[12].mxu1  ;;  %v2748_v45 = vpop.f32.mrb[48].mxu0 }
 0x233   : > { %4071 = vst [vmem:[#allocation2 + $0x4a0] sm:$0xff] %v3316_v44  ;;  %v3318_v46 = vpop.f32.mrb[13].mxu1  ;;  %3929 = vst [vmem:[#allocation2 + $0x30] sm:$0xff] %v2748_v45  ;;  %v2750_v48 = vpop.f32.mrb[49].mxu0 }
 0x234   : > { %v3319_v50 = vpop.f32.mrb[14].mxu1  ;;  %v2751_v52 = vpop.f32.mrb[50].mxu0  ;;  %v5350_v48 = vld [vmem:[%s7102_s3 + $0x6a0] ss:$8 sps:$4 sm:$0xff]  }
 0x235   : > { %4072 = vst [vmem:[#allocation2 + $0x4a8] sm:$0xff] %v3319_v50  ;;  %v3321_v54 = vpop.f32.mrb[15].mxu1  ;;  %3930 = vst [vmem:[#allocation2 + $0x38] sm:$0xff] %v2751_v52  ;;  %v2753_v55 = vpop.f32.mrb[51].mxu0  ;;  %v5395_v50 = vld [vmem:[%s7102_s3 + $0x230] ss:$8 sps:$4 sm:$0xff]  }
 0x236   : > { %v5354_v52 = vld [vmem:[%s7102_s3 + $0x6b4] ss:$8 sps:$4 sm:$0xff]   ;;  %v5399_v54 = vld [vmem:[%s7102_s3 + $0x244] ss:$8 sps:$4 sm:$0xff]  }
 0x237   : > { %3531 = vmatmul.mubr.bf16.gmra.mrb[120].mxu1 %v5320_v47  ;;  %2963 = vmatmul.mubr.bf16.gmra.mrb[156].mxu0 %v5365_v49 }
 0x238   : > { %4876 = vmatprep.mubr.msk.bf16.mxu1 %vm2239_vm4, %v5324_v51  ;;  %4805 = vmatprep.mubr.msk.bf16.mxu0 %vm2239_vm4, %v5369_v53 }
 0x23a   : > { %v3324_v56 = vpop.f32.mrb[16].mxu1  ;;  %v2756_v57 = vpop.f32.mrb[52].mxu0 }
 0x23b   : > { %4073 = vst [vmem:[#allocation2 + $0x4b0] sm:$0xff] %v3324_v56  ;;  %v3326_v58 = vpop.f32.mrb[17].mxu1  ;;  %3931 = vst [vmem:[#allocation2 + $0x40] sm:$0xff] %v2756_v57  ;;  %v2758_v60 = vpop.f32.mrb[53].mxu0 }
 0x23c   : > { %v3327_v62 = vpop.f32.mrb[18].mxu1  ;;  %v2759_v0 = vpop.f32.mrb[54].mxu0  ;;  %v5356_v60 = vld [vmem:[%s7102_s3 + $0x6b0] ss:$8 sps:$4 sm:$0xff]  }
 0x23d   : > { %4074 = vst [vmem:[#allocation2 + $0x4b8] sm:$0xff] %v3327_v62  ;;  %v3329_v2 = vpop.f32.mrb[19].mxu1  ;;  %3932 = vst [vmem:[#allocation2 + $0x48] sm:$0xff] %v2759_v0  ;;  %v2761_v3 = vpop.f32.mrb[55].mxu0  ;;  %v5401_v62 = vld [vmem:[%s7102_s3 + $0x240] ss:$8 sps:$4 sm:$0xff]  }
 0x23e   : > { %v5360_v0 = vld [vmem:[%s7102_s3 + $0x6c4] ss:$8 sps:$4 sm:$0xff]   ;;  %v5405_v2 = vld [vmem:[%s7102_s3 + $0x254] ss:$8 sps:$4 sm:$0xff]  }
 0x23f   : > { %3539 = vmatmul.mubr.bf16.gmra.mrb[124].mxu1 %v5326_v59  ;;  %2971 = vmatmul.mubr.bf16.gmra.mrb[160].mxu0 %v5371_v61 }
 0x240   : > { %4877 = vmatprep.mubr.msk.bf16.mxu1 %vm2239_vm4, %v5330_v63  ;;  %4806 = vmatprep.mubr.msk.bf16.mxu0 %vm2239_vm4, %v5375_v1 }
 0x242   : > { %v3332_v5 = vpop.f32.mrb[20].mxu1  ;;  %v2764_v6 = vpop.f32.mrb[56].mxu0 }
 0x243   : > { %4075 = vst [vmem:[#allocation2 + $0x4c0] sm:$0xff] %v3332_v5  ;;  %v3334_v7 = vpop.f32.mrb[21].mxu1  ;;  %3933 = vst [vmem:[#allocation2 + $0x50] sm:$0xff] %v2764_v6  ;;  %v2766_v10 = vpop.f32.mrb[57].mxu0 }
 0x244   : > { %v3335_v12 = vpop.f32.mrb[22].mxu1  ;;  %v2767_v14 = vpop.f32.mrb[58].mxu0  ;;  %v5362_v10 = vld [vmem:[%s7102_s3 + $0x6c0] ss:$8 sps:$4 sm:$0xff]  }
 0x245   : > { %4076 = vst [vmem:[#allocation2 + $0x4c8] sm:$0xff] %v3335_v12  ;;  %v3337_v17 = vpop.f32.mrb[23].mxu1  ;;  %3934 = vst [vmem:[#allocation2 + $0x58] sm:$0xff] %v2767_v14  ;;  %v2769_v18 = vpop.f32.mrb[59].mxu0  ;;  %v5407_v12 = vld [vmem:[%s7102_s3 + $0x250] ss:$8 sps:$4 sm:$0xff]  }
 0x246   : > { %v5366_v14 = vld [vmem:[%s7102_s3 + $0x6d4] ss:$8 sps:$4 sm:$0xff]   ;;  %v5411_v17 = vld [vmem:[%s7102_s3 + $0x264] ss:$8 sps:$4 sm:$0xff]  }
 0x247   : > { %3547 = vmatmul.mubr.bf16.gmra.mrb[128].mxu1 %v5332_v8  ;;  %2979 = vmatmul.mubr.bf16.gmra.mrb[164].mxu0 %v5377_v11 }
 0x248   : > { %4878 = vmatprep.mubr.msk.bf16.mxu1 %vm2239_vm4, %v5336_v13  ;;  %4807 = vmatprep.mubr.msk.bf16.mxu0 %vm2239_vm4, %v5381_v15 }
 0x24a   : > { %v3340_v19 = vpop.f32.mrb[24].mxu1  ;;  %v2772_v20 = vpop.f32.mrb[60].mxu0 }
 0x24b   : > { %4077 = vst [vmem:[#allocation2 + $0x4d0] sm:$0xff] %v3340_v19  ;;  %v3342_v22 = vpop.f32.mrb[25].mxu1  ;;  %3935 = vst [vmem:[#allocation2 + $0x60] sm:$0xff] %v2772_v20  ;;  %v2774_v24 = vpop.f32.mrb[61].mxu0 }
 0x24c   : > { %v3343_v4 = vpop.f32.mrb[26].mxu1  ;;  %v2775_v28 = vpop.f32.mrb[62].mxu0  ;;  %v5368_v24 = vld [vmem:[%s7102_s3 + $0x6d0] ss:$8 sps:$4 sm:$0xff]  }
 0x24d   : > { %4078 = vst [vmem:[#allocation2 + $0x4d8] sm:$0xff] %v3343_v4  ;;  %v3345_v30 = vpop.f32.mrb[27].mxu1  ;;  %3936 = vst [vmem:[#allocation2 + $0x68] sm:$0xff] %v2775_v28  ;;  %v2777_v31 = vpop.f32.mrb[63].mxu0  ;;  %v5413_v4 = vld [vmem:[%s7102_s3 + $0x260] ss:$8 sps:$4 sm:$0xff]  }
 0x24e   : > { %v5372_v28 = vld [vmem:[%s7102_s3 + $0x6e4] ss:$8 sps:$4 sm:$0xff]   ;;  %v5417_v30 = vld [vmem:[%s7102_s3 + $0x274] ss:$8 sps:$4 sm:$0xff]  }
 0x24f   : > { %3555 = vmatmul.mubr.bf16.gmra.mrb[132].mxu1 %v5338_v23  ;;  %2987 = vmatmul.mubr.bf16.gmra.mrb[168].mxu0 %v5383_v25 }
 0x250   : > { %4879 = vmatprep.mubr.msk.bf16.mxu1 %vm2239_vm4, %v5342_v26  ;;  %4808 = vmatprep.mubr.msk.bf16.mxu0 %vm2239_vm4, %v5387_v29 }
 0x252   : > { %v3348_v32 = vpop.f32.mrb[28].mxu1  ;;  %v2780_v33 = vpop.f32.mrb[64].mxu0 }
 0x253   : > { %4079 = vst [vmem:[#allocation2 + $0x4e0] sm:$0xff] %v3348_v32  ;;  %v3350_v34 = vpop.f32.mrb[29].mxu1  ;;  %3937 = vst [vmem:[#allocation2 + $0x70] sm:$0xff] %v2780_v33  ;;  %v2782_v36 = vpop.f32.mrb[65].mxu0 }
 0x254   : > { %v3351_v39 = vpop.f32.mrb[30].mxu1  ;;  %v2783_v41 = vpop.f32.mrb[66].mxu0  ;;  %v5374_v36 = vld [vmem:[%s7102_s3 + $0x6e0] ss:$8 sps:$4 sm:$0xff]  }
 0x255   : > { %4080 = vst [vmem:[#allocation2 + $0x4e8] sm:$0xff] %v3351_v39  ;;  %v3353_v43 = vpop.f32.mrb[31].mxu1  ;;  %3938 = vst [vmem:[#allocation2 + $0x78] sm:$0xff] %v2783_v41  ;;  %v2785_v44 = vpop.f32.mrb[67].mxu0  ;;  %v5419_v39 = vld [vmem:[%s7102_s3 + $0x270] ss:$8 sps:$4 sm:$0xff]  }
 0x256   : > { %v5378_v41 = vld [vmem:[%s7102_s3 + $0x6f4] ss:$8 sps:$4 sm:$0xff]   ;;  %v5423_v43 = vld [vmem:[%s7102_s3 + $0x284] ss:$8 sps:$4 sm:$0xff]  }
 0x257   : > { %3563 = vmatmul.mubr.bf16.gmra.mrb[136].mxu1 %v5344_v35  ;;  %2995 = vmatmul.mubr.bf16.gmra.mrb[172].mxu0 %v5389_v38 }
 0x258   : > { %4880 = vmatprep.mubr.msk.bf16.mxu1 %vm2239_vm4, %v5348_v40  ;;  %4809 = vmatprep.mubr.msk.bf16.mxu0 %vm2239_vm4, %v5393_v42 }
 0x25a   : > { %v3356_v45 = vpop.f32.mrb[32].mxu1  ;;  %v2788_v46 = vpop.f32.mrb[68].mxu0 }
 0x25b   : > { %4081 = vst [vmem:[#allocation2 + $0x4f0] sm:$0xff] %v3356_v45  ;;  %v3358_v47 = vpop.f32.mrb[33].mxu1  ;;  %3939 = vst [vmem:[#allocation2 + $0x80] sm:$0xff] %v2788_v46  ;;  %v2790_v49 = vpop.f32.mrb[69].mxu0 }
 0x25c   : > { %v3359_v51 = vpop.f32.mrb[34].mxu1  ;;  %v2791_v53 = vpop.f32.mrb[70].mxu0  ;;  %v5380_v49 = vld [vmem:[%s7102_s3 + $0x6f0] ss:$8 sps:$4 sm:$0xff]  }
 0x25d   : > { %4082 = vst [vmem:[#allocation2 + $0x4f8] sm:$0xff] %v3359_v51  ;;  %v3361_v55 = vpop.f32.mrb[35].mxu1  ;;  %3940 = vst [vmem:[#allocation2 + $0x88] sm:$0xff] %v2791_v53  ;;  %v2793_v56 = vpop.f32.mrb[71].mxu0  ;;  %v5425_v51 = vld [vmem:[%s7102_s3 + $0x280] ss:$8 sps:$4 sm:$0xff]  }
 0x25e   : > { %v5384_v53 = vld [vmem:[%s7102_s3 + $0x704] ss:$8 sps:$4 sm:$0xff]   ;;  %v5429_v55 = vld [vmem:[%s7102_s3 + $0x294] ss:$8 sps:$4 sm:$0xff]  }
 0x25f   : > { %3571 = vmatmul.mubr.bf16.gmra.mrb[140].mxu1 %v5350_v48  ;;  %3003 = vmatmul.mubr.bf16.gmra.mrb[176].mxu0 %v5395_v50 }
 0x260   : > { %4881 = vmatprep.mubr.msk.bf16.mxu1 %vm2239_vm4, %v5354_v52  ;;  %4810 = vmatprep.mubr.msk.bf16.mxu0 %vm2239_vm4, %v5399_v54 }
 0x262   : > { %v3364_v57 = vpop.f32.mrb[36].mxu1  ;;  %v2796_v58 = vpop.f32.mrb[72].mxu0 }
 0x263   : > { %4083 = vst [vmem:[#allocation2 + $0x500] sm:$0xff] %v3364_v57  ;;  %v3366_v59 = vpop.f32.mrb[37].mxu1  ;;  %3941 = vst [vmem:[#allocation2 + $0x90] sm:$0xff] %v2796_v58  ;;  %v2798_v61 = vpop.f32.mrb[73].mxu0 }
 0x264   : > { %v3367_v63 = vpop.f32.mrb[38].mxu1  ;;  %v2799_v1 = vpop.f32.mrb[74].mxu0  ;;  %v5386_v61 = vld [vmem:[%s7102_s3 + $0x700] ss:$8 sps:$4 sm:$0xff]  }
 0x265   : > { %4084 = vst [vmem:[#allocation2 + $0x508] sm:$0xff] %v3367_v63  ;;  %v3369_v3 = vpop.f32.mrb[39].mxu1  ;;  %3942 = vst [vmem:[#allocation2 + $0x98] sm:$0xff] %v2799_v1  ;;  %v2801_v5 = vpop.f32.mrb[75].mxu0  ;;  %v5431_v63 = vld [vmem:[%s7102_s3 + $0x290] ss:$8 sps:$4 sm:$0xff]  }
 0x266   : > { %v5390_v1 = vld [vmem:[%s7102_s3 + $0x714] ss:$8 sps:$4 sm:$0xff]   ;;  %v5435_v3 = vld [vmem:[%s7102_s3 + $0x2a4] ss:$8 sps:$4 sm:$0xff]  }
 0x267   : > { %3579 = vmatmul.mubr.bf16.gmra.mrb[144].mxu1 %v5356_v60  ;;  %3011 = vmatmul.mubr.bf16.gmra.mrb[180].mxu0 %v5401_v62 }
 0x268   : > { %4882 = vmatprep.mubr.msk.bf16.mxu1 %vm2239_vm4, %v5360_v0  ;;  %4811 = vmatprep.mubr.msk.bf16.mxu0 %vm2239_vm4, %v5405_v2 }
 0x26a   : > { %v3372_v6 = vpop.f32.mrb[40].mxu1  ;;  %v2804_v7 = vpop.f32.mrb[76].mxu0 }
 0x26b   : > { %4085 = vst [vmem:[#allocation2 + $0x510] sm:$0xff] %v3372_v6  ;;  %v3374_v8 = vpop.f32.mrb[41].mxu1  ;;  %3943 = vst [vmem:[#allocation2 + $0xa0] sm:$0xff] %v2804_v7  ;;  %v2806_v11 = vpop.f32.mrb[77].mxu0 }
 0x26c   : > { %v3375_v13 = vpop.f32.mrb[42].mxu1  ;;  %v2807_v15 = vpop.f32.mrb[78].mxu0  ;;  %v5392_v11 = vld [vmem:[%s7102_s3 + $0x710] ss:$8 sps:$4 sm:$0xff]  }
 0x26d   : > { %4086 = vst [vmem:[#allocation2 + $0x518] sm:$0xff] %v3375_v13  ;;  %v3377_v18 = vpop.f32.mrb[43].mxu1  ;;  %3944 = vst [vmem:[#allocation2 + $0xa8] sm:$0xff] %v2807_v15  ;;  %v2809_v19 = vpop.f32.mrb[79].mxu0  ;;  %v5437_v13 = vld [vmem:[%s7102_s3 + $0x2a0] ss:$8 sps:$4 sm:$0xff]  }
 0x26e   : > { %v5396_v15 = vld [vmem:[%s7102_s3 + $0x724] ss:$8 sps:$4 sm:$0xff]   ;;  %v5441_v18 = vld [vmem:[%s7102_s3 + $0x2b4] ss:$8 sps:$4 sm:$0xff]  }
 0x26f   : > { %3587 = vmatmul.mubr.bf16.gmra.mrb[148].mxu1 %v5362_v10  ;;  %3019 = vmatmul.mubr.bf16.gmra.mrb[184].mxu0 %v5407_v12 }
 0x270   : > { %4883 = vmatprep.mubr.msk.bf16.mxu1 %vm2239_vm4, %v5366_v14  ;;  %4812 = vmatprep.mubr.msk.bf16.mxu0 %vm2239_vm4, %v5411_v17 }
 0x272   : > { %v3380_v20 = vpop.f32.mrb[44].mxu1  ;;  %v2812_v22 = vpop.f32.mrb[80].mxu0 }
 0x273   : > { %4087 = vst [vmem:[#allocation2 + $0x520] sm:$0xff] %v3380_v20  ;;  %v3382_v23 = vpop.f32.mrb[45].mxu1  ;;  %3945 = vst [vmem:[#allocation2 + $0xb0] sm:$0xff] %v2812_v22  ;;  %v2814_v25 = vpop.f32.mrb[81].mxu0 }
 0x274   : > { %v3383_v26 = vpop.f32.mrb[46].mxu1  ;;  %v2815_v29 = vpop.f32.mrb[82].mxu0  ;;  %v5398_v25 = vld [vmem:[%s7102_s3 + $0x720] ss:$8 sps:$4 sm:$0xff]  }
 0x275   : > { %4088 = vst [vmem:[#allocation2 + $0x528] sm:$0xff] %v3383_v26  ;;  %v3385_v31 = vpop.f32.mrb[47].mxu1  ;;  %3946 = vst [vmem:[#allocation2 + $0xb8] sm:$0xff] %v2815_v29  ;;  %v2817_v32 = vpop.f32.mrb[83].mxu0  ;;  %v5443_v26 = vld [vmem:[%s7102_s3 + $0x2b0] ss:$8 sps:$4 sm:$0xff]  }
 0x276   : > { %v5402_v29 = vld [vmem:[%s7102_s3 + $0x734] ss:$8 sps:$4 sm:$0xff]   ;;  %v5447_v31 = vld [vmem:[%s7102_s3 + $0x2c4] ss:$8 sps:$4 sm:$0xff]  }
 0x277   : > { %3595 = vmatmul.mubr.bf16.gmra.mrb[152].mxu1 %v5368_v24  ;;  %3027 = vmatmul.mubr.bf16.gmra.mrb[188].mxu0 %v5413_v4 }
 0x278   : > { %4884 = vmatprep.mubr.msk.bf16.mxu1 %vm2239_vm4, %v5372_v28  ;;  %4813 = vmatprep.mubr.msk.bf16.mxu0 %vm2239_vm4, %v5417_v30 }
 0x27a   : > { %v3388_v33 = vpop.f32.mrb[48].mxu1  ;;  %v2820_v34 = vpop.f32.mrb[84].mxu0 }
 0x27b   : > { %4089 = vst [vmem:[#allocation2 + $0x530] sm:$0xff] %v3388_v33  ;;  %v3390_v35 = vpop.f32.mrb[49].mxu1  ;;  %3947 = vst [vmem:[#allocation2 + $0xc0] sm:$0xff] %v2820_v34  ;;  %v2822_v38 = vpop.f32.mrb[85].mxu0 }
 0x27c   : > { %v3391_v40 = vpop.f32.mrb[50].mxu1  ;;  %v2823_v42 = vpop.f32.mrb[86].mxu0  ;;  %v5404_v38 = vld [vmem:[%s7102_s3 + $0x730] ss:$8 sps:$4 sm:$0xff]  }
 0x27d   : > { %4090 = vst [vmem:[#allocation2 + $0x538] sm:$0xff] %v3391_v40  ;;  %v3393_v44 = vpop.f32.mrb[51].mxu1  ;;  %3948 = vst [vmem:[#allocation2 + $0xc8] sm:$0xff] %v2823_v42  ;;  %v2825_v45 = vpop.f32.mrb[87].mxu0  ;;  %v5449_v40 = vld [vmem:[%s7102_s3 + $0x2c0] ss:$8 sps:$4 sm:$0xff]  }
 0x27e   : > { %v5408_v42 = vld [vmem:[%s7102_s3 + $0x744] ss:$8 sps:$4 sm:$0xff]   ;;  %v5453_v44 = vld [vmem:[%s7102_s3 + $0x2d4] ss:$8 sps:$4 sm:$0xff]  }
 0x27f   : > { %3603 = vmatmul.mubr.bf16.gmra.mrb[156].mxu1 %v5374_v36  ;;  %3035 = vmatmul.mubr.bf16.gmra.mrb[192].mxu0 %v5419_v39 }
 0x280   : > { %4885 = vmatprep.mubr.msk.bf16.mxu1 %vm2239_vm4, %v5378_v41  ;;  %4814 = vmatprep.mubr.msk.bf16.mxu0 %vm2239_vm4, %v5423_v43 }
 0x282   : > { %v3396_v46 = vpop.f32.mrb[52].mxu1  ;;  %v2828_v47 = vpop.f32.mrb[88].mxu0 }
 0x283   : > { %4091 = vst [vmem:[#allocation2 + $0x540] sm:$0xff] %v3396_v46  ;;  %v3398_v48 = vpop.f32.mrb[53].mxu1  ;;  %3949 = vst [vmem:[#allocation2 + $0xd0] sm:$0xff] %v2828_v47  ;;  %v2830_v50 = vpop.f32.mrb[89].mxu0 }
 0x284   : > { %v3399_v52 = vpop.f32.mrb[54].mxu1  ;;  %v2831_v54 = vpop.f32.mrb[90].mxu0  ;;  %v5410_v50 = vld [vmem:[%s7102_s3 + $0x740] ss:$8 sps:$4 sm:$0xff]  }
 0x285   : > { %4092 = vst [vmem:[#allocation2 + $0x548] sm:$0xff] %v3399_v52  ;;  %v3401_v56 = vpop.f32.mrb[55].mxu1  ;;  %3950 = vst [vmem:[#allocation2 + $0xd8] sm:$0xff] %v2831_v54  ;;  %v2833_v57 = vpop.f32.mrb[91].mxu0  ;;  %v5455_v52 = vld [vmem:[%s7102_s3 + $0x2d0] ss:$8 sps:$4 sm:$0xff]  }
 0x286   : > { %v5414_v54 = vld [vmem:[%s7102_s3 + $0x754] ss:$8 sps:$4 sm:$0xff]   ;;  %v5459_v56 = vld [vmem:[%s7102_s3 + $0x2e4] ss:$8 sps:$4 sm:$0xff]  }
 0x287   : > { %3611 = vmatmul.mubr.bf16.gmra.mrb[160].mxu1 %v5380_v49  ;;  %3043 = vmatmul.mubr.bf16.gmra.mrb[196].mxu0 %v5425_v51 }
 0x288   : > { %4886 = vmatprep.mubr.msk.bf16.mxu1 %vm2239_vm4, %v5384_v53  ;;  %4815 = vmatprep.mubr.msk.bf16.mxu0 %vm2239_vm4, %v5429_v55 }
 0x28a   : > { %v3404_v58 = vpop.f32.mrb[56].mxu1  ;;  %v2836_v59 = vpop.f32.mrb[92].mxu0 }
 0x28b   : > { %4093 = vst [vmem:[#allocation2 + $0x550] sm:$0xff] %v3404_v58  ;;  %v3406_v60 = vpop.f32.mrb[57].mxu1  ;;  %3951 = vst [vmem:[#allocation2 + $0xe0] sm:$0xff] %v2836_v59  ;;  %v2838_v62 = vpop.f32.mrb[93].mxu0 }
 0x28c   : > { %v3407_v0 = vpop.f32.mrb[58].mxu1  ;;  %v2839_v2 = vpop.f32.mrb[94].mxu0  ;;  %v5416_v62 = vld [vmem:[%s7102_s3 + $0x750] ss:$8 sps:$4 sm:$0xff]  }
 0x28d   : > { %4094 = vst [vmem:[#allocation2 + $0x558] sm:$0xff] %v3407_v0  ;;  %v3409_v5 = vpop.f32.mrb[59].mxu1  ;;  %3952 = vst [vmem:[#allocation2 + $0xe8] sm:$0xff] %v2839_v2  ;;  %v2841_v6 = vpop.f32.mrb[95].mxu0  ;;  %v5461_v0 = vld [vmem:[%s7102_s3 + $0x2e0] ss:$8 sps:$4 sm:$0xff]  }
 0x28e   : > { %v5420_v2 = vld [vmem:[%s7102_s3 + $0x764] ss:$8 sps:$4 sm:$0xff]   ;;  %v5465_v5 = vld [vmem:[%s7102_s3 + $0x2f4] ss:$8 sps:$4 sm:$0xff]  }
 0x28f   : > { %3619 = vmatmul.mubr.bf16.gmra.mrb[164].mxu1 %v5386_v61  ;;  %3051 = vmatmul.mubr.bf16.gmra.mrb[200].mxu0 %v5431_v63 }
 0x290   : > { %4887 = vmatprep.mubr.msk.bf16.mxu1 %vm2239_vm4, %v5390_v1  ;;  %4816 = vmatprep.mubr.msk.bf16.mxu0 %vm2239_vm4, %v5435_v3 }
 0x292   : > { %v3412_v7 = vpop.f32.mrb[60].mxu1  ;;  %v2844_v8 = vpop.f32.mrb[96].mxu0 }
 0x293   : > { %4095 = vst [vmem:[#allocation2 + $0x560] sm:$0xff] %v3412_v7  ;;  %v3414_v10 = vpop.f32.mrb[61].mxu1  ;;  %3953 = vst [vmem:[#allocation2 + $0xf0] sm:$0xff] %v2844_v8  ;;  %v2846_v12 = vpop.f32.mrb[97].mxu0 }
 0x294   : > { %v3415_v14 = vpop.f32.mrb[62].mxu1  ;;  %v2847_v17 = vpop.f32.mrb[98].mxu0  ;;  %v5422_v12 = vld [vmem:[%s7102_s3 + $0x760] ss:$8 sps:$4 sm:$0xff]  }
 0x295   : > { %4096 = vst [vmem:[#allocation2 + $0x568] sm:$0xff] %v3415_v14  ;;  %v3417_v19 = vpop.f32.mrb[63].mxu1  ;;  %3954 = vst [vmem:[#allocation2 + $0xf8] sm:$0xff] %v2847_v17  ;;  %v2849_v20 = vpop.f32.mrb[99].mxu0  ;;  %v5467_v14 = vld [vmem:[%s7102_s3 + $0x2f0] ss:$8 sps:$4 sm:$0xff]  }
 0x296   : > { %v5426_v17 = vld [vmem:[%s7102_s3 + $0x774] ss:$8 sps:$4 sm:$0xff]   ;;  %v5471_v19 = vld [vmem:[%s7102_s3 + $0x304] ss:$8 sps:$4 sm:$0xff]  }
 0x297   : > { %3627 = vmatmul.mubr.bf16.gmra.mrb[168].mxu1 %v5392_v11  ;;  %3059 = vmatmul.mubr.bf16.gmra.mrb[204].mxu0 %v5437_v13 }
 0x298   : > { %4888 = vmatprep.mubr.msk.bf16.mxu1 %vm2239_vm4, %v5396_v15  ;;  %4817 = vmatprep.mubr.msk.bf16.mxu0 %vm2239_vm4, %v5441_v18 }
 0x29a   : > { %v3420_v22 = vpop.f32.mrb[64].mxu1  ;;  %v2852_v23 = vpop.f32.mrb[100].mxu0 }
 0x29b   : > { %4097 = vst [vmem:[#allocation2 + $0x570] sm:$0xff] %v3420_v22  ;;  %v3422_v24 = vpop.f32.mrb[65].mxu1  ;;  %3955 = vst [vmem:[#allocation2 + $0x100] sm:$0xff] %v2852_v23  ;;  %v2854_v4 = vpop.f32.mrb[101].mxu0 }
 0x29c   : > { %v3423_v28 = vpop.f32.mrb[66].mxu1  ;;  %v2855_v30 = vpop.f32.mrb[102].mxu0  ;;  %v5428_v4 = vld [vmem:[%s7102_s3 + $0x770] ss:$8 sps:$4 sm:$0xff]  }
 0x29d   : > { %4098 = vst [vmem:[#allocation2 + $0x578] sm:$0xff] %v3423_v28  ;;  %v3425_v32 = vpop.f32.mrb[67].mxu1  ;;  %3956 = vst [vmem:[#allocation2 + $0x108] sm:$0xff] %v2855_v30  ;;  %v2857_v33 = vpop.f32.mrb[103].mxu0  ;;  %v5473_v28 = vld [vmem:[%s7102_s3 + $0x300] ss:$8 sps:$4 sm:$0xff]  }
 0x29e   : > { %v5432_v30 = vld [vmem:[%s7102_s3 + $0x784] ss:$8 sps:$4 sm:$0xff]   ;;  %v5477_v32 = vld [vmem:[%s7102_s3 + $0x314] ss:$8 sps:$4 sm:$0xff]  }
 0x29f   : > { %3635 = vmatmul.mubr.bf16.gmra.mrb[172].mxu1 %v5398_v25  ;;  %3067 = vmatmul.mubr.bf16.gmra.mrb[208].mxu0 %v5443_v26 }
 0x2a0   : > { %4889 = vmatprep.mubr.msk.bf16.mxu1 %vm2239_vm4, %v5402_v29  ;;  %4818 = vmatprep.mubr.msk.bf16.mxu0 %vm2239_vm4, %v5447_v31 }
 0x2a2   : > { %v3428_v34 = vpop.f32.mrb[68].mxu1  ;;  %v2860_v35 = vpop.f32.mrb[104].mxu0 }
 0x2a3   : > { %4099 = vst [vmem:[#allocation2 + $0x580] sm:$0xff] %v3428_v34  ;;  %v3430_v36 = vpop.f32.mrb[69].mxu1  ;;  %3957 = vst [vmem:[#allocation2 + $0x110] sm:$0xff] %v2860_v35  ;;  %v2862_v39 = vpop.f32.mrb[105].mxu0 }
 0x2a4   : > { %v3431_v41 = vpop.f32.mrb[70].mxu1  ;;  %v2863_v43 = vpop.f32.mrb[106].mxu0  ;;  %v5434_v39 = vld [vmem:[%s7102_s3 + $0x780] ss:$8 sps:$4 sm:$0xff]  }
 0x2a5   : > { %4100 = vst [vmem:[#allocation2 + $0x588] sm:$0xff] %v3431_v41  ;;  %v3433_v45 = vpop.f32.mrb[71].mxu1  ;;  %3958 = vst [vmem:[#allocation2 + $0x118] sm:$0xff] %v2863_v43  ;;  %v2865_v46 = vpop.f32.mrb[107].mxu0  ;;  %v5479_v41 = vld [vmem:[%s7102_s3 + $0x310] ss:$8 sps:$4 sm:$0xff]  }
 0x2a6   : > { %v5438_v43 = vld [vmem:[%s7102_s3 + $0x794] ss:$8 sps:$4 sm:$0xff]   ;;  %v5483_v45 = vld [vmem:[%s7102_s3 + $0x324] ss:$8 sps:$4 sm:$0xff]  }
 0x2a7   : > { %3643 = vmatmul.mubr.bf16.gmra.mrb[176].mxu1 %v5404_v38  ;;  %3075 = vmatmul.mubr.bf16.gmra.mrb[212].mxu0 %v5449_v40 }
 0x2a8   : > { %4890 = vmatprep.mubr.msk.bf16.mxu1 %vm2239_vm4, %v5408_v42  ;;  %4819 = vmatprep.mubr.msk.bf16.mxu0 %vm2239_vm4, %v5453_v44 }
 0x2aa   : > { %v3436_v47 = vpop.f32.mrb[72].mxu1  ;;  %v2868_v48 = vpop.f32.mrb[108].mxu0 }
 0x2ab   : > { %4101 = vst [vmem:[#allocation2 + $0x590] sm:$0xff] %v3436_v47  ;;  %v3438_v49 = vpop.f32.mrb[73].mxu1  ;;  %3959 = vst [vmem:[#allocation2 + $0x120] sm:$0xff] %v2868_v48  ;;  %v2870_v51 = vpop.f32.mrb[109].mxu0 }
 0x2ac   : > { %v3439_v53 = vpop.f32.mrb[74].mxu1  ;;  %v2871_v55 = vpop.f32.mrb[110].mxu0  ;;  %v5440_v51 = vld [vmem:[%s7102_s3 + $0x790] ss:$8 sps:$4 sm:$0xff]  }
 0x2ad   : > { %4102 = vst [vmem:[#allocation2 + $0x598] sm:$0xff] %v3439_v53  ;;  %v3441_v57 = vpop.f32.mrb[75].mxu1  ;;  %3960 = vst [vmem:[#allocation2 + $0x128] sm:$0xff] %v2871_v55  ;;  %v2873_v58 = vpop.f32.mrb[111].mxu0  ;;  %v5485_v53 = vld [vmem:[%s7102_s3 + $0x320] ss:$8 sps:$4 sm:$0xff]  }
 0x2ae   : > { %v5444_v55 = vld [vmem:[%s7102_s3 + $0x7a4] ss:$8 sps:$4 sm:$0xff]   ;;  %v5489_v57 = vld [vmem:[%s7102_s3 + $0x334] ss:$8 sps:$4 sm:$0xff]  }
 0x2af   : > { %3651 = vmatmul.mubr.bf16.gmra.mrb[180].mxu1 %v5410_v50  ;;  %3083 = vmatmul.mubr.bf16.gmra.mrb[216].mxu0 %v5455_v52 }
 0x2b0   : > { %4891 = vmatprep.mubr.msk.bf16.mxu1 %vm2239_vm4, %v5414_v54  ;;  %4820 = vmatprep.mubr.msk.bf16.mxu0 %vm2239_vm4, %v5459_v56 }
 0x2b2   : > { %v3444_v59 = vpop.f32.mrb[76].mxu1  ;;  %v2876_v60 = vpop.f32.mrb[112].mxu0 }
 0x2b3   : > { %4103 = vst [vmem:[#allocation2 + $0x5a0] sm:$0xff] %v3444_v59  ;;  %v3446_v61 = vpop.f32.mrb[77].mxu1  ;;  %3961 = vst [vmem:[#allocation2 + $0x130] sm:$0xff] %v2876_v60  ;;  %v2878_v63 = vpop.f32.mrb[113].mxu0 }
 0x2b4   : > { %v3447_v1 = vpop.f32.mrb[78].mxu1  ;;  %v2879_v3 = vpop.f32.mrb[114].mxu0  ;;  %v5446_v63 = vld [vmem:[%s7102_s3 + $0x7a0] ss:$8 sps:$4 sm:$0xff]  }
 0x2b5   : > { %4104 = vst [vmem:[#allocation2 + $0x5a8] sm:$0xff] %v3447_v1  ;;  %v3449_v6 = vpop.f32.mrb[79].mxu1  ;;  %3962 = vst [vmem:[#allocation2 + $0x138] sm:$0xff] %v2879_v3  ;;  %v2881_v7 = vpop.f32.mrb[115].mxu0  ;;  %v5491_v1 = vld [vmem:[%s7102_s3 + $0x330] ss:$8 sps:$4 sm:$0xff]  }
 0x2b6   : > { %v5450_v3 = vld [vmem:[%s7102_s3 + $0x7b4] ss:$8 sps:$4 sm:$0xff]   ;;  %v5495_v6 = vld [vmem:[%s7102_s3 + $0x344] ss:$8 sps:$4 sm:$0xff]  }
 0x2b7   : > { %3659 = vmatmul.mubr.bf16.gmra.mrb[184].mxu1 %v5416_v62  ;;  %3091 = vmatmul.mubr.bf16.gmra.mrb[220].mxu0 %v5461_v0 }
 0x2b8   : > { %4892 = vmatprep.mubr.msk.bf16.mxu1 %vm2239_vm4, %v5420_v2  ;;  %4821 = vmatprep.mubr.msk.bf16.mxu0 %vm2239_vm4, %v5465_v5 }
 0x2ba   : > { %v3452_v8 = vpop.f32.mrb[80].mxu1  ;;  %v2884_v10 = vpop.f32.mrb[116].mxu0 }
 0x2bb   : > { %4105 = vst [vmem:[#allocation2 + $0x5b0] sm:$0xff] %v3452_v8  ;;  %v3454_v11 = vpop.f32.mrb[81].mxu1  ;;  %3963 = vst [vmem:[#allocation2 + $0x140] sm:$0xff] %v2884_v10  ;;  %v2886_v13 = vpop.f32.mrb[117].mxu0 }
 0x2bc   : > { %v3455_v15 = vpop.f32.mrb[82].mxu1  ;;  %v2887_v18 = vpop.f32.mrb[118].mxu0  ;;  %v5452_v13 = vld [vmem:[%s7102_s3 + $0x7b0] ss:$8 sps:$4 sm:$0xff]  }
 0x2bd   : > { %4106 = vst [vmem:[#allocation2 + $0x5b8] sm:$0xff] %v3455_v15  ;;  %v3457_v20 = vpop.f32.mrb[83].mxu1  ;;  %3964 = vst [vmem:[#allocation2 + $0x148] sm:$0xff] %v2887_v18  ;;  %v2889_v22 = vpop.f32.mrb[119].mxu0  ;;  %v5497_v15 = vld [vmem:[%s7102_s3 + $0x340] ss:$8 sps:$4 sm:$0xff]  }
 0x2be   : > { %v5456_v18 = vld [vmem:[%s7102_s3 + $0x7c4] ss:$8 sps:$4 sm:$0xff]   ;;  %v5501_v20 = vld [vmem:[%s7102_s3 + $0x354] ss:$8 sps:$4 sm:$0xff]  }
 0x2bf   : > { %3667 = vmatmul.mubr.bf16.gmra.mrb[188].mxu1 %v5422_v12  ;;  %3099 = vmatmul.mubr.bf16.gmra.mrb[224].mxu0 %v5467_v14 }
 0x2c0   : > { %4893 = vmatprep.mubr.msk.bf16.mxu1 %vm2239_vm4, %v5426_v17  ;;  %4822 = vmatprep.mubr.msk.bf16.mxu0 %vm2239_vm4, %v5471_v19 }
 0x2c2   : > { %v3460_v23 = vpop.f32.mrb[84].mxu1  ;;  %v2892_v24 = vpop.f32.mrb[120].mxu0 }
 0x2c3   : > { %4107 = vst [vmem:[#allocation2 + $0x5c0] sm:$0xff] %v3460_v23  ;;  %v3462_v25 = vpop.f32.mrb[85].mxu1  ;;  %3965 = vst [vmem:[#allocation2 + $0x150] sm:$0xff] %v2892_v24  ;;  %v2894_v26 = vpop.f32.mrb[121].mxu0 }
 0x2c4   : > { %v3463_v29 = vpop.f32.mrb[86].mxu1  ;;  %v2895_v31 = vpop.f32.mrb[122].mxu0  ;;  %v5458_v26 = vld [vmem:[%s7102_s3 + $0x7c0] ss:$8 sps:$4 sm:$0xff]  }
 0x2c5   : > { %4108 = vst [vmem:[#allocation2 + $0x5c8] sm:$0xff] %v3463_v29  ;;  %v3465_v33 = vpop.f32.mrb[87].mxu1  ;;  %3966 = vst [vmem:[#allocation2 + $0x158] sm:$0xff] %v2895_v31  ;;  %v2897_v34 = vpop.f32.mrb[123].mxu0  ;;  %v5503_v29 = vld [vmem:[%s7102_s3 + $0x350] ss:$8 sps:$4 sm:$0xff]  }
 0x2c6   : > { %v5462_v31 = vld [vmem:[%s7102_s3 + $0x7d4] ss:$8 sps:$4 sm:$0xff]   ;;  %v5507_v33 = vld [vmem:[%s7102_s3 + $0x364] ss:$8 sps:$4 sm:$0xff]  }
 0x2c7   : > { %3675 = vmatmul.mubr.bf16.gmra.mrb[192].mxu1 %v5428_v4  ;;  %3107 = vmatmul.mubr.bf16.gmra.mrb[228].mxu0 %v5473_v28 }
 0x2c8   : > { %4894 = vmatprep.mubr.msk.bf16.mxu1 %vm2239_vm4, %v5432_v30  ;;  %4823 = vmatprep.mubr.msk.bf16.mxu0 %vm2239_vm4, %v5477_v32 }
 0x2ca   : > { %v3468_v35 = vpop.f32.mrb[88].mxu1  ;;  %v2900_v36 = vpop.f32.mrb[124].mxu0 }
 0x2cb   : > { %4109 = vst [vmem:[#allocation2 + $0x5d0] sm:$0xff] %v3468_v35  ;;  %v3470_v38 = vpop.f32.mrb[89].mxu1  ;;  %3967 = vst [vmem:[#allocation2 + $0x160] sm:$0xff] %v2900_v36  ;;  %v2902_v40 = vpop.f32.mrb[125].mxu0 }
 0x2cc   : > { %v3471_v42 = vpop.f32.mrb[90].mxu1  ;;  %v2903_v44 = vpop.f32.mrb[126].mxu0  ;;  %v5464_v40 = vld [vmem:[%s7102_s3 + $0x7d0] ss:$8 sps:$4 sm:$0xff]  }
 0x2cd   : > { %4110 = vst [vmem:[#allocation2 + $0x5d8] sm:$0xff] %v3471_v42  ;;  %v3473_v46 = vpop.f32.mrb[91].mxu1  ;;  %3968 = vst [vmem:[#allocation2 + $0x168] sm:$0xff] %v2903_v44  ;;  %v2905_v47 = vpop.f32.mrb[127].mxu0  ;;  %v5509_v42 = vld [vmem:[%s7102_s3 + $0x360] ss:$8 sps:$4 sm:$0xff]  }
 0x2ce   : > { %v5468_v44 = vld [vmem:[%s7102_s3 + $0x7e4] ss:$8 sps:$4 sm:$0xff]   ;;  %v5515_v46 = vld [vmem:[%s7102_s3 + $0x374] ss:$8 sps:$4 sm:$0xff]  }
 0x2cf   : > { %3683 = vmatmul.mubr.bf16.gmra.mrb[196].mxu1 %v5434_v39  ;;  %3115 = vmatmul.mubr.bf16.gmra.mrb[232].mxu0 %v5479_v41 }
 0x2d0   : > { %4895 = vmatprep.mubr.msk.bf16.mxu1 %vm2239_vm4, %v5438_v43  ;;  %4824 = vmatprep.mubr.msk.bf16.mxu0 %vm2239_vm4, %v5483_v45 }
 0x2d2   : > { %v3476_v48 = vpop.f32.mrb[92].mxu1  ;;  %v2908_v49 = vpop.f32.mrb[128].mxu0 }
 0x2d3   : > { %4111 = vst [vmem:[#allocation2 + $0x5e0] sm:$0xff] %v3476_v48  ;;  %v3478_v50 = vpop.f32.mrb[93].mxu1  ;;  %3969 = vst [vmem:[#allocation2 + $0x170] sm:$0xff] %v2908_v49  ;;  %v2910_v52 = vpop.f32.mrb[129].mxu0 }
 0x2d4   : > { %v3479_v54 = vpop.f32.mrb[94].mxu1  ;;  %v2911_v56 = vpop.f32.mrb[130].mxu0  ;;  %v5470_v52 = vld [vmem:[%s7102_s3 + $0x7e0] ss:$8 sps:$4 sm:$0xff]  }
 0x2d5   : > { %4112 = vst [vmem:[#allocation2 + $0x5e8] sm:$0xff] %v3479_v54  ;;  %v3481_v58 = vpop.f32.mrb[95].mxu1  ;;  %3970 = vst [vmem:[#allocation2 + $0x178] sm:$0xff] %v2911_v56  ;;  %v2913_v59 = vpop.f32.mrb[131].mxu0  ;;  %v5513_v54 = vld [vmem:[%s7102_s3 + $0x370] ss:$8 sps:$4 sm:$0xff]  }
 0x2d6   : > { %v5474_v56 = vld [vmem:[%s7102_s3 + $0x7f4] ss:$8 sps:$4 sm:$0xff]   ;;  %v5521_v58 = vld [vmem:[%s7102_s3 + $0x384] ss:$8 sps:$4 sm:$0xff]  }
 0x2d7   : > { %3691 = vmatmul.mubr.bf16.gmra.mrb[200].mxu1 %v5440_v51  ;;  %3123 = vmatmul.mubr.bf16.gmra.mrb[236].mxu0 %v5485_v53 }
 0x2d8   : > { %4896 = vmatprep.mubr.msk.bf16.mxu1 %vm2239_vm4, %v5444_v55  ;;  %4825 = vmatprep.mubr.msk.bf16.mxu0 %vm2239_vm4, %v5489_v57 }
 0x2da   : > { %v3484_v60 = vpop.f32.mrb[96].mxu1  ;;  %v2916_v61 = vpop.f32.mrb[132].mxu0 }
 0x2db   : > { %4113 = vst [vmem:[#allocation2 + $0x5f0] sm:$0xff] %v3484_v60  ;;  %v3486_v62 = vpop.f32.mrb[97].mxu1  ;;  %3971 = vst [vmem:[#allocation2 + $0x180] sm:$0xff] %v2916_v61  ;;  %v2918_v0 = vpop.f32.mrb[133].mxu0 }
 0x2dc   : > { %v3487_v2 = vpop.f32.mrb[98].mxu1  ;;  %v2919_v5 = vpop.f32.mrb[134].mxu0  ;;  %v5476_v0 = vld [vmem:[%s7102_s3 + $0x7f0] ss:$8 sps:$4 sm:$0xff]  }
 0x2dd   : > { %4114 = vst [vmem:[#allocation2 + $0x5f8] sm:$0xff] %v3487_v2  ;;  %v3489_v7 = vpop.f32.mrb[99].mxu1  ;;  %3972 = vst [vmem:[#allocation2 + $0x188] sm:$0xff] %v2919_v5  ;;  %v2921_v8 = vpop.f32.mrb[135].mxu0  ;;  %v5519_v2 = vld [vmem:[%s7102_s3 + $0x380] ss:$8 sps:$4 sm:$0xff]  }
 0x2de   : > { %v5480_v5 = vld [vmem:[%s7102_s3 + $0x804] ss:$8 sps:$4 sm:$0xff]   ;;  %v5527_v7 = vld [vmem:[%s7102_s3 + $0x394] ss:$8 sps:$4 sm:$0xff]  }
 0x2df   : > { %3699 = vmatmul.mubr.bf16.gmra.mrb[204].mxu1 %v5446_v63  ;;  %3131 = vmatmul.mubr.bf16.gmra.mrb[240].mxu0 %v5491_v1 }
 0x2e0   : > { %4897 = vmatprep.mubr.msk.bf16.mxu1 %vm2239_vm4, %v5450_v3  ;;  %4826 = vmatprep.mubr.msk.bf16.mxu0 %vm2239_vm4, %v5495_v6 }
 0x2e2   : > { %v3492_v10 = vpop.f32.mrb[100].mxu1  ;;  %v2924_v11 = vpop.f32.mrb[136].mxu0 }
 0x2e3   : > { %4115 = vst [vmem:[#allocation2 + $0x600] sm:$0xff] %v3492_v10  ;;  %v3494_v12 = vpop.f32.mrb[101].mxu1  ;;  %3973 = vst [vmem:[#allocation2 + $0x190] sm:$0xff] %v2924_v11  ;;  %v2926_v14 = vpop.f32.mrb[137].mxu0 }
 0x2e4   : > { %v3495_v17 = vpop.f32.mrb[102].mxu1  ;;  %v2927_v19 = vpop.f32.mrb[138].mxu0  ;;  %v5482_v14 = vld [vmem:[%s7102_s3 + $0x800] ss:$8 sps:$4 sm:$0xff]  }
 0x2e5   : > { %4116 = vst [vmem:[#allocation2 + $0x608] sm:$0xff] %v3495_v17  ;;  %v3497_v22 = vpop.f32.mrb[103].mxu1  ;;  %3974 = vst [vmem:[#allocation2 + $0x198] sm:$0xff] %v2927_v19  ;;  %v2929_v23 = vpop.f32.mrb[139].mxu0  ;;  %v5525_v17 = vld [vmem:[%s7102_s3 + $0x390] ss:$8 sps:$4 sm:$0xff]  }
 0x2e6   : > { %v5486_v19 = vld [vmem:[%s7102_s3 + $0x814] ss:$8 sps:$4 sm:$0xff]   ;;  %v5533_v22 = vld [vmem:[%s7102_s3 + $0x3a4] ss:$8 sps:$4 sm:$0xff]  }
 0x2e7   : > { %3707 = vmatmul.mubr.bf16.gmra.mrb[208].mxu1 %v5452_v13  ;;  %3139 = vmatmul.mubr.bf16.gmra.mrb[244].mxu0 %v5497_v15 }
 0x2e8   : > { %4898 = vmatprep.mubr.msk.bf16.mxu1 %vm2239_vm4, %v5456_v18  ;;  %4827 = vmatprep.mubr.msk.bf16.mxu0 %vm2239_vm4, %v5501_v20 }
 0x2ea   : > { %v3500_v24 = vpop.f32.mrb[104].mxu1  ;;  %v2932_v25 = vpop.f32.mrb[140].mxu0 }
 0x2eb   : > { %4117 = vst [vmem:[#allocation2 + $0x610] sm:$0xff] %v3500_v24  ;;  %v3502_v4 = vpop.f32.mrb[105].mxu1  ;;  %3975 = vst [vmem:[#allocation2 + $0x1a0] sm:$0xff] %v2932_v25  ;;  %v2934_v28 = vpop.f32.mrb[141].mxu0 }
 0x2ec   : > { %v3503_v30 = vpop.f32.mrb[106].mxu1  ;;  %v2935_v32 = vpop.f32.mrb[142].mxu0  ;;  %v5488_v28 = vld [vmem:[%s7102_s3 + $0x810] ss:$8 sps:$4 sm:$0xff]  }
 0x2ed   : > { %4118 = vst [vmem:[#allocation2 + $0x618] sm:$0xff] %v3503_v30  ;;  %v3505_v34 = vpop.f32.mrb[107].mxu1  ;;  %3976 = vst [vmem:[#allocation2 + $0x1a8] sm:$0xff] %v2935_v32  ;;  %v2937_v35 = vpop.f32.mrb[143].mxu0  ;;  %v5531_v30 = vld [vmem:[%s7102_s3 + $0x3a0] ss:$8 sps:$4 sm:$0xff]  }
 0x2ee   : > { %v5492_v32 = vld [vmem:[%s7102_s3 + $0x824] ss:$8 sps:$4 sm:$0xff]   ;;  %v5539_v34 = vld [vmem:[%s7102_s3 + $0x3b4] ss:$8 sps:$4 sm:$0xff]  }
 0x2ef   : > { %3715 = vmatmul.mubr.bf16.gmra.mrb[212].mxu1 %v5458_v26  ;;  %3147 = vmatmul.mubr.bf16.gmra.mrb[248].mxu0 %v5503_v29 }
 0x2f0   : > { %4899 = vmatprep.mubr.msk.bf16.mxu1 %vm2239_vm4, %v5462_v31  ;;  %4828 = vmatprep.mubr.msk.bf16.mxu0 %vm2239_vm4, %v5507_v33 }
 0x2f2   : > { %v3508_v36 = vpop.f32.mrb[108].mxu1  ;;  %v2940_v38 = vpop.f32.mrb[144].mxu0 }
 0x2f3   : > { %4119 = vst [vmem:[#allocation2 + $0x620] sm:$0xff] %v3508_v36  ;;  %v3510_v39 = vpop.f32.mrb[109].mxu1  ;;  %3977 = vst [vmem:[#allocation2 + $0x1b0] sm:$0xff] %v2940_v38  ;;  %v2942_v41 = vpop.f32.mrb[145].mxu0 }
 0x2f4   : > { %v3511_v43 = vpop.f32.mrb[110].mxu1  ;;  %v2943_v45 = vpop.f32.mrb[146].mxu0  ;;  %v5494_v41 = vld [vmem:[%s7102_s3 + $0x820] ss:$8 sps:$4 sm:$0xff]  }
 0x2f5   : > { %4120 = vst [vmem:[#allocation2 + $0x628] sm:$0xff] %v3511_v43  ;;  %v3513_v47 = vpop.f32.mrb[111].mxu1  ;;  %3978 = vst [vmem:[#allocation2 + $0x1b8] sm:$0xff] %v2943_v45  ;;  %v2945_v48 = vpop.f32.mrb[147].mxu0  ;;  %v5537_v43 = vld [vmem:[%s7102_s3 + $0x3b0] ss:$8 sps:$4 sm:$0xff]  }
 0x2f6   : > { %v5498_v45 = vld [vmem:[%s7102_s3 + $0x834] ss:$8 sps:$4 sm:$0xff]   ;;  %v5545_v47 = vld [vmem:[%s7102_s3 + $0x3c4] ss:$8 sps:$4 sm:$0xff]  }
 0x2f7   : > { %3723 = vmatmul.mubr.bf16.gmra.mrb[216].mxu1 %v5464_v40  ;;  %3155 = vmatmul.mubr.bf16.gmra.mrb[252].mxu0 %v5509_v42 }
 0x2f8   : > { %4900 = vmatprep.mubr.msk.bf16.mxu1 %vm2239_vm4, %v5468_v44  ;;  %4829 = vmatprep.mubr.msk.bf16.mxu0 %vm2239_vm4, %v5515_v46 }
 0x2fa   : > { %v3516_v49 = vpop.f32.mrb[112].mxu1  ;;  %v2948_v50 = vpop.f32.mrb[148].mxu0 }
 0x2fb   : > { %4121 = vst [vmem:[#allocation2 + $0x630] sm:$0xff] %v3516_v49  ;;  %v3518_v51 = vpop.f32.mrb[113].mxu1  ;;  %3979 = vst [vmem:[#allocation2 + $0x1c0] sm:$0xff] %v2948_v50  ;;  %v2950_v53 = vpop.f32.mrb[149].mxu0 }
 0x2fc   : > { %v3519_v55 = vpop.f32.mrb[114].mxu1  ;;  %v2951_v57 = vpop.f32.mrb[150].mxu0  ;;  %v5500_v53 = vld [vmem:[%s7102_s3 + $0x830] ss:$8 sps:$4 sm:$0xff]  }
 0x2fd   : > { %4122 = vst [vmem:[#allocation2 + $0x638] sm:$0xff] %v3519_v55  ;;  %v3521_v59 = vpop.f32.mrb[115].mxu1  ;;  %3980 = vst [vmem:[#allocation2 + $0x1c8] sm:$0xff] %v2951_v57  ;;  %v2953_v60 = vpop.f32.mrb[151].mxu0  ;;  %v5543_v55 = vld [vmem:[%s7102_s3 + $0x3c0] ss:$8 sps:$4 sm:$0xff]  }
 0x2fe   : > { %v5504_v57 = vld [vmem:[%s7102_s3 + $0x844] ss:$8 sps:$4 sm:$0xff]   ;;  %v5551_v59 = vld [vmem:[%s7102_s3 + $0x3d4] ss:$8 sps:$4 sm:$0xff]  }
 0x2ff   : > { %3731 = vmatmul.mubr.bf16.gmra.mrb[220].mxu1 %v5470_v52  ;;  %3163 = vmatmul.mubr.bf16.gmra.mrb[0].mxu0 %v5513_v54 }
 0x300   : > { %4901 = vmatprep.mubr.msk.bf16.mxu1 %vm2239_vm4, %v5474_v56  ;;  %4830 = vmatprep.mubr.msk.bf16.mxu0 %vm2239_vm4, %v5521_v58 }
 0x302   : > { %v3524_v61 = vpop.f32.mrb[116].mxu1  ;;  %v2956_v62 = vpop.f32.mrb[152].mxu0 }
 0x303   : > { %4123 = vst [vmem:[#allocation2 + $0x640] sm:$0xff] %v3524_v61  ;;  %v3526_v63 = vpop.f32.mrb[117].mxu1  ;;  %3981 = vst [vmem:[#allocation2 + $0x1d0] sm:$0xff] %v2956_v62  ;;  %v2958_v1 = vpop.f32.mrb[153].mxu0 }
 0x304   : > { %v3527_v3 = vpop.f32.mrb[118].mxu1  ;;  %v2959_v6 = vpop.f32.mrb[154].mxu0  ;;  %v5506_v1 = vld [vmem:[%s7102_s3 + $0x840] ss:$8 sps:$4 sm:$0xff]  }
 0x305   : > { %4124 = vst [vmem:[#allocation2 + $0x648] sm:$0xff] %v3527_v3  ;;  %v3529_v8 = vpop.f32.mrb[119].mxu1  ;;  %3982 = vst [vmem:[#allocation2 + $0x1d8] sm:$0xff] %v2959_v6  ;;  %v2961_v10 = vpop.f32.mrb[155].mxu0  ;;  %v5549_v3 = vld [vmem:[%s7102_s3 + $0x3d0] ss:$8 sps:$4 sm:$0xff]  }
 0x306   : > { %v5510_v6 = vld [vmem:[%s7102_s3 + $0x854] ss:$8 sps:$4 sm:$0xff]   ;;  %v5557_v8 = vld [vmem:[%s7102_s3 + $0x3e4] ss:$8 sps:$4 sm:$0xff]  }
 0x307   : > { %3739 = vmatmul.mubr.bf16.gmra.mrb[224].mxu1 %v5476_v0  ;;  %3171 = vmatmul.mubr.bf16.gmra.mrb[4].mxu0 %v5519_v2 }
 0x308   : > { %4902 = vmatprep.mubr.msk.bf16.mxu1 %vm2239_vm4, %v5480_v5  ;;  %4831 = vmatprep.mubr.msk.bf16.mxu0 %vm2239_vm4, %v5527_v7 }
 0x30a   : > { %v3532_v11 = vpop.f32.mrb[120].mxu1  ;;  %v2964_v12 = vpop.f32.mrb[156].mxu0 }
 0x30b   : > { %4125 = vst [vmem:[#allocation2 + $0x650] sm:$0xff] %v3532_v11  ;;  %v3534_v13 = vpop.f32.mrb[121].mxu1  ;;  %3983 = vst [vmem:[#allocation2 + $0x1e0] sm:$0xff] %v2964_v12  ;;  %v2966_v15 = vpop.f32.mrb[157].mxu0 }
 0x30c   : > { %v3535_v18 = vpop.f32.mrb[122].mxu1  ;;  %v2967_v20 = vpop.f32.mrb[158].mxu0  ;;  %v5512_v15 = vld [vmem:[%s7102_s3 + $0x850] ss:$8 sps:$4 sm:$0xff]  }
 0x30d   : > { %4126 = vst [vmem:[#allocation2 + $0x658] sm:$0xff] %v3535_v18  ;;  %v3537_v23 = vpop.f32.mrb[123].mxu1  ;;  %3984 = vst [vmem:[#allocation2 + $0x1e8] sm:$0xff] %v2967_v20  ;;  %v2969_v24 = vpop.f32.mrb[159].mxu0  ;;  %v5555_v18 = vld [vmem:[%s7102_s3 + $0x3e0] ss:$8 sps:$4 sm:$0xff]  }
 0x30e   : > { %v5516_v20 = vld [vmem:[%s7102_s3 + $0x864] ss:$8 sps:$4 sm:$0xff]   ;;  %v5563_v23 = vld [vmem:[%s7102_s3 + $0x3f4] ss:$8 sps:$4 sm:$0xff]  }
 0x30f   : > { %3747 = vmatmul.mubr.bf16.gmra.mrb[228].mxu1 %v5482_v14  ;;  %3179 = vmatmul.mubr.bf16.gmra.mrb[8].mxu0 %v5525_v17 }
 0x310   : > { %4903 = vmatprep.mubr.msk.bf16.mxu1 %vm2239_vm4, %v5486_v19  ;;  %4832 = vmatprep.mubr.msk.bf16.mxu0 %vm2239_vm4, %v5533_v22 }
 0x312   : > { %v3540_v25 = vpop.f32.mrb[124].mxu1  ;;  %v2972_v4 = vpop.f32.mrb[160].mxu0 }
 0x313   : > { %4127 = vst [vmem:[#allocation2 + $0x660] sm:$0xff] %v3540_v25  ;;  %v3542_v26 = vpop.f32.mrb[125].mxu1  ;;  %3985 = vst [vmem:[#allocation2 + $0x1f0] sm:$0xff] %v2972_v4  ;;  %v2974_v29 = vpop.f32.mrb[161].mxu0 }
 0x314   : > { %v3543_v31 = vpop.f32.mrb[126].mxu1  ;;  %v2975_v33 = vpop.f32.mrb[162].mxu0  ;;  %v5518_v29 = vld [vmem:[%s7102_s3 + $0x860] ss:$8 sps:$4 sm:$0xff]  }
 0x315   : > { %4128 = vst [vmem:[#allocation2 + $0x668] sm:$0xff] %v3543_v31  ;;  %v3545_v35 = vpop.f32.mrb[127].mxu1  ;;  %3986 = vst [vmem:[#allocation2 + $0x1f8] sm:$0xff] %v2975_v33  ;;  %v2977_v36 = vpop.f32.mrb[163].mxu0  ;;  %v5561_v31 = vld [vmem:[%s7102_s3 + $0x3f0] ss:$8 sps:$4 sm:$0xff]  }
 0x316   : > { %v5524_v33 = vld [vmem:[%s7102_s3 + $0x874] ss:$8 sps:$4 sm:$0xff]   ;;  %v5569_v35 = vld [vmem:[%s7102_s3 + $0x404] ss:$8 sps:$4 sm:$0xff]  }
 0x317   : > { %3755 = vmatmul.mubr.bf16.gmra.mrb[232].mxu1 %v5488_v28  ;;  %3187 = vmatmul.mubr.bf16.gmra.mrb[12].mxu0 %v5531_v30 }
 0x318   : > { %4904 = vmatprep.mubr.msk.bf16.mxu1 %vm2239_vm4, %v5492_v32  ;;  %4833 = vmatprep.mubr.msk.bf16.mxu0 %vm2239_vm4, %v5539_v34 }
 0x31a   : > { %v3548_v38 = vpop.f32.mrb[128].mxu1  ;;  %v2980_v39 = vpop.f32.mrb[164].mxu0 }
 0x31b   : > { %4129 = vst [vmem:[#allocation2 + $0x670] sm:$0xff] %v3548_v38  ;;  %v3550_v40 = vpop.f32.mrb[129].mxu1  ;;  %3987 = vst [vmem:[#allocation2 + $0x200] sm:$0xff] %v2980_v39  ;;  %v2982_v42 = vpop.f32.mrb[165].mxu0 }
 0x31c   : > { %v3551_v44 = vpop.f32.mrb[130].mxu1  ;;  %v2983_v46 = vpop.f32.mrb[166].mxu0  ;;  %v5522_v42 = vld [vmem:[%s7102_s3 + $0x870] ss:$8 sps:$4 sm:$0xff]  }
 0x31d   : > { %4130 = vst [vmem:[#allocation2 + $0x678] sm:$0xff] %v3551_v44  ;;  %v3553_v48 = vpop.f32.mrb[131].mxu1  ;;  %3988 = vst [vmem:[#allocation2 + $0x208] sm:$0xff] %v2983_v46  ;;  %v2985_v49 = vpop.f32.mrb[167].mxu0  ;;  %v5567_v44 = vld [vmem:[%s7102_s3 + $0x400] ss:$8 sps:$4 sm:$0xff]  }
 0x31e   : > { %v5530_v46 = vld [vmem:[%s7102_s3 + $0x884] ss:$8 sps:$4 sm:$0xff]   ;;  %v5575_v48 = vld [vmem:[%s7102_s3 + $0x414] ss:$8 sps:$4 sm:$0xff]  }
 0x31f   : > { %3763 = vmatmul.mubr.bf16.gmra.mrb[236].mxu1 %v5494_v41  ;;  %3195 = vmatmul.mubr.bf16.gmra.mrb[16].mxu0 %v5537_v43 }
 0x320   : > { %4905 = vmatprep.mubr.msk.bf16.mxu1 %vm2239_vm4, %v5498_v45  ;;  %4834 = vmatprep.mubr.msk.bf16.mxu0 %vm2239_vm4, %v5545_v47 }
 0x322   : > { %v3556_v50 = vpop.f32.mrb[132].mxu1  ;;  %v2988_v51 = vpop.f32.mrb[168].mxu0 }
 0x323   : > { %4131 = vst [vmem:[#allocation2 + $0x680] sm:$0xff] %v3556_v50  ;;  %v3558_v52 = vpop.f32.mrb[133].mxu1  ;;  %3989 = vst [vmem:[#allocation2 + $0x210] sm:$0xff] %v2988_v51  ;;  %v2990_v54 = vpop.f32.mrb[169].mxu0 }
 0x324   : > { %v3559_v56 = vpop.f32.mrb[134].mxu1  ;;  %v2991_v58 = vpop.f32.mrb[170].mxu0  ;;  %v5528_v54 = vld [vmem:[%s7102_s3 + $0x880] ss:$8 sps:$4 sm:$0xff]  }
 0x325   : > { %4132 = vst [vmem:[#allocation2 + $0x688] sm:$0xff] %v3559_v56  ;;  %v3561_v60 = vpop.f32.mrb[135].mxu1  ;;  %3990 = vst [vmem:[#allocation2 + $0x218] sm:$0xff] %v2991_v58  ;;  %v2993_v61 = vpop.f32.mrb[171].mxu0  ;;  %v5573_v56 = vld [vmem:[%s7102_s3 + $0x410] ss:$8 sps:$4 sm:$0xff]  }
 0x326   : > { %v5536_v58 = vld [vmem:[%s7102_s3 + $0x894] ss:$8 sps:$4 sm:$0xff]   ;;  %v5581_v60 = vld [vmem:[%s7102_s3 + $0x424] ss:$8 sps:$4 sm:$0xff]  }
 0x327   : > { %3771 = vmatmul.mubr.bf16.gmra.mrb[240].mxu1 %v5500_v53  ;;  %3203 = vmatmul.mubr.bf16.gmra.mrb[20].mxu0 %v5543_v55 }
 0x328   : > { %4906 = vmatprep.mubr.msk.bf16.mxu1 %vm2239_vm4, %v5504_v57  ;;  %4835 = vmatprep.mubr.msk.bf16.mxu0 %vm2239_vm4, %v5551_v59 }
 0x32a   : > { %v3564_v62 = vpop.f32.mrb[136].mxu1  ;;  %v2996_v63 = vpop.f32.mrb[172].mxu0 }
 0x32b   : > { %4133 = vst [vmem:[#allocation2 + $0x690] sm:$0xff] %v3564_v62  ;;  %v3566_v0 = vpop.f32.mrb[137].mxu1  ;;  %3991 = vst [vmem:[#allocation2 + $0x220] sm:$0xff] %v2996_v63  ;;  %v2998_v2 = vpop.f32.mrb[173].mxu0 }
 0x32c   : > { %v3567_v5 = vpop.f32.mrb[138].mxu1  ;;  %v2999_v7 = vpop.f32.mrb[174].mxu0  ;;  %v5534_v2 = vld [vmem:[%s7102_s3 + $0x890] ss:$8 sps:$4 sm:$0xff]  }
 0x32d   : > { %4134 = vst [vmem:[#allocation2 + $0x698] sm:$0xff] %v3567_v5  ;;  %v3569_v10 = vpop.f32.mrb[139].mxu1  ;;  %3992 = vst [vmem:[#allocation2 + $0x228] sm:$0xff] %v2999_v7  ;;  %v3001_v11 = vpop.f32.mrb[175].mxu0  ;;  %v5579_v5 = vld [vmem:[%s7102_s3 + $0x420] ss:$8 sps:$4 sm:$0xff]  }
 0x32e   : > { %v5542_v7 = vld [vmem:[%s7102_s3 + $0x8a4] ss:$8 sps:$4 sm:$0xff]   ;;  %v5587_v10 = vld [vmem:[%s7102_s3 + $0x434] ss:$8 sps:$4 sm:$0xff]  }
 0x32f   : > { %3779 = vmatmul.mubr.bf16.gmra.mrb[244].mxu1 %v5506_v1  ;;  %3211 = vmatmul.mubr.bf16.gmra.mrb[24].mxu0 %v5549_v3 }
 0x330   : > { %4907 = vmatprep.mubr.msk.bf16.mxu1 %vm2239_vm4, %v5510_v6  ;;  %4836 = vmatprep.mubr.msk.bf16.mxu0 %vm2239_vm4, %v5557_v8 }
 0x332   : > { %v3572_v12 = vpop.f32.mrb[140].mxu1  ;;  %v3004_v13 = vpop.f32.mrb[176].mxu0 }
 0x333   : > { %4135 = vst [vmem:[#allocation2 + $0x6a0] sm:$0xff] %v3572_v12  ;;  %v3574_v14 = vpop.f32.mrb[141].mxu1  ;;  %3993 = vst [vmem:[#allocation2 + $0x230] sm:$0xff] %v3004_v13  ;;  %v3006_v17 = vpop.f32.mrb[177].mxu0 }
 0x334   : > { %v3575_v19 = vpop.f32.mrb[142].mxu1  ;;  %v3007_v22 = vpop.f32.mrb[178].mxu0  ;;  %v5540_v17 = vld [vmem:[%s7102_s3 + $0x8a0] ss:$8 sps:$4 sm:$0xff]  }
 0x335   : > { %4136 = vst [vmem:[#allocation2 + $0x6a8] sm:$0xff] %v3575_v19  ;;  %v3577_v24 = vpop.f32.mrb[143].mxu1  ;;  %3994 = vst [vmem:[#allocation2 + $0x238] sm:$0xff] %v3007_v22  ;;  %v3009_v25 = vpop.f32.mrb[179].mxu0  ;;  %v5585_v19 = vld [vmem:[%s7102_s3 + $0x430] ss:$8 sps:$4 sm:$0xff]  }
 0x336   : > { %v5548_v22 = vld [vmem:[%s7102_s3 + $0x8b4] ss:$8 sps:$4 sm:$0xff]   ;;  %v5593_v24 = vld [vmem:[%s7102_s3 + $0x444] ss:$8 sps:$4 sm:$0xff]  }
 0x337   : > { %3787 = vmatmul.mubr.bf16.gmra.mrb[248].mxu1 %v5512_v15  ;;  %3219 = vmatmul.mubr.bf16.gmra.mrb[28].mxu0 %v5555_v18 }
 0x338   : > { %4908 = vmatprep.mubr.msk.bf16.mxu1 %vm2239_vm4, %v5516_v20  ;;  %4837 = vmatprep.mubr.msk.bf16.mxu0 %vm2239_vm4, %v5563_v23 }
 0x33a   : > { %v3580_v4 = vpop.f32.mrb[144].mxu1  ;;  %v3012_v26 = vpop.f32.mrb[180].mxu0 }
 0x33b   : > { %4137 = vst [vmem:[#allocation2 + $0x6b0] sm:$0xff] %v3580_v4  ;;  %v3582_v28 = vpop.f32.mrb[145].mxu1  ;;  %3995 = vst [vmem:[#allocation2 + $0x240] sm:$0xff] %v3012_v26  ;;  %v3014_v30 = vpop.f32.mrb[181].mxu0 }
 0x33c   : > { %v3583_v32 = vpop.f32.mrb[146].mxu1  ;;  %v3015_v34 = vpop.f32.mrb[182].mxu0  ;;  %v5546_v30 = vld [vmem:[%s7102_s3 + $0x8b0] ss:$8 sps:$4 sm:$0xff]  }
 0x33d   : > { %4138 = vst [vmem:[#allocation2 + $0x6b8] sm:$0xff] %v3583_v32  ;;  %v3585_v36 = vpop.f32.mrb[147].mxu1  ;;  %3996 = vst [vmem:[#allocation2 + $0x248] sm:$0xff] %v3015_v34  ;;  %v3017_v38 = vpop.f32.mrb[183].mxu0  ;;  %v5591_v32 = vld [vmem:[%s7102_s3 + $0x440] ss:$8 sps:$4 sm:$0xff]  }
 0x33e   : > { %v5554_v34 = vld [vmem:[%s7102_s3 + $0x8c4] ss:$8 sps:$4 sm:$0xff]   ;;  %v5599_v36 = vld [vmem:[%s7102_s3 + $0x454] ss:$8 sps:$4 sm:$0xff]  }
 0x33f   : > { %3795 = vmatmul.mubr.bf16.gmra.mrb[252].mxu1 %v5518_v29  ;;  %3227 = vmatmul.mubr.bf16.gmra.mrb[32].mxu0 %v5561_v31 }
 0x340   : > { %4909 = vmatprep.mubr.msk.bf16.mxu1 %vm2239_vm4, %v5524_v33  ;;  %4838 = vmatprep.mubr.msk.bf16.mxu0 %vm2239_vm4, %v5569_v35 }
 0x342   : > { %v3588_v39 = vpop.f32.mrb[148].mxu1  ;;  %v3020_v40 = vpop.f32.mrb[184].mxu0 }
 0x343   : > { %4139 = vst [vmem:[#allocation2 + $0x6c0] sm:$0xff] %v3588_v39  ;;  %v3590_v41 = vpop.f32.mrb[149].mxu1  ;;  %3997 = vst [vmem:[#allocation2 + $0x250] sm:$0xff] %v3020_v40  ;;  %v3022_v43 = vpop.f32.mrb[185].mxu0 }
 0x344   : > { %v3591_v45 = vpop.f32.mrb[150].mxu1  ;;  %v3023_v47 = vpop.f32.mrb[186].mxu0  ;;  %v5552_v43 = vld [vmem:[%s7102_s3 + $0x8c0] ss:$8 sps:$4 sm:$0xff]  }
 0x345   : > { %4140 = vst [vmem:[#allocation2 + $0x6c8] sm:$0xff] %v3591_v45  ;;  %v3593_v49 = vpop.f32.mrb[151].mxu1  ;;  %3998 = vst [vmem:[#allocation2 + $0x258] sm:$0xff] %v3023_v47  ;;  %v3025_v50 = vpop.f32.mrb[187].mxu0  ;;  %v5597_v45 = vld [vmem:[%s7102_s3 + $0x450] ss:$8 sps:$4 sm:$0xff]  }
 0x346   : > { %v5560_v47 = vld [vmem:[%s7102_s3 + $0x8d4] ss:$8 sps:$4 sm:$0xff]   ;;  %v5605_v49 = vld [vmem:[%s7102_s3 + $0x464] ss:$8 sps:$4 sm:$0xff]  }
 0x347   : > { %3803 = vmatmul.mubr.bf16.gmra.mrb[0].mxu1 %v5522_v42  ;;  %3235 = vmatmul.mubr.bf16.gmra.mrb[36].mxu0 %v5567_v44 }
 0x348   : > { %4910 = vmatprep.mubr.msk.bf16.mxu1 %vm2239_vm4, %v5530_v46  ;;  %4839 = vmatprep.mubr.msk.bf16.mxu0 %vm2239_vm4, %v5575_v48 }
 0x34a   : > { %v3596_v51 = vpop.f32.mrb[152].mxu1  ;;  %v3028_v52 = vpop.f32.mrb[188].mxu0 }
 0x34b   : > { %4141 = vst [vmem:[#allocation2 + $0x6d0] sm:$0xff] %v3596_v51  ;;  %v3598_v53 = vpop.f32.mrb[153].mxu1  ;;  %3999 = vst [vmem:[#allocation2 + $0x260] sm:$0xff] %v3028_v52  ;;  %v3030_v55 = vpop.f32.mrb[189].mxu0 }
 0x34c   : > { %v3599_v57 = vpop.f32.mrb[154].mxu1  ;;  %v3031_v59 = vpop.f32.mrb[190].mxu0  ;;  %v5558_v55 = vld [vmem:[%s7102_s3 + $0x8d0] ss:$8 sps:$4 sm:$0xff]  }
 0x34d   : > { %4142 = vst [vmem:[#allocation2 + $0x6d8] sm:$0xff] %v3599_v57  ;;  %v3601_v61 = vpop.f32.mrb[155].mxu1  ;;  %4000 = vst [vmem:[#allocation2 + $0x268] sm:$0xff] %v3031_v59  ;;  %v3033_v62 = vpop.f32.mrb[191].mxu0  ;;  %v5603_v57 = vld [vmem:[%s7102_s3 + $0x460] ss:$8 sps:$4 sm:$0xff]  }
 0x34e   : > { %v5566_v59 = vld [vmem:[%s7102_s3 + $0x8e4] ss:$8 sps:$4 sm:$0xff]  }
 0x34f   : > { %3811 = vmatmul.mubr.bf16.gmra.mrb[4].mxu1 %v5528_v54  ;;  %3243 = vmatmul.mubr.bf16.gmra.mrb[40].mxu0 %v5573_v56 }
 0x350   : > { %4911 = vmatprep.mubr.msk.bf16.mxu1 %vm2239_vm4, %v5536_v58  ;;  %4840 = vmatprep.mubr.msk.bf16.mxu0 %vm2239_vm4, %v5581_v60 }
 0x352   : > { %v3604_v63 = vpop.f32.mrb[156].mxu1  ;;  %v3036_v0 = vpop.f32.mrb[192].mxu0 }
 0x353   : > { %4143 = vst [vmem:[#allocation2 + $0x6e0] sm:$0xff] %v3604_v63  ;;  %v3606_v1 = vpop.f32.mrb[157].mxu1  ;;  %4001 = vst [vmem:[#allocation2 + $0x270] sm:$0xff] %v3036_v0  ;;  %v3038_v3 = vpop.f32.mrb[193].mxu0 }
 0x354   : > { %v3607_v6 = vpop.f32.mrb[158].mxu1  ;;  %v3039_v8 = vpop.f32.mrb[194].mxu0 }
 0x355   : > { %4144 = vst [vmem:[#allocation2 + $0x6e8] sm:$0xff] %v3607_v6  ;;  %v3609_v11 = vpop.f32.mrb[159].mxu1  ;;  %4002 = vst [vmem:[#allocation2 + $0x278] sm:$0xff] %v3039_v8  ;;  %v3041_v12 = vpop.f32.mrb[195].mxu0  ;;  %v5572_v6 = vld [vmem:[%s7102_s3 + $0x8f4] ss:$8 sps:$4 sm:$0xff]  }
 0x357   : > { %3819 = vmatmul.mubr.bf16.gmra.mrb[8].mxu1 %v5534_v2  ;;  %3251 = vmatmul.mubr.bf16.gmra.mrb[44].mxu0 %v5579_v5  ;;  %v5564_v2 = vld [vmem:[%s7102_s3 + $0x8e0] ss:$8 sps:$4 sm:$0xff]  }
 0x358   : > { %4912 = vmatprep.mubr.msk.bf16.mxu1 %vm2239_vm4, %v5542_v7  ;;  %4841 = vmatprep.mubr.msk.bf16.mxu0 %vm2239_vm4, %v5587_v10 }
 0x35a   : > { %v3612_v13 = vpop.f32.mrb[160].mxu1  ;;  %v3044_v14 = vpop.f32.mrb[196].mxu0 }
 0x35b   : > { %4145 = vst [vmem:[#allocation2 + $0x6f0] sm:$0xff] %v3612_v13  ;;  %v3614_v15 = vpop.f32.mrb[161].mxu1  ;;  %4003 = vst [vmem:[#allocation2 + $0x280] sm:$0xff] %v3044_v14  ;;  %v3046_v18 = vpop.f32.mrb[197].mxu0  ;;  %v5570_v14 = vld [vmem:[%s7102_s3 + $0x8f0] ss:$8 sps:$4 sm:$0xff]  }
 0x35c   : > { %v3615_v20 = vpop.f32.mrb[162].mxu1  ;;  %v3047_v23 = vpop.f32.mrb[198].mxu0  ;;  %v5578_v18 = vld [vmem:[%s7102_s3 + $0x904] ss:$8 sps:$4 sm:$0xff]  }
 0x35d   : > { %4146 = vst [vmem:[#allocation2 + $0x6f8] sm:$0xff] %v3615_v20  ;;  %v3617_v25 = vpop.f32.mrb[163].mxu1  ;;  %4004 = vst [vmem:[#allocation2 + $0x288] sm:$0xff] %v3047_v23  ;;  %v3049_v4 = vpop.f32.mrb[199].mxu0 }
 0x35e   : > { %v5576_v4 = vld [vmem:[%s7102_s3 + $0x900] ss:$8 sps:$4 sm:$0xff]  }
 0x35f   : > { %3827 = vmatmul.mubr.bf16.gmra.mrb[12].mxu1 %v5540_v17  ;;  %3259 = vmatmul.mubr.bf16.gmra.mrb[48].mxu0 %v5585_v19 }
 0x360   : > { %4913 = vmatprep.mubr.msk.bf16.mxu1 %vm2239_vm4, %v5548_v22  ;;  %4842 = vmatprep.mubr.msk.bf16.mxu0 %vm2239_vm4, %v5593_v24 }
 0x362   : > { %v3620_v26 = vpop.f32.mrb[164].mxu1  ;;  %v3052_v28 = vpop.f32.mrb[200].mxu0 }
 0x363   : > { %4147 = vst [vmem:[#allocation2 + $0x700] sm:$0xff] %v3620_v26  ;;  %v3622_v29 = vpop.f32.mrb[165].mxu1  ;;  %4005 = vst [vmem:[#allocation2 + $0x290] sm:$0xff] %v3052_v28  ;;  %v3054_v31 = vpop.f32.mrb[201].mxu0 }
 0x364   : > { %v3623_v33 = vpop.f32.mrb[166].mxu1  ;;  %v3055_v35 = vpop.f32.mrb[202].mxu0  ;;  %v5584_v29 = vld [vmem:[%s7102_s3 + $0x914] ss:$8 sps:$4 sm:$0xff]  }
 0x365   : > { %4148 = vst [vmem:[#allocation2 + $0x708] sm:$0xff] %v3623_v33  ;;  %v3625_v38 = vpop.f32.mrb[167].mxu1  ;;  %4006 = vst [vmem:[#allocation2 + $0x298] sm:$0xff] %v3055_v35  ;;  %v3057_v39 = vpop.f32.mrb[203].mxu0 }
 0x367   : > { %3835 = vmatmul.mubr.bf16.gmra.mrb[16].mxu1 %v5546_v30  ;;  %3267 = vmatmul.mubr.bf16.gmra.mrb[52].mxu0 %v5591_v32 }
 0x368   : > { %4914 = vmatprep.mubr.msk.bf16.mxu1 %vm2239_vm4, %v5554_v34  ;;  %4843 = vmatprep.mubr.msk.bf16.mxu0 %vm2239_vm4, %v5599_v36  ;;  %v5582_v36 = vld [vmem:[%s7102_s3 + $0x910] ss:$8 sps:$4 sm:$0xff]  }
 0x36a   : > { %v3628_v40 = vpop.f32.mrb[168].mxu1  ;;  %v3060_v41 = vpop.f32.mrb[204].mxu0 }
 0x36b   : > { %4149 = vst [vmem:[#allocation2 + $0x710] sm:$0xff] %v3628_v40  ;;  %v3630_v42 = vpop.f32.mrb[169].mxu1  ;;  %4007 = vst [vmem:[#allocation2 + $0x2a0] sm:$0xff] %v3060_v41  ;;  %v3062_v44 = vpop.f32.mrb[205].mxu0  ;;  %v5590_v40 = vld [vmem:[%s7102_s3 + $0x924] ss:$8 sps:$4 sm:$0xff]  }
 0x36c   : > { %v3631_v46 = vpop.f32.mrb[170].mxu1  ;;  %v3063_v48 = vpop.f32.mrb[206].mxu0 }
 0x36d   : > { %4150 = vst [vmem:[#allocation2 + $0x718] sm:$0xff] %v3631_v46  ;;  %v3633_v50 = vpop.f32.mrb[171].mxu1  ;;  %4008 = vst [vmem:[#allocation2 + $0x2a8] sm:$0xff] %v3063_v48  ;;  %v3065_v51 = vpop.f32.mrb[207].mxu0 }
 0x36e   : > { %v5596_v50 = vld [vmem:[%s7102_s3 + $0x934] ss:$8 sps:$4 sm:$0xff]  }
 0x36f   : > { %3843 = vmatmul.mubr.bf16.gmra.mrb[20].mxu1 %v5552_v43  ;;  %3275 = vmatmul.mubr.bf16.gmra.mrb[56].mxu0 %v5597_v45 }
 0x370   : > { %4915 = vmatprep.mubr.msk.bf16.mxu1 %vm2239_vm4, %v5560_v47  ;;  %4844 = vmatprep.mubr.msk.bf16.mxu0 %vm2239_vm4, %v5605_v49  ;;  %v5588_v47 = vld [vmem:[%s7102_s3 + $0x920] ss:$8 sps:$4 sm:$0xff]  }
 0x372   : > { %v3636_v52 = vpop.f32.mrb[172].mxu1  ;;  %v3068_v53 = vpop.f32.mrb[208].mxu0 }
 0x373   : > { %4151 = vst [vmem:[#allocation2 + $0x720] sm:$0xff] %v3636_v52  ;;  %v3638_v54 = vpop.f32.mrb[173].mxu1  ;;  %4009 = vst [vmem:[#allocation2 + $0x2b0] sm:$0xff] %v3068_v53  ;;  %v3070_v56 = vpop.f32.mrb[209].mxu0 }
 0x374   : > { %v3639_v58 = vpop.f32.mrb[174].mxu1  ;;  %v3071_v60 = vpop.f32.mrb[210].mxu0 }
 0x375   : > { %4152 = vst [vmem:[#allocation2 + $0x728] sm:$0xff] %v3639_v58  ;;  %v3641_v61 = vpop.f32.mrb[175].mxu1  ;;  %4010 = vst [vmem:[#allocation2 + $0x2b8] sm:$0xff] %v3071_v60  ;;  %v3073_v62 = vpop.f32.mrb[211].mxu0  ;;  %v5602_v60 = vld [vmem:[%s7102_s3 + $0x944] ss:$8 sps:$4 sm:$0xff]  }
 0x377   : > { %3851 = vmatmul.mubr.bf16.gmra.mrb[24].mxu1 %v5558_v55  ;;  %3283 = vmatmul.mubr.bf16.gmra.mrb[60].mxu0 %v5603_v57  ;;  %v5594_v57 = vld [vmem:[%s7102_s3 + $0x930] ss:$8 sps:$4 sm:$0xff]  }
 0x378   : > { %4916 = vmatprep.mubr.msk.bf16.mxu1 %vm2239_vm4, %v5566_v59 }
 0x37a   : > { %v3644_v63 = vpop.f32.mrb[176].mxu1  ;;  %v3076_v0 = vpop.f32.mrb[212].mxu0 }
 0x37b   : > { %4153 = vst [vmem:[#allocation2 + $0x730] sm:$0xff] %v3644_v63  ;;  %v3646_v1 = vpop.f32.mrb[177].mxu1  ;;  %4011 = vst [vmem:[#allocation2 + $0x2c0] sm:$0xff] %v3076_v0  ;;  %v3078_v3 = vpop.f32.mrb[213].mxu0 }
 0x37c   : > { %v3647_v5 = vpop.f32.mrb[178].mxu1  ;;  %v3079_v7 = vpop.f32.mrb[214].mxu0  ;;  %v5600_v3 = vld [vmem:[%s7102_s3 + $0x940] ss:$8 sps:$4 sm:$0xff]  }
 0x37d   : > { %4154 = vst [vmem:[#allocation2 + $0x738] sm:$0xff] %v3647_v5  ;;  %v3649_v8 = vpop.f32.mrb[179].mxu1  ;;  %4012 = vst [vmem:[#allocation2 + $0x2c8] sm:$0xff] %v3079_v7  ;;  %v3081_v10 = vpop.f32.mrb[215].mxu0  ;;  %v5608_v7 = vld [vmem:[%s7102_s3 + $0x954] ss:$8 sps:$4 sm:$0xff]  }
 0x37f   : > { %3859 = vmatmul.mubr.bf16.gmra.mrb[28].mxu1 %v5564_v2 }
 0x380   : > { %4917 = vmatprep.mubr.msk.bf16.mxu1 %vm2239_vm4, %v5572_v6 }
 0x382   : > { %v3652_v11 = vpop.f32.mrb[180].mxu1  ;;  %v3084_v12 = vpop.f32.mrb[216].mxu0 }
 0x383   : > { %4155 = vst [vmem:[#allocation2 + $0x740] sm:$0xff] %v3652_v11  ;;  %v3654_v13 = vpop.f32.mrb[181].mxu1  ;;  %4013 = vst [vmem:[#allocation2 + $0x2d0] sm:$0xff] %v3084_v12  ;;  %v3086_v15 = vpop.f32.mrb[217].mxu0 }
 0x384   : > { %v3655_v17 = vpop.f32.mrb[182].mxu1  ;;  %v3087_v19 = vpop.f32.mrb[218].mxu0  ;;  %v5606_v15 = vld [vmem:[%s7102_s3 + $0x950] ss:$8 sps:$4 sm:$0xff]  }
 0x385   : > { %4156 = vst [vmem:[#allocation2 + $0x748] sm:$0xff] %v3655_v17  ;;  %v3657_v20 = vpop.f32.mrb[183].mxu1  ;;  %4014 = vst [vmem:[#allocation2 + $0x2d8] sm:$0xff] %v3087_v19  ;;  %v3089_v22 = vpop.f32.mrb[219].mxu0 }
 0x387   : > { %3867 = vmatmul.mubr.bf16.gmra.mrb[32].mxu1 %v5570_v14 }
 0x388   : > { %4918 = vmatprep.mubr.msk.bf16.mxu1 %vm2239_vm4, %v5578_v18 }
 0x38a   : > { %v3660_v23 = vpop.f32.mrb[184].mxu1  ;;  %v3092_v24 = vpop.f32.mrb[220].mxu0 }
 0x38b   : > { %4157 = vst [vmem:[#allocation2 + $0x750] sm:$0xff] %v3660_v23  ;;  %v3662_v25 = vpop.f32.mrb[185].mxu1  ;;  %4015 = vst [vmem:[#allocation2 + $0x2e0] sm:$0xff] %v3092_v24  ;;  %v3094_v26 = vpop.f32.mrb[221].mxu0 }
 0x38c   : > { %v3663_v28 = vpop.f32.mrb[186].mxu1  ;;  %v3095_v30 = vpop.f32.mrb[222].mxu0 }
 0x38d   : > { %4158 = vst [vmem:[#allocation2 + $0x758] sm:$0xff] %v3663_v28  ;;  %v3665_v31 = vpop.f32.mrb[187].mxu1  ;;  %4016 = vst [vmem:[#allocation2 + $0x2e8] sm:$0xff] %v3095_v30  ;;  %v3097_v32 = vpop.f32.mrb[223].mxu0 }
 0x38f   : > { %3875 = vmatmul.mubr.bf16.gmra.mrb[36].mxu1 %v5576_v4 }
 0x390   : > { %4919 = vmatprep.mubr.msk.bf16.mxu1 %vm2239_vm4, %v5584_v29 }
 0x392   : > { %v3668_v33 = vpop.f32.mrb[188].mxu1  ;;  %v3100_v34 = vpop.f32.mrb[224].mxu0 }
 0x393   : > { %4159 = vst [vmem:[#allocation2 + $0x760] sm:$0xff] %v3668_v33  ;;  %v3670_v35 = vpop.f32.mrb[189].mxu1  ;;  %4017 = vst [vmem:[#allocation2 + $0x2f0] sm:$0xff] %v3100_v34  ;;  %v3102_v38 = vpop.f32.mrb[225].mxu0 }
 0x394   : > { %v3671_v39 = vpop.f32.mrb[190].mxu1  ;;  %v3103_v41 = vpop.f32.mrb[226].mxu0 }
 0x395   : > { %4160 = vst [vmem:[#allocation2 + $0x768] sm:$0xff] %v3671_v39  ;;  %v3673_v42 = vpop.f32.mrb[191].mxu1  ;;  %4018 = vst [vmem:[#allocation2 + $0x2f8] sm:$0xff] %v3103_v41  ;;  %v3105_v43 = vpop.f32.mrb[227].mxu0 }
 0x397   : > { %3883 = vmatmul.mubr.bf16.gmra.mrb[40].mxu1 %v5582_v36 }
 0x398   : > { %4920 = vmatprep.mubr.msk.bf16.mxu1 %vm2239_vm4, %v5590_v40 }
 0x39a   : > { %v3676_v44 = vpop.f32.mrb[192].mxu1  ;;  %v3108_v45 = vpop.f32.mrb[228].mxu0 }
 0x39b   : > { %4161 = vst [vmem:[#allocation2 + $0x770] sm:$0xff] %v3676_v44  ;;  %v3678_v46 = vpop.f32.mrb[193].mxu1  ;;  %4019 = vst [vmem:[#allocation2 + $0x300] sm:$0xff] %v3108_v45  ;;  %v3110_v48 = vpop.f32.mrb[229].mxu0 }
 0x39c   : > { %v3679_v49 = vpop.f32.mrb[194].mxu1  ;;  %v3111_v51 = vpop.f32.mrb[230].mxu0 }
 0x39d   : > { %4162 = vst [vmem:[#allocation2 + $0x778] sm:$0xff] %v3679_v49  ;;  %v3681_v52 = vpop.f32.mrb[195].mxu1  ;;  %4020 = vst [vmem:[#allocation2 + $0x308] sm:$0xff] %v3111_v51  ;;  %v3113_v53 = vpop.f32.mrb[231].mxu0 }
 0x39f   : > { %3891 = vmatmul.mubr.bf16.gmra.mrb[44].mxu1 %v5588_v47 }
 0x3a0   : > { %4921 = vmatprep.mubr.msk.bf16.mxu1 %vm2239_vm4, %v5596_v50 }
 0x3a2   : > { %v3684_v54 = vpop.f32.mrb[196].mxu1  ;;  %v3116_v55 = vpop.f32.mrb[232].mxu0 }
 0x3a3   : > { %4163 = vst [vmem:[#allocation2 + $0x780] sm:$0xff] %v3684_v54  ;;  %v3686_v56 = vpop.f32.mrb[197].mxu1  ;;  %4021 = vst [vmem:[#allocation2 + $0x310] sm:$0xff] %v3116_v55  ;;  %v3118_v58 = vpop.f32.mrb[233].mxu0 }
 0x3a4   : > { %v3687_v59 = vpop.f32.mrb[198].mxu1  ;;  %v3119_v61 = vpop.f32.mrb[234].mxu0 }
 0x3a5   : > { %4164 = vst [vmem:[#allocation2 + $0x788] sm:$0xff] %v3687_v59  ;;  %v3689_v62 = vpop.f32.mrb[199].mxu1  ;;  %4022 = vst [vmem:[#allocation2 + $0x318] sm:$0xff] %v3119_v61  ;;  %v3121_v63 = vpop.f32.mrb[235].mxu0 }
 0x3a7   : > { %3899 = vmatmul.mubr.bf16.gmra.mrb[48].mxu1 %v5594_v57 }
 0x3a8   : > { %4922 = vmatprep.mubr.msk.bf16.mxu1 %vm2239_vm4, %v5602_v60 }
 0x3aa   : > { %v3692_v0 = vpop.f32.mrb[200].mxu1  ;;  %v3124_v1 = vpop.f32.mrb[236].mxu0 }
 0x3ab   : > { %4165 = vst [vmem:[#allocation2 + $0x790] sm:$0xff] %v3692_v0  ;;  %v3694_v2 = vpop.f32.mrb[201].mxu1  ;;  %4023 = vst [vmem:[#allocation2 + $0x320] sm:$0xff] %v3124_v1  ;;  %v3126_v5 = vpop.f32.mrb[237].mxu0 }
 0x3ac   : > { %v3695_v6 = vpop.f32.mrb[202].mxu1  ;;  %v3127_v8 = vpop.f32.mrb[238].mxu0 }
 0x3ad   : > { %4166 = vst [vmem:[#allocation2 + $0x798] sm:$0xff] %v3695_v6  ;;  %v3697_v10 = vpop.f32.mrb[203].mxu1  ;;  %4024 = vst [vmem:[#allocation2 + $0x328] sm:$0xff] %v3127_v8  ;;  %v3129_v11 = vpop.f32.mrb[239].mxu0 }
 0x3af   : > { %3907 = vmatmul.mubr.bf16.gmra.mrb[52].mxu1 %v5600_v3 }
 0x3b0   : > { %4923 = vmatprep.mubr.msk.bf16.mxu1 %vm2239_vm4, %v5608_v7 }
 0x3b2   : > { %v3700_v12 = vpop.f32.mrb[204].mxu1  ;;  %v3132_v13 = vpop.f32.mrb[240].mxu0 }
 0x3b3   : > { %4167 = vst [vmem:[#allocation2 + $0x7a0] sm:$0xff] %v3700_v12  ;;  %v3702_v14 = vpop.f32.mrb[205].mxu1  ;;  %4025 = vst [vmem:[#allocation2 + $0x330] sm:$0xff] %v3132_v13  ;;  %v3134_v17 = vpop.f32.mrb[241].mxu0 }
 0x3b4   : > { %v3703_v18 = vpop.f32.mrb[206].mxu1  ;;  %v3135_v19 = vpop.f32.mrb[242].mxu0 }
 0x3b5   : > { %4168 = vst [vmem:[#allocation2 + $0x7a8] sm:$0xff] %v3703_v18  ;;  %v3705_v20 = vpop.f32.mrb[207].mxu1  ;;  %4026 = vst [vmem:[#allocation2 + $0x338] sm:$0xff] %v3135_v19  ;;  %v3137_v22 = vpop.f32.mrb[243].mxu0 }
 0x3b7   : > { %3915 = vmatmul.mubr.bf16.gmra.mrb[56].mxu1 %v5606_v15 }
 0x3ba   : > { %v3708_v23 = vpop.f32.mrb[208].mxu1  ;;  %v3140_v24 = vpop.f32.mrb[244].mxu0 }
 0x3bb   : > { %4169 = vst [vmem:[#allocation2 + $0x7b0] sm:$0xff] %v3708_v23  ;;  %v3710_v25 = vpop.f32.mrb[209].mxu1  ;;  %4027 = vst [vmem:[#allocation2 + $0x340] sm:$0xff] %v3140_v24  ;;  %v3142_v4 = vpop.f32.mrb[245].mxu0 }
 0x3bc   : > { %v3711_v26 = vpop.f32.mrb[210].mxu1  ;;  %v3143_v28 = vpop.f32.mrb[246].mxu0 }
 0x3bd   : > { %4170 = vst [vmem:[#allocation2 + $0x7b8] sm:$0xff] %v3711_v26  ;;  %v3713_v29 = vpop.f32.mrb[211].mxu1  ;;  %4028 = vst [vmem:[#allocation2 + $0x348] sm:$0xff] %v3143_v28  ;;  %v3145_v30 = vpop.f32.mrb[247].mxu0 }
 0x3c2   : > { %v3716_v31 = vpop.f32.mrb[212].mxu1  ;;  %v3148_v32 = vpop.f32.mrb[248].mxu0 }
 0x3c3   : > { %4171 = vst [vmem:[#allocation2 + $0x7c0] sm:$0xff] %v3716_v31  ;;  %v3718_v33 = vpop.f32.mrb[213].mxu1  ;;  %4029 = vst [vmem:[#allocation2 + $0x350] sm:$0xff] %v3148_v32  ;;  %v3150_v34 = vpop.f32.mrb[249].mxu0 }
 0x3c4   : > { %v3719_v35 = vpop.f32.mrb[214].mxu1  ;;  %v3151_v36 = vpop.f32.mrb[250].mxu0 }
 0x3c5   : > { %4172 = vst [vmem:[#allocation2 + $0x7c8] sm:$0xff] %v3719_v35  ;;  %v3721_v38 = vpop.f32.mrb[215].mxu1  ;;  %4030 = vst [vmem:[#allocation2 + $0x358] sm:$0xff] %v3151_v36  ;;  %v3153_v39 = vpop.f32.mrb[251].mxu0 }
 0x3ca   : > { %v3724_v40 = vpop.f32.mrb[216].mxu1  ;;  %v3156_v41 = vpop.f32.mrb[252].mxu0 }
 0x3cb   : > { %4173 = vst [vmem:[#allocation2 + $0x7d0] sm:$0xff] %v3724_v40  ;;  %v3726_v42 = vpop.f32.mrb[217].mxu1  ;;  %4031 = vst [vmem:[#allocation2 + $0x360] sm:$0xff] %v3156_v41  ;;  %v3158_v43 = vpop.f32.mrb[253].mxu0 }
 0x3cc   : > { %v3727_v44 = vpop.f32.mrb[218].mxu1  ;;  %v3159_v45 = vpop.f32.mrb[254].mxu0 }
 0x3cd   : > { %4174 = vst [vmem:[#allocation2 + $0x7d8] sm:$0xff] %v3727_v44  ;;  %v3729_v46 = vpop.f32.mrb[219].mxu1  ;;  %4032 = vst [vmem:[#allocation2 + $0x368] sm:$0xff] %v3159_v45  ;;  %v3161_v47 = vpop.f32.mrb[255].mxu0 }
 0x3d2   : > { %v3732_v48 = vpop.f32.mrb[220].mxu1  ;;  %v3164_v49 = vpop.f32.mrb[0].mxu0 }
 0x3d3   : > { %4175 = vst [vmem:[#allocation2 + $0x7e0] sm:$0xff] %v3732_v48  ;;  %v3734_v50 = vpop.f32.mrb[221].mxu1  ;;  %4033 = vst [vmem:[#allocation2 + $0x370] sm:$0xff] %v3164_v49  ;;  %v3166_v51 = vpop.f32.mrb[1].mxu0 }
 0x3d4   : > { %v3735_v52 = vpop.f32.mrb[222].mxu1  ;;  %v3167_v53 = vpop.f32.mrb[2].mxu0 }
 0x3d5   : > { %4176 = vst [vmem:[#allocation2 + $0x7e8] sm:$0xff] %v3735_v52  ;;  %v3737_v54 = vpop.f32.mrb[223].mxu1  ;;  %4034 = vst [vmem:[#allocation2 + $0x378] sm:$0xff] %v3167_v53  ;;  %v3169_v55 = vpop.f32.mrb[3].mxu0 }
 0x3da   : > { %v3740_v56 = vpop.f32.mrb[224].mxu1  ;;  %v3172_v57 = vpop.f32.mrb[4].mxu0 }
 0x3db   : > { %4177 = vst [vmem:[#allocation2 + $0x7f0] sm:$0xff] %v3740_v56  ;;  %v3742_v58 = vpop.f32.mrb[225].mxu1  ;;  %4035 = vst [vmem:[#allocation2 + $0x380] sm:$0xff] %v3172_v57  ;;  %v3174_v59 = vpop.f32.mrb[5].mxu0 }
 0x3dc   : > { %v3743_v60 = vpop.f32.mrb[226].mxu1  ;;  %v3175_v61 = vpop.f32.mrb[6].mxu0 }
 0x3dd   : > { %4178 = vst [vmem:[#allocation2 + $0x7f8] sm:$0xff] %v3743_v60  ;;  %v3745_v62 = vpop.f32.mrb[227].mxu1  ;;  %4036 = vst [vmem:[#allocation2 + $0x388] sm:$0xff] %v3175_v61  ;;  %v3177_v63 = vpop.f32.mrb[7].mxu0 }
 0x3e2   : > { %v3748_v0 = vpop.f32.mrb[228].mxu1  ;;  %v3180_v1 = vpop.f32.mrb[8].mxu0 }
 0x3e3   : > { %4179 = vst [vmem:[#allocation2 + $0x800] sm:$0xff] %v3748_v0  ;;  %v3750_v2 = vpop.f32.mrb[229].mxu1  ;;  %4037 = vst [vmem:[#allocation2 + $0x390] sm:$0xff] %v3180_v1  ;;  %v3182_v3 = vpop.f32.mrb[9].mxu0 }
 0x3e4   : > { %v3751_v5 = vpop.f32.mrb[230].mxu1  ;;  %v3183_v6 = vpop.f32.mrb[10].mxu0 }
 0x3e5   : > { %4180 = vst [vmem:[#allocation2 + $0x808] sm:$0xff] %v3751_v5  ;;  %v3753_v7 = vpop.f32.mrb[231].mxu1  ;;  %4038 = vst [vmem:[#allocation2 + $0x398] sm:$0xff] %v3183_v6  ;;  %v3185_v8 = vpop.f32.mrb[11].mxu0 }
 0x3ea   : > { %v3756_v10 = vpop.f32.mrb[232].mxu1  ;;  %v3188_v11 = vpop.f32.mrb[12].mxu0 }
 0x3eb   : > { %4181 = vst [vmem:[#allocation2 + $0x810] sm:$0xff] %v3756_v10  ;;  %v3758_v12 = vpop.f32.mrb[233].mxu1  ;;  %4039 = vst [vmem:[#allocation2 + $0x3a0] sm:$0xff] %v3188_v11  ;;  %v3190_v13 = vpop.f32.mrb[13].mxu0 }
 0x3ec   : > { %v3759_v14 = vpop.f32.mrb[234].mxu1  ;;  %v3191_v15 = vpop.f32.mrb[14].mxu0 }
 0x3ed   : > { %4182 = vst [vmem:[#allocation2 + $0x818] sm:$0xff] %v3759_v14  ;;  %v3761_v17 = vpop.f32.mrb[235].mxu1  ;;  %4040 = vst [vmem:[#allocation2 + $0x3a8] sm:$0xff] %v3191_v15  ;;  %v3193_v18 = vpop.f32.mrb[15].mxu0 }
 0x3f2   : > { %v3764_v19 = vpop.f32.mrb[236].mxu1  ;;  %v3196_v20 = vpop.f32.mrb[16].mxu0 }
 0x3f3   : > { %4183 = vst [vmem:[#allocation2 + $0x820] sm:$0xff] %v3764_v19  ;;  %v3766_v22 = vpop.f32.mrb[237].mxu1  ;;  %4041 = vst [vmem:[#allocation2 + $0x3b0] sm:$0xff] %v3196_v20  ;;  %v3198_v23 = vpop.f32.mrb[17].mxu0 }
 0x3f4   : > { %v3767_v24 = vpop.f32.mrb[238].mxu1  ;;  %v3199_v25 = vpop.f32.mrb[18].mxu0 }
 0x3f5   : > { %4184 = vst [vmem:[#allocation2 + $0x828] sm:$0xff] %v3767_v24  ;;  %v3769_v4 = vpop.f32.mrb[239].mxu1  ;;  %4042 = vst [vmem:[#allocation2 + $0x3b8] sm:$0xff] %v3199_v25  ;;  %v3201_v26 = vpop.f32.mrb[19].mxu0 }
 0x3fa   : > { %v3772_v28 = vpop.f32.mrb[240].mxu1  ;;  %v3204_v29 = vpop.f32.mrb[20].mxu0 }
 0x3fb   : > { %4185 = vst [vmem:[#allocation2 + $0x830] sm:$0xff] %v3772_v28  ;;  %v3774_v30 = vpop.f32.mrb[241].mxu1  ;;  %4043 = vst [vmem:[#allocation2 + $0x3c0] sm:$0xff] %v3204_v29  ;;  %v3206_v31 = vpop.f32.mrb[21].mxu0 }
 0x3fc   : > { %v3775_v32 = vpop.f32.mrb[242].mxu1  ;;  %v3207_v33 = vpop.f32.mrb[22].mxu0 }
 0x3fd   : > { %4186 = vst [vmem:[#allocation2 + $0x838] sm:$0xff] %v3775_v32  ;;  %v3777_v34 = vpop.f32.mrb[243].mxu1  ;;  %4044 = vst [vmem:[#allocation2 + $0x3c8] sm:$0xff] %v3207_v33  ;;  %v3209_v35 = vpop.f32.mrb[23].mxu0 }
 0x402   : > { %v3780_v36 = vpop.f32.mrb[244].mxu1  ;;  %v3212_v38 = vpop.f32.mrb[24].mxu0 }
 0x403   : > { %4187 = vst [vmem:[#allocation2 + $0x840] sm:$0xff] %v3780_v36  ;;  %v3782_v39 = vpop.f32.mrb[245].mxu1  ;;  %4045 = vst [vmem:[#allocation2 + $0x3d0] sm:$0xff] %v3212_v38  ;;  %v3214_v40 = vpop.f32.mrb[25].mxu0 }
 0x404   : > { %v3783_v41 = vpop.f32.mrb[246].mxu1  ;;  %v3215_v42 = vpop.f32.mrb[26].mxu0 }
 0x405   : > { %4188 = vst [vmem:[#allocation2 + $0x848] sm:$0xff] %v3783_v41  ;;  %v3785_v43 = vpop.f32.mrb[247].mxu1  ;;  %4046 = vst [vmem:[#allocation2 + $0x3d8] sm:$0xff] %v3215_v42  ;;  %v3217_v44 = vpop.f32.mrb[27].mxu0 }
 0x40a   : > { %v3788_v45 = vpop.f32.mrb[248].mxu1  ;;  %v3220_v46 = vpop.f32.mrb[28].mxu0 }
 0x40b   : > { %4189 = vst [vmem:[#allocation2 + $0x850] sm:$0xff] %v3788_v45  ;;  %v3790_v47 = vpop.f32.mrb[249].mxu1  ;;  %4047 = vst [vmem:[#allocation2 + $0x3e0] sm:$0xff] %v3220_v46  ;;  %v3222_v48 = vpop.f32.mrb[29].mxu0 }
 0x40c   : > { %v3791_v49 = vpop.f32.mrb[250].mxu1  ;;  %v3223_v50 = vpop.f32.mrb[30].mxu0 }
 0x40d   : > { %4190 = vst [vmem:[#allocation2 + $0x858] sm:$0xff] %v3791_v49  ;;  %v3793_v51 = vpop.f32.mrb[251].mxu1  ;;  %4048 = vst [vmem:[#allocation2 + $0x3e8] sm:$0xff] %v3223_v50  ;;  %v3225_v52 = vpop.f32.mrb[31].mxu0 }
 0x412   : > { %v3796_v53 = vpop.f32.mrb[252].mxu1  ;;  %v3228_v54 = vpop.f32.mrb[32].mxu0 }
 0x413   : > { %4191 = vst [vmem:[#allocation2 + $0x860] sm:$0xff] %v3796_v53  ;;  %v3798_v55 = vpop.f32.mrb[253].mxu1  ;;  %4049 = vst [vmem:[#allocation2 + $0x3f0] sm:$0xff] %v3228_v54  ;;  %v3230_v56 = vpop.f32.mrb[33].mxu0 }
 0x414   : > { %v3799_v57 = vpop.f32.mrb[254].mxu1  ;;  %v3231_v58 = vpop.f32.mrb[34].mxu0 }
 0x415   : > { %4192 = vst [vmem:[#allocation2 + $0x868] sm:$0xff] %v3799_v57  ;;  %v3801_v59 = vpop.f32.mrb[255].mxu1  ;;  %4050 = vst [vmem:[#allocation2 + $0x3f8] sm:$0xff] %v3231_v58  ;;  %v3233_v60 = vpop.f32.mrb[35].mxu0 }
 0x41a   : > { %v3804_v61 = vpop.f32.mrb[0].mxu1  ;;  %v3236_v62 = vpop.f32.mrb[36].mxu0 }
 0x41b   : > { %4193 = vst [vmem:[#allocation2 + $0x870] sm:$0xff] %v3804_v61  ;;  %v3806_v63 = vpop.f32.mrb[1].mxu1  ;;  %4051 = vst [vmem:[#allocation2 + $0x400] sm:$0xff] %v3236_v62  ;;  %v3238_v0 = vpop.f32.mrb[37].mxu0 }
 0x41c   : > { %v3807_v1 = vpop.f32.mrb[2].mxu1  ;;  %v3239_v2 = vpop.f32.mrb[38].mxu0 }
 0x41d   : > { %4194 = vst [vmem:[#allocation2 + $0x878] sm:$0xff] %v3807_v1  ;;  %v3809_v3 = vpop.f32.mrb[3].mxu1  ;;  %4052 = vst [vmem:[#allocation2 + $0x408] sm:$0xff] %v3239_v2  ;;  %v3241_v5 = vpop.f32.mrb[39].mxu0 }
 0x422   : > { %v3812_v6 = vpop.f32.mrb[4].mxu1  ;;  %v3244_v7 = vpop.f32.mrb[40].mxu0 }
 0x423   : > { %4195 = vst [vmem:[#allocation2 + $0x880] sm:$0xff] %v3812_v6  ;;  %v3814_v8 = vpop.f32.mrb[5].mxu1  ;;  %4053 = vst [vmem:[#allocation2 + $0x410] sm:$0xff] %v3244_v7  ;;  %v3246_v10 = vpop.f32.mrb[41].mxu0 }
 0x424   : > { %v3815_v11 = vpop.f32.mrb[6].mxu1  ;;  %v3247_v12 = vpop.f32.mrb[42].mxu0 }
 0x425   : > { %4196 = vst [vmem:[#allocation2 + $0x888] sm:$0xff] %v3815_v11  ;;  %v3817_v13 = vpop.f32.mrb[7].mxu1  ;;  %4054 = vst [vmem:[#allocation2 + $0x418] sm:$0xff] %v3247_v12  ;;  %v3249_v14 = vpop.f32.mrb[43].mxu0 }
 0x42a   : > { %v3820_v15 = vpop.f32.mrb[8].mxu1  ;;  %v3252_v17 = vpop.f32.mrb[44].mxu0 }
 0x42b   : > { %4197 = vst [vmem:[#allocation2 + $0x890] sm:$0xff] %v3820_v15  ;;  %v3822_v18 = vpop.f32.mrb[9].mxu1  ;;  %4055 = vst [vmem:[#allocation2 + $0x420] sm:$0xff] %v3252_v17  ;;  %v3254_v19 = vpop.f32.mrb[45].mxu0 }
 0x42c   : > { %v3823_v20 = vpop.f32.mrb[10].mxu1  ;;  %v3255_v22 = vpop.f32.mrb[46].mxu0 }
 0x42d   : > { %4198 = vst [vmem:[#allocation2 + $0x898] sm:$0xff] %v3823_v20  ;;  %v3825_v23 = vpop.f32.mrb[11].mxu1  ;;  %4056 = vst [vmem:[#allocation2 + $0x428] sm:$0xff] %v3255_v22  ;;  %v3257_v24 = vpop.f32.mrb[47].mxu0 }
 0x432   : > { %v3828_v25 = vpop.f32.mrb[12].mxu1  ;;  %v3260_v4 = vpop.f32.mrb[48].mxu0 }
 0x433   : > { %4199 = vst [vmem:[#allocation2 + $0x8a0] sm:$0xff] %v3828_v25  ;;  %v3830_v26 = vpop.f32.mrb[13].mxu1  ;;  %4057 = vst [vmem:[#allocation2 + $0x430] sm:$0xff] %v3260_v4  ;;  %v3262_v28 = vpop.f32.mrb[49].mxu0 }
 0x434   : > { %v3831_v29 = vpop.f32.mrb[14].mxu1  ;;  %v3263_v30 = vpop.f32.mrb[50].mxu0 }
 0x435   : > { %4200 = vst [vmem:[#allocation2 + $0x8a8] sm:$0xff] %v3831_v29  ;;  %v3833_v31 = vpop.f32.mrb[15].mxu1  ;;  %4058 = vst [vmem:[#allocation2 + $0x438] sm:$0xff] %v3263_v30  ;;  %v3265_v32 = vpop.f32.mrb[51].mxu0  ;;  %v5709_v30 = vmov %v6385_v27  }
 0x436   : > { %v5713_v31 = vmov %v6373_v21   ;;  %v5717_v32 = vmov %v6365_v16  }
 0x43a   : > { %v3836_v33 = vpop.f32.mrb[16].mxu1  ;;  %v3268_v34 = vpop.f32.mrb[52].mxu0 }
 0x43b   : > { %4201 = vst [vmem:[#allocation2 + $0x8b0] sm:$0xff] %v3836_v33  ;;  %v3838_v35 = vpop.f32.mrb[17].mxu1  ;;  %4059 = vst [vmem:[#allocation2 + $0x440] sm:$0xff] %v3268_v34  ;;  %v3270_v36 = vpop.f32.mrb[53].mxu0  ;;  %v5721_v33 = vmov %v6353_v9  }
 0x43c   : > { %v3839_v38 = vpop.f32.mrb[18].mxu1  ;;  %v3271_v39 = vpop.f32.mrb[54].mxu0 }
 0x43d   : > { %4202 = vst [vmem:[#allocation2 + $0x8b8] sm:$0xff] %v3839_v38  ;;  %v3841_v40 = vpop.f32.mrb[19].mxu1  ;;  %4060 = vst [vmem:[#allocation2 + $0x448] sm:$0xff] %v3271_v39  ;;  %v3273_v41 = vpop.f32.mrb[55].mxu0 }
 0x442   : > { %v3844_v42 = vpop.f32.mrb[20].mxu1  ;;  %v3276_v43 = vpop.f32.mrb[56].mxu0 }
 0x443   : > { %4203 = vst [vmem:[#allocation2 + $0x8c0] sm:$0xff] %v3844_v42  ;;  %v3846_v44 = vpop.f32.mrb[21].mxu1  ;;  %4061 = vst [vmem:[#allocation2 + $0x450] sm:$0xff] %v3276_v43  ;;  %v3278_v45 = vpop.f32.mrb[57].mxu0 }
 0x444   : > { %v3847_v46 = vpop.f32.mrb[22].mxu1  ;;  %v3279_v47 = vpop.f32.mrb[58].mxu0 }
 0x445   : > { %4204 = vst [vmem:[#allocation2 + $0x8c8] sm:$0xff] %v3847_v46  ;;  %v3849_v48 = vpop.f32.mrb[23].mxu1  ;;  %4062 = vst [vmem:[#allocation2 + $0x458] sm:$0xff] %v3279_v47  ;;  %v3281_v49 = vpop.f32.mrb[59].mxu0 }
 0x44a   : > { %v3852_v50 = vpop.f32.mrb[24].mxu1  ;;  %v3284_v51 = vpop.f32.mrb[60].mxu0 }
 0x44b   : > { %4205 = vst [vmem:[#allocation2 + $0x8d0] sm:$0xff] %v3852_v50  ;;  %v3854_v52 = vpop.f32.mrb[25].mxu1  ;;  %4063 = vst [vmem:[#allocation2 + $0x460] sm:$0xff] %v3284_v51  ;;  %v3286_v53 = vpop.f32.mrb[61].mxu0 }
 0x44c   : > { %v3855_v54 = vpop.f32.mrb[26].mxu1  ;;  %v3287_v55 = vpop.f32.mrb[62].mxu0 }
 0x44d   : > { %4206 = vst [vmem:[#allocation2 + $0x8d8] sm:$0xff] %v3855_v54  ;;  %v3857_v56 = vpop.f32.mrb[27].mxu1  ;;  %4064 = vst [vmem:[#allocation2 + $0x468] sm:$0xff] %v3287_v55  ;;  %v3289_v57 = vpop.f32.mrb[63].mxu0 }
 0x452   : > { %v3860_v58 = vpop.f32.mrb[28].mxu1 }
 0x453   : > { %4207 = vst [vmem:[#allocation2 + $0x8e0] sm:$0xff] %v3860_v58  ;;  %v3862_v59 = vpop.f32.mrb[29].mxu1 }
 0x454   : > { %v3863_v60 = vpop.f32.mrb[30].mxu1 }
 0x455   : > { %4208 = vst [vmem:[#allocation2 + $0x8e8] sm:$0xff] %v3863_v60  ;;  %v3865_v61 = vpop.f32.mrb[31].mxu1 }
 0x45a   : > { %v3868_v62 = vpop.f32.mrb[32].mxu1 }
 0x45b   : > { %4209 = vst [vmem:[#allocation2 + $0x8f0] sm:$0xff] %v3868_v62  ;;  %v3870_v63 = vpop.f32.mrb[33].mxu1 }
 0x45c   : > { %v3871_v0 = vpop.f32.mrb[34].mxu1 }
 0x45d   : > { %4210 = vst [vmem:[#allocation2 + $0x8f8] sm:$0xff] %v3871_v0  ;;  %v3873_v1 = vpop.f32.mrb[35].mxu1 }
 0x462   : > { %v3876_v2 = vpop.f32.mrb[36].mxu1 }
 0x463   : > { %4211 = vst [vmem:[#allocation2 + $0x900] sm:$0xff] %v3876_v2  ;;  %v3878_v3 = vpop.f32.mrb[37].mxu1 }
 0x464   : > { %v3879_v5 = vpop.f32.mrb[38].mxu1 }
 0x465   : > { %4212 = vst [vmem:[#allocation2 + $0x908] sm:$0xff] %v3879_v5  ;;  %v3881_v6 = vpop.f32.mrb[39].mxu1 }
 0x46a   : > { %v3884_v7 = vpop.f32.mrb[40].mxu1 }
 0x46b   : > { %4213 = vst [vmem:[#allocation2 + $0x910] sm:$0xff] %v3884_v7  ;;  %v3886_v8 = vpop.f32.mrb[41].mxu1 }
 0x46c   : > { %v3887_v10 = vpop.f32.mrb[42].mxu1 }
 0x46d   : > { %4214 = vst [vmem:[#allocation2 + $0x918] sm:$0xff] %v3887_v10  ;;  %v3889_v11 = vpop.f32.mrb[43].mxu1 }
 0x472   : > { %v3892_v12 = vpop.f32.mrb[44].mxu1 }
 0x473   : > { %4215 = vst [vmem:[#allocation2 + $0x920] sm:$0xff] %v3892_v12  ;;  %v3894_v13 = vpop.f32.mrb[45].mxu1 }
 0x474   : > { %v3895_v14 = vpop.f32.mrb[46].mxu1 }
 0x475   : > { %4216 = vst [vmem:[#allocation2 + $0x928] sm:$0xff] %v3895_v14  ;;  %v3897_v15 = vpop.f32.mrb[47].mxu1 }
 0x47a   : > { %v3900_v17 = vpop.f32.mrb[48].mxu1 }
 0x47b   : > { %4217 = vst [vmem:[#allocation2 + $0x930] sm:$0xff] %v3900_v17  ;;  %v3902_v18 = vpop.f32.mrb[49].mxu1 }
 0x47c   : > { %v3903_v19 = vpop.f32.mrb[50].mxu1 }
 0x47d   : > { %4218 = vst [vmem:[#allocation2 + $0x938] sm:$0xff] %v3903_v19  ;;  %v3905_v20 = vpop.f32.mrb[51].mxu1 }
 0x482   : > { %v3908_v22 = vpop.f32.mrb[52].mxu1 }
 0x483   : > { %4219 = vst [vmem:[#allocation2 + $0x940] sm:$0xff] %v3908_v22  ;;  %v3910_v23 = vpop.f32.mrb[53].mxu1 }
 0x484   : > { %v3911_v24 = vpop.f32.mrb[54].mxu1 }
 0x485   : > { %4220 = vst [vmem:[#allocation2 + $0x948] sm:$0xff] %v3911_v24  ;;  %v3913_v25 = vpop.f32.mrb[55].mxu1 }
 0x48a   : > { %v3916_v4 = vpop.f32.mrb[56].mxu1 }
 0x48b   : > { %4221 = vst [vmem:[#allocation2 + $0x950] sm:$0xff] %v3916_v4  ;;  %v3918_v26 = vpop.f32.mrb[57].mxu1 }
 0x48c   : > { %v3919_v28 = vpop.f32.mrb[58].mxu1 }
 0x48d   : > { %4222 = vst [vmem:[#allocation2 + $0x958] sm:$0xff] %v3919_v28  ;;  %v3921_v29 = vpop.f32.mrb[59].mxu1 }
 0x48e LB: >> { %s4924_s5 = sshll.u32 %s5727_s30, 5  ;;  %s4232_s30 = sadd.s32 1, %s5727_s30   ;;  %s5727_s30 = sphi %s5725_s30, %s4232_s30   ;;  %v5723_v33 = vphi %v5721_v33, %v5722_v33   ;;  %v5719_v32 = vphi %v5717_v32, %v5718_v32   ;;  %v5715_v31 = vphi %v5713_v31, %v5714_v31   ;;  %v5711_v30 = vphi %v5709_v30, %v5710_v30  }
 0x48f   : >> { %s4238_s6 = scalar_lea.vmem [#allocation2], %s4924_s5  ;;  %p4229_p5 = scmp.ge.s32.totalorder %s4232_s30, 75  }
 0x490   : > { %v7045_v39 = vmov (%p4229_p5), 0.0   ;;  %v7047_v40 = vmov (%p4229_p5), 0.0   ;;  %v7049_v41 = vmov (%p4229_p5), 0.0   ;;  %v7051_v42 = vmov (%p4229_p5), 0.0   ;;  %s7055_s7 = smov (%p4229_p5), 0  }
 0x491   : > { %v7053_v43 = vmov (%p4229_p5), 0.0   ;;  %v5749_v44 = vmov (%p4229_p5), 0.0   ;;  %v5753_v45 = vmov (%p4229_p5), 0.0   ;;  %v5757_v46 = vmov (%p4229_p5), 0.0  }
 0x493   : > { %4231 = sbr.rel (!%p4229_p5) target bundleno = 1166 (0x48e), region = 83 }
 0x494   : >> { %v4239_v34 = vld [vmem:[%s4238_s6] sm:$0xff]  ;;  %v4240_v35 = vld [vmem:[%s4238_s6 + $0x8] sm:$0xff]  ;;  %v4241_v36 = vld [vmem:[%s4238_s6 + $0x10] sm:$0xff] }
 0x495   : >> { %v4242_v27 = vld [vmem:[%s4238_s6 + $0x18] sm:$0xff]  ;;  %v7033_v33 = vmax.f32 %v5723_v33, %v4239_v34   ;;  %v7035_v32 = vmax.f32 %v5719_v32, %v4240_v35   ;;  %v7037_v31 = vmax.f32 %v5715_v31, %v4241_v36  }
 0x496   : >> { %v7039_v30 = vmax.f32 %v5711_v30, %v4242_v27  }
 0x497   : >> { %v7104_v21 = vmov %v7033_v33  ;;  %v7105_v16 = vmov %v7035_v32  ;;  %v7106_v9 = vmov %v7037_v31 }
 0x498   : >> { %v7107_v38 = vmov %v7039_v30  ;;  %v5714_v31 = vmov %v7106_v9   ;;  %v5718_v32 = vmov %v7105_v16   ;;  %v5722_v33 = vmov %v7104_v21  }
 0x499   : >> { %v5710_v30 = vmov %v7107_v38  }
 0x49a LB: >> { %s4925_s8 = sshll.u32 %s5763_s7, 5  ;;  %s4279_s10 = scalar_lea.vmem %s5823_s26, %s5763_s7  ;;  %s5763_s7 = sphi %s7055_s7, %s4252_s7   ;;  %v5759_v46 = vphi %v5757_v46, %v5758_v46   ;;  %v5755_v45 = vphi %v5753_v45, %v5754_v45   ;;  %v5751_v44 = vphi %v5749_v44, %v5750_v44   ;;  %v5747_v43 = vphi %v7053_v43, %v7112_v43   ;;  %v5743_v42 = vphi %v7051_v42, %v7111_v42   ;;  %v5739_v41 = vphi %v7049_v41, %v7110_v41   ;;  %v5735_v40 = vphi %v7047_v40, %v7109_v40   ;;  %v5731_v39 = vphi %v7045_v39, %v7108_v39  }
 0x49b   : >> { %s4262_s9 = scalar_lea.vmem [#allocation2], %s4925_s8  ;;  %v4280_v59 = vld [vmem:[%s4279_s10] ss:$0 sm:$0xff]  ;;  %s4252_s7 = sadd.s32 1, %s5763_s7  }
 0x49c   : >> { %v4263_v47 = vld [vmem:[%s4262_s9] sm:$0xff]  ;;  %v4264_v48 = vld [vmem:[%s4262_s9 + $0x8] sm:$0xff]  ;;  %v4265_v49 = vld [vmem:[%s4262_s9 + $0x10] sm:$0xff]  ;;  %p4249_p6 = scmp.ge.s32.totalorder %s4252_s7, 75  }
 0x49d   : >> { %v4266_v50 = vld [vmem:[%s4262_s9 + $0x18] sm:$0xff]  ;;  %v4267_v51 = vsub.f32 %v4263_v47, %v7104_v21  ;;  %v4268_v52 = vsub.f32 %v4264_v48, %v7105_v16  ;;  %v4269_v53 = vsub.f32 %v4265_v49, %v7106_v9  ;;  %v4301_v14 = vlaneseq (%p4249_p6) }
 0x49e   : >> { %v4270_v54 = vsub.f32 %v4266_v50, %v7107_v38 }
 0x49f   : >> { %v4271_v55 = vmul.f32 1.442695, %v4267_v51  ;;  %v4273_v56 = vmul.f32 1.442695, %v4268_v52  ;;  %v4275_v57 = vmul.f32 1.442695, %v4269_v53 }
 0x4a0   : >> { %v4277_v58 = vmul.f32 1.442695, %v4270_v54  ;;  %v4302_v15 = vshrl.u32 (%p4249_p6), %v4301_v14, 7 }
 0x4a1   : >> { %5613 = vpow2.f32 %v4271_v55 }
 0x4a2   : >> { %5615 = vpow2.f32 %v4273_v56  ;;  %v4303_v17 = vsub.s32 (%p4249_p6), 0, %v4302_v15 }
 0x4a3   : >> { %5617 = vpow2.f32 %v4275_v57 }
 0x4a4   : >> { %5619 = vpow2.f32 %v4277_v58  ;;  %v4304_v18 = vrot.slane (%p4249_p6), %v6015_v37, %v4303_v17 }
 0x4ab   : >> { %v5614_v60 = vpop.eup %5613 }
 0x4ac   : >> { %v5616_v61 = vpop.eup %5615  ;;  %v4281_v62 = vadd.f32 %v5759_v46, %v5614_v60   ;;  %v4285_v63 = vmul.f32 %v5614_v60, %v4280_v59 }
 0x4ad   : >> { %v5618_v0 = vpop.eup %5617  ;;  %v4282_v1 = vadd.f32 %v5755_v45, %v5616_v61   ;;  %v4286_v2 = vmul.f32 %v5616_v61, %v4280_v59  ;;  %4251 = sbr.rel (!%p4249_p6) target bundleno = 1178 (0x49a), region = 94 }
 0x4ae   : >> { %v5620_v3 = vpop.eup %5619  ;;  %v4283_v5 = vadd.f32 %v5751_v44, %v5618_v0   ;;  %v4287_v6 = vmul.f32 %v5618_v0, %v4280_v59  ;;  %v4289_v7 = vadd.f32 %v5743_v42, %v4285_v63   ;;  %v5758_v46 = vmov %v4281_v62  }
 0x4af   : >> { %v4284_v8 = vadd.f32 %v5747_v43, %v5620_v3   ;;  %v4288_v10 = vmul.f32 %v5620_v3, %v4280_v59  ;;  %v4290_v11 = vadd.f32 %v5739_v41, %v4286_v2   ;;  %v5754_v45 = vmov %v4282_v1  }
 0x4b0   : >> { %v4291_v12 = vadd.f32 %v5735_v40, %v4287_v6   ;;  %v7111_v42 = vmov %v4289_v7  ;;  %v5750_v44 = vmov %v4283_v5   ;;  %5621 = vrcp.f32 (%p4249_p6), %v4281_v62 }
 0x4b1   : >> { %v4292_v13 = vadd.f32 %v5731_v39, %v4288_v10   ;;  %v7110_v41 = vmov %v4290_v11  ;;  %v7112_v43 = vmov %v4284_v8  ;;  %5623 = vrcp.f32 (%p4249_p6), %v4282_v1 }
 0x4b2   : >> { %v7109_v40 = vmov %v4291_v12  ;;  %5625 = vrcp.f32 (%p4249_p6), %v4283_v5 }
 0x4b3   : >> { %v7108_v39 = vmov %v4292_v13  ;;  %5627 = vrcp.f32 (%p4249_p6), %v4284_v8 }
 0x4ba   : > { %v5622_v19 = vpop.eup %5621 }
 0x4bb   : > { %v5624_v20 = vpop.eup %5623  ;;  %v4297_v22 = vmul.f32 %v5622_v19, %v4289_v7 }
 0x4bc   : > { %v5626_v23 = vpop.eup %5625  ;;  %v4298_v24 = vmul.f32 %v5624_v20, %v4290_v11 }
 0x4bd   : > { %v5628_v25 = vpop.eup %5627  ;;  %v4305_v4 = vmul.f32 %v4304_v18, %v4297_v22  ;;  %v4299_v26 = vmul.f32 %v5626_v23, %v4291_v12 }
 0x4be   : > { %v4306_v28 = vmul.f32 %v4304_v18, %v4298_v24  ;;  %v4300_v29 = vmul.f32 %v5628_v25, %v4292_v13 }
 0x4bf   : > { %4309 = vst [vmem:[%s5818_s23] sm:$0xff] %v4305_v4  ;;  %v4307_v30 = vmul.f32 %v4304_v18, %v4299_v26 }
 0x4c0   : > { %4310 = vst [vmem:[%s5818_s23 + $0x8] sm:$0xff] %v4306_v28  ;;  %v4308_v31 = vmul.f32 %v4304_v18, %v4300_v29 }
 0x4c1   : > { %4311 = vst [vmem:[%s5818_s23 + $0x10] sm:$0xff] %v4307_v30 }
 0x4c2   : > { %4312 = vst [vmem:[%s5818_s23 + $0x18] sm:$0xff] %v4308_v31 }
 0x4c3 PF: > { %s14_s17 = sadd.s32 1, %s5707_s17   ;;  %s7113_s15 = smov %s5703_s16 }
 0x4c4   : > { %p11_p7 = scmp.ge.s32.totalorder %s14_s17, 4   ;;  %s7114_s16 = smov %s7116_s18 }
 0x4c6   :  { %13 = sbr.rel (!%p11_p7) target bundleno = 2 (0x2), region = 105 }

// kernel: squeeze.1
= control target key start
LH: loop header
LB: loop body
LE: loop exit
PB: predicated region body
PF: predicated region fallthrough
CT: control target
= control target key end

     0   :  { %vm34_vm0 = vcmask 7168   ;;  %s86_s0 = inlined_call_operand.vmem [shape: bf16[2,3,1,2,1], index: 0, kind: input, shape index: {}]   ;;  %s87_s1 = inlined_call_operand.vmem [shape: bf16[12,1], index: 1, kind: output, shape index: {}]  }
   0x1   :  { %v61_v0 = vld [vmem:[%s86_s0] sm:$0xf]   ;;  %s69_s0 = smov 127  }
   0x2   :  { %v16_v1 = vunpack.c.l.bf16 %v61_v0 }
   0x4   :  { %19 = vst [vmem:[#allocation1] ss:$8 sps:$4 sm:$0xff] %v16_v1  }
   0xb   :  { %v41_v2 = vld.sshfl [vmem:[#allocation1] sm:$0xff pattern:$0xaaa98210]  }
   0xc   :  { %v33_v3 = vld [vmem:[#allocation1] sm:$0x7]   ;;  %42 = vrot.lane.b32.xlu0 %v41_v2, %s69_s0  ;;  %v37_v4 = vld [vmem:[#allocation1 + $0x8] sm:$0x7]  }
   0xd   :  { %35 = vst.msk [vmem:[#allocation0] ss:$2 sm:$0x7] %vm34_vm0, %v33_v3   ;;  %40 = vst.msk [vmem:[#allocation0 + $0x6] ss:$2 sm:$0x7] %vm34_vm0, %v37_v4  }
  0x7e   :  { %v43_v5 = vpop.permute.xlu0 %42  }
  0x7f   :  { %46 = vst.msk [vmem:[#allocation0 + $0x1] ss:$2 sm:$0x3f] %vm34_vm0, %v43_v5  }
  0x86   :  { %v51_v6 = vld [vmem:[#allocation0] sm:$0xff]  ;;  %v56_v7 = vld [vmem:[#allocation0 + $0x8] sm:$0xff] }
  0x87   :  { %v66_v8 = vpack.c.bf16 %v56_v7, %v51_v6 }
  0x89   :  { %67 = vst [vmem:[%s87_s1] sm:$0xff] %v66_v8  }

// kernel: forward.16
= control target key start
LH: loop header
LB: loop body
LE: loop exit
PB: predicated region body
PF: predicated region fallthrough
CT: control target
= control target key end

     0   :  { %s602_s12 = smov 0   ;;  %s604_s13 = smov 0   ;;  %s669_s0 = inlined_call_operand.vmem [shape: bf16[2,34,128], index: 0, kind: input, shape index: {}]   ;;  %s670_s1 = inlined_call_operand.vmem [shape: bf16[34,34], index: 1, kind: input, shape index: {}]   ;;  %s671_s2 = inlined_call_operand.vmem [shape: f32[34,1], index: 2, kind: input, shape index: {}]   ;;  %s672_s3 = inlined_call_operand.vmem [shape: bf16[2,34,128], index: 3, kind: output, shape index: {}]  }
   0x1   :  { %s606_s14 = smov 0  }
   0x2 LB: > { %s25_s15 = sadd.s32 1, %s573_s13  ;;  %p454_p0 = scmp.ge.s32.totalorder %s577_s14, 1  ;;  %s577_s14 = sphi %s606_s14, %s13_s14   ;;  %s573_s13 = sphi %s604_s13, %s674_s13   ;;  %s569_s12 = sphi %s602_s12, %s673_s12  }
   0x3   : > { %p27_p1 = scmp.ge.s32.totalorder %s25_s15, 2  ;;  %p156_p2 = scmp.lt.s32.totalorder %s577_s14, 3 }
   0x5   : > { %s676_s15 = smov (%p27_p1, %s25_s15), 0  ;;  %p157_p3 = pnand %p454_p0, %p156_p2 }
   0x6   : > { %p186_p4 = scmp.lt.s32.totalorder (!%p157_p3), %s569_s12, 1  ;;  %v579_v0 = vmov (!%p157_p3), 0.0   ;;  %vm580_vm0 = vmmov (!%p157_p3), 0   ;;  %v213_v1 = vld [vmem:[%s671_s2] sm:$0xff] (!%p157_p3)  ;;  %v581_v2 = vmov (!%p157_p3), 0   ;;  %v215_v3 = vld [vmem:[%s671_s2 + $0x10] sm:$0xff] (!%p157_p3) }
   0x7   : > { %160 = sbr.rel (%p157_p3) target bundleno = 255 (0xff), region = 32  ;;  %495 = vmatprep.subr.bf16.mxu0 (!%p157_p3), %v579_v0  ;;  %513 = vmatprep.subr.bf16.mxu1 (!%p157_p3), %v579_v0  ;;  %v214_v4 = vld [vmem:[%s671_s2 + $0x8] sm:$0xff] (!%p157_p3)  ;;  %v216_v6 = vld [vmem:[%s671_s2 + $0x18] sm:$0xff] (!%p157_p3)  ;;  %vm281_vm1 = vcmask (!%p157_p3), 1040384   ;;  %v217_v9 = vld [vmem:[%s671_s2 + $0x20] sm:$0x3] (!%p157_p3) }
   0x8   : > { %501 = vmatprep.mubr.msk.bf16.mxu0 (!%p157_p3), %vm580_vm0, %v579_v0  ;;  %505 = vmatprep.mubr.msk.bf16.mxu1 (!%p157_p3), %vm580_vm0, %v579_v0  ;;  %v552_v11 = vld [vmem:[%s670_s1] sm:$0xff] (!%p157_p3)   ;;  %v553_v12 = vld [vmem:[%s670_s1 + $0x8] sm:$0xff] (!%p157_p3)   ;;  %vm271_vm2 = vcmask (!%p157_p3), 277504   ;;  %v554_v13 = vld [vmem:[%s670_s1 + $0x10] ss:$0 sps:$4 sm:$0x11] (!%p157_p3)  }
   0x9   : > { %547 = vset.pattern.permute.xlu0 (!%p157_p3), %v581_v2  ;;  %548 = vset.pattern.permute.xlu1 (!%p157_p3), %v581_v2 }
   0xa   : > { %220 = vperm.xlu0 (!%p157_p3), %547, %v213_v1   ;;  %230 = vperm.xlu1 (!%p157_p3), %548, %v215_v3  }
   0xe   : > { %s678_s12 = smov (!%p186_p4, %s569_s12), 1  ;;  %225 = vperm.xlu0 %547, %v214_v4   ;;  %235 = vperm.xlu1 %548, %v216_v6  }
   0xf   : > { %s519_s18 = smul.u32 20, %s678_s12 }
  0x11   : > { %s193_s23 = scalar_lea.vmem %s669_s0, %s519_s18  ;;  %s201_s11 = scalar_lea.vmem %s672_s3, %s519_s18 }
  0x12   : > { %v549_v5 = vld [vmem:[%s193_s23] sm:$0xff]   ;;  %v550_v7 = vld [vmem:[%s193_s23 + $0x8] sm:$0xff]   ;;  %v551_v8 = vld [vmem:[%s193_s23 + $0x10] ss:$0 sps:$4 sm:$0x11]   ;;  %240 = vperm.xlu0 %547, %v217_v9  }
  0x13   : > { %496 = vmatpush3.bf16.msra.mxu0 %v549_v5  ;;  %516 = vmatpush3.bf16.msra.mxu1 %v549_v5  ;;  %v283_v10 = vsel %vm281_vm1, %v551_v8, 0 }
  0x14   : > { %497 = vmatprep.subr.bf16.mxu0 %v579_v0  ;;  %514 = vmatprep.subr.bf16.mxu1 %v579_v0 }
  0x17   : > { %498 = vmatpush3.bf16.msra.mxu0 %v550_v7  ;;  %517 = vmatpush3.bf16.msra.mxu1 %v550_v7 }
  0x18   : > { %499 = vmatprep.subr.bf16.mxu0 %v579_v0  ;;  %515 = vmatprep.subr.bf16.mxu1 %v579_v0 }
  0x1b   : > { %500 = vmatpush3.bf16.msra.mxu0 %v283_v10  ;;  %518 = vmatpush3.bf16.msra.mxu1 %v283_v10 }
  0x1e   : > { %502 = vmatmul.mubr.msk.bf16.vlgmr.msra.gmra.mrb[0].mxu0 %vm271_vm2, %v552_v11  ;;  %506 = vmatmul.mubr.msk.bf16.vlgmr.msra.gmra.mrb[0].mxu1 %vm271_vm2, %v553_v12 }
  0x1f   : > { %509 = vmatprep.mubr.msk.bf16.mxu1 %vm580_vm0, %v579_v0 }
  0x26   : > { %510 = vmatmul.mubr.msk.bf16.gmra.mrb[4].mxu1 %vm271_vm2, %v554_v13 }
  0x89   : > { %v221_v14 = vpop.permute.xlu0 %220  ;;  %v231_v15 = vpop.permute.xlu1 %230 }
  0x8d   : > { %v226_v16 = vpop.permute.xlu0 %225  ;;  %v236_v17 = vpop.permute.xlu1 %235 }
  0x91   : > { %v241_v32 = vpop.permute.xlu0 %240 }
  0xf1   : > { %v319_v18 = vpop.f32.mrb[0].mxu0  ;;  %v327_v19 = vpop.f32.mrb[0].mxu1 }
  0xf2   : > { %v503_v20 = vpop.f32.mrb[1].mxu0  ;;  %v507_v21 = vpop.f32.mrb[1].mxu1  ;;  %v320_v24 = vadd.f32 %v319_v18, %v221_v14  ;;  %v328_v25 = vadd.f32 %v327_v19, %v231_v15 }
  0xf3   : > { %v322_v22 = vpop.f32.mrb[2].mxu0  ;;  %v330_v23 = vpop.f32.mrb[2].mxu1 }
  0xf4   : > { %v323_v26 = vadd.f32 %v322_v22, %v226_v16  ;;  %v331_v27 = vadd.f32 %v330_v23, %v236_v17  ;;  %v508_v28 = vpop.f32.mrb[3].mxu1  ;;  %v504_v29 = vpop.f32.mrb[3].mxu0 }
  0xf6   : > { %v481_v30 = vpack.c.bf16 %v323_v26, %v320_v24  ;;  %v486_v31 = vpack.c.bf16 %v331_v27, %v328_v25 }
  0xf8   : > { %482 = vst [vmem:[%s201_s11] sm:$0xff] %v481_v30   ;;  %488 = vst [vmem:[%s201_s11 + $0x8] sm:$0xff] %v486_v31  }
  0xf9   : > { %v335_v33 = vpop.f32.mrb[4].mxu1 }
  0xfa   : > { %v336_v34 = vadd.f32 %v335_v33, %v241_v32  ;;  %v511_v35 = vpop.f32.mrb[5].mxu1 }
  0xfb   : > { %v338_v36 = vpop.f32.mrb[6].mxu1 }
  0xfc   : > { %v477_v37 = vpack.c.bf16 %v336_v34, %v336_v34  ;;  %v512_v38 = vpop.f32.mrb[7].mxu1 }
  0xfe   : > { %366 = vst [vmem:[%s201_s11 + $0x10] sm:$0x1] %v477_v37 }
  0xff PF: > { %s13_s14 = sadd.s32 1, %s577_s14   ;;  %s673_s12 = smov %s573_s13 }
 0x100   : > { %p10_p5 = scmp.ge.s32.totalorder %s13_s14, 4   ;;  %s674_s13 = smov %s676_s15 }
 0x102   :  { %12 = sbr.rel (!%p10_p5) target bundleno = 2 (0x2), region = 62 }

// kernel: forward.17
= control target key start
LH: loop header
LB: loop body
LE: loop exit
PB: predicated region body
PF: predicated region fallthrough
CT: control target
= control target key end

     0   :  { %s503_s12 = smov 0   ;;  %s505_s13 = smov 0   ;;  %s547_s0 = inlined_call_operand.vmem [shape: bf16[2,34,128], index: 0, kind: input, shape index: {}]   ;;  %s548_s1 = inlined_call_operand.vmem [shape: bf16[9,34], index: 1, kind: input, shape index: {}]   ;;  %s549_s2 = inlined_call_operand.vmem [shape: f32[9,1], index: 2, kind: input, shape index: {}]   ;;  %s550_s3 = inlined_call_operand.vmem [shape: bf16[2,9,128], index: 3, kind: output, shape index: {}]  }
   0x1   :  { %s507_s14 = smov 0  }
   0x2 LB: > { %s25_s15 = sadd.s32 1, %s474_s13  ;;  %p393_p0 = scmp.ge.s32.totalorder %s478_s14, 1  ;;  %s478_s14 = sphi %s507_s14, %s13_s14   ;;  %s474_s13 = sphi %s505_s13, %s552_s13   ;;  %s470_s12 = sphi %s503_s12, %s551_s12  }
   0x3   : > { %p27_p1 = scmp.ge.s32.totalorder %s25_s15, 2  ;;  %p156_p2 = scmp.lt.s32.totalorder %s478_s14, 3 }
   0x5   : > { %s554_s15 = smov (%p27_p1, %s25_s15), 0  ;;  %p157_p3 = pnand %p393_p0, %p156_p2 }
   0x6   : > { %p186_p4 = scmp.lt.s32.totalorder (!%p157_p3), %s470_s12, 1  ;;  %v480_v0 = vmov (!%p157_p3), 0.0   ;;  %vm481_vm0 = vmmov (!%p157_p3), 0   ;;  %v482_v1 = vmov (!%p157_p3), 0   ;;  %v211_v2 = vld [vmem:[%s549_s2 + $0x8] sm:$0x1] (!%p157_p3) }
   0x7   : > { %160 = sbr.rel (%p157_p3) target bundleno = 250 (0xfa), region = 32  ;;  %413 = vmatprep.subr.bf16.mxu0 (!%p157_p3), %v480_v0  ;;  %419 = vmatprep.mubr.msk.bf16.mxu0 (!%p157_p3), %vm481_vm0, %v480_v0  ;;  %v210_v3 = vld [vmem:[%s549_s2] sm:$0xff] (!%p157_p3)  ;;  %vm246_vm1 = vcmask (!%p157_p3), 1040384   ;;  %vm242_vm2 = vcmask (!%p157_p3), 277504   ;;  %vm301_vm3 = vsmask.f32 (!%p157_p3), 256 }
   0x8   : > { %451 = vset.pattern.permute.xlu0 (!%p157_p3), %v482_v1  ;;  %v455_v8 = vld [vmem:[%s548_s1] sm:$0x1f] (!%p157_p3)   ;;  %vm302_vm4 = vmand (!%p157_p3), %vm246_vm1, %vm301_vm3 }
   0x9   : > { %219 = vperm.xlu0 (!%p157_p3), %451, %v211_v2  }
   0xd   : > { %214 = vperm.xlu0 (!%p157_p3), %451, %v210_v3  }
   0xe   : > { %s556_s12 = smov (!%p186_p4, %s470_s12), 1 }
   0xf   : > { %s423_s18 = smul.u32 20, %s556_s12  ;;  %s406_s26 = sshll.u32 %s556_s12, 3 }
  0x10   : > { %s201_s29 = scalar_lea.vmem %s550_s3, %s406_s26 }
  0x11   : > { %s193_s23 = scalar_lea.vmem %s547_s0, %s423_s18  ;;  %v303_v18 = vld [vmem:[%s201_s29 + $0x4] sm:$0x1] }
  0x12   : > { %v452_v4 = vld [vmem:[%s193_s23] sm:$0xff]   ;;  %v453_v5 = vld [vmem:[%s193_s23 + $0x8] sm:$0xff]   ;;  %v454_v6 = vld [vmem:[%s193_s23 + $0x10] ss:$0 sps:$4 sm:$0x11]  }
  0x13   : > { %414 = vmatpush3.bf16.msra.mxu0 %v452_v4  ;;  %v248_v7 = vsel %vm246_vm1, %v454_v6, 0 }
  0x14   : > { %415 = vmatprep.subr.bf16.mxu0 %v480_v0 }
  0x17   : > { %416 = vmatpush3.bf16.msra.mxu0 %v453_v5 }
  0x18   : > { %417 = vmatprep.subr.bf16.mxu0 %v480_v0 }
  0x1b   : > { %418 = vmatpush3.bf16.msra.mxu0 %v248_v7 }
  0x1e   : > { %420 = vmatmul.mubr.msk.bf16.vlgmr.msra.gmra.mrb[0].mxu0 %vm242_vm2, %v455_v8 }
  0x88   : > { %v220_v9 = vpop.permute.xlu0 %219 }
  0x8c   : > { %v215_v10 = vpop.permute.xlu0 %214 }
  0xf1   : > { %v284_v11 = vpop.f32.mrb[0].mxu0 }
  0xf2   : > { %v285_v12 = vadd.f32 %v284_v11, %v215_v10  ;;  %v421_v13 = vpop.f32.mrb[1].mxu0 }
  0xf3   : > { %v287_v14 = vpop.f32.mrb[2].mxu0 }
  0xf4   : > { %v407_v15 = vpack.c.bf16 %v285_v12, %v285_v12  ;;  %v288_v16 = vadd.f32 %v287_v14, %v220_v9  ;;  %v422_v17 = vpop.f32.mrb[3].mxu0 }
  0xf6   : > { %299 = vst [vmem:[%s201_s29] sm:$0xf] %v407_v15  ;;  %v408_v19 = vpack.c.bf16 %v288_v16, %v288_v16 }
  0xf8   : > { %v304_v20 = vsel %vm302_vm4, %v408_v19, %v303_v18 }
  0xf9   : > { %305 = vst [vmem:[%s201_s29 + $0x4] sm:$0x1] %v304_v20 }
  0xfa PF: > { %s13_s14 = sadd.s32 1, %s478_s14   ;;  %s551_s12 = smov %s474_s13 }
  0xfb   : > { %p10_p5 = scmp.ge.s32.totalorder %s13_s14, 4   ;;  %s552_s13 = smov %s554_s15 }
  0xfd   :  { %12 = sbr.rel (!%p10_p5) target bundleno = 2 (0x2), region = 62 }

// kernel: forward.19
= control target key start
LH: loop header
LB: loop body
LE: loop exit
PB: predicated region body
PF: predicated region fallthrough
CT: control target
= control target key end

     0   :  { %v227_v0 = vmov 0.0   ;;  %vm228_vm0 = vmmov 0   ;;  %s282_s1 = inlined_call_operand.vmem [shape: bf16[128,128], index: 1, kind: input, shape index: {}]   ;;  %s283_s0 = inlined_call_operand.vmem [shape: bf16[16,128], index: 0, kind: input, shape index: {}]   ;;  %s284_s2 = inlined_call_operand.vmem [shape: f32[1,128], index: 2, kind: input, shape index: {}]   ;;  %s285_s3 = inlined_call_operand.vmem [shape: bf16[16,128], index: 3, kind: output, shape index: {}]  }
   0x1   :  { %196 = vmatprep.subr.bf16.mxu0 %v227_v0  ;;  %v218_v1 = vld [vmem:[%s282_s1] sm:$0xff]   ;;  %212 = vmatprep.mubr.msk.bf16.mxu0 %vm228_vm0, %v227_v0  ;;  %v219_v2 = vld [vmem:[%s282_s1 + $0x8] sm:$0xff]   ;;  %v220_v3 = vld [vmem:[%s282_s1 + $0x10] sm:$0xff]  }
   0x2   :  { %197 = vmatpush3.bf16.msra.mxu0 %v218_v1  ;;  %v221_v4 = vld [vmem:[%s282_s1 + $0x18] sm:$0xff]   ;;  %v222_v5 = vld [vmem:[%s282_s1 + $0x20] sm:$0xff]   ;;  %v223_v6 = vld [vmem:[%s282_s1 + $0x28] sm:$0xff]  }
   0x3   :  { %198 = vmatprep.subr.bf16.mxu0 %v227_v0  ;;  %v224_v7 = vld [vmem:[%s282_s1 + $0x30] sm:$0xff]   ;;  %v225_v8 = vld [vmem:[%s282_s1 + $0x38] sm:$0xff]   ;;  %v226_v9 = vld [vmem:[%s283_s0] sm:$0xff]  }
   0x4   :  { %v177_v11 = vld [vmem:[%s284_s2] ss:$0 sm:$0xff] }
   0x6   :  { %199 = vmatpush3.bf16.msra.mxu0 %v219_v2 }
   0x7   :  { %200 = vmatprep.subr.bf16.mxu0 %v227_v0 }
   0xa   :  { %201 = vmatpush3.bf16.msra.mxu0 %v220_v3 }
   0xb   :  { %202 = vmatprep.subr.bf16.mxu0 %v227_v0 }
   0xe   :  { %203 = vmatpush3.bf16.msra.mxu0 %v221_v4 }
   0xf   :  { %204 = vmatprep.subr.bf16.mxu0 %v227_v0 }
  0x12   :  { %205 = vmatpush3.bf16.msra.mxu0 %v222_v5 }
  0x13   :  { %206 = vmatprep.subr.bf16.mxu0 %v227_v0 }
  0x16   :  { %207 = vmatpush3.bf16.msra.mxu0 %v223_v6 }
  0x17   :  { %208 = vmatprep.subr.bf16.mxu0 %v227_v0 }
  0x1a   :  { %209 = vmatpush3.bf16.msra.mxu0 %v224_v7 }
  0x1b   :  { %210 = vmatprep.subr.bf16.mxu0 %v227_v0 }
  0x1e   :  { %211 = vmatpush3.bf16.msra.mxu0 %v225_v8 }
  0x21   :  { %213 = vmatmul.mubr.bf16.vlgmr.msra.gmra.mrb[0].mxu0 %v226_v9 }
  0xf4   :  { %v129_v10 = vpop.f32.mrb[0].mxu0 }
  0xf5   :  { %v214_v12 = vpop.f32.mrb[1].mxu0  ;;  %v152_v14 = vadd.f32 %v177_v11, %v129_v10 }
  0xf6   :  { %v132_v13 = vpop.f32.mrb[2].mxu0 }
  0xf7   :  { %v153_v15 = vadd.f32 %v177_v11, %v132_v13  ;;  %v215_v16 = vpop.f32.mrb[3].mxu0 }
  0xf9   :  { %v185_v17 = vpack.c.bf16 %v153_v15, %v152_v14 }
  0xfb   :  { %186 = vst [vmem:[%s285_s3] sm:$0xff] %v185_v17  }

// kernel: forward.21
= control target key start
LH: loop header
LB: loop body
LE: loop exit
PB: predicated region body
PF: predicated region fallthrough
CT: control target
= control target key end

     0   :  { %s426_s9 = smov 0   ;;  %s428_s10 = smov 0   ;;  %s462_s0 = inlined_call_operand.vmem [shape: bf16[16,18], index: 0, kind: input, shape index: {}]   ;;  %s463_s1 = inlined_call_operand.vmem [shape: bf16[2,18,128], index: 1, kind: input, shape index: {}]   ;;  %s464_s2 = inlined_call_operand.vmem [shape: f32[2,16,128], index: 2, kind: output, shape index: {}]  }
   0x1   :  { %s430_s11 = smov 0  }
   0x2 LB: > { %s24_s12 = sadd.s32 1, %s403_s10  ;;  %p333_p0 = scmp.ge.s32.totalorder %s407_s11, 1  ;;  %s407_s11 = sphi %s430_s11, %s12_s11   ;;  %s403_s10 = sphi %s428_s10, %s466_s10   ;;  %s399_s9 = sphi %s426_s9, %s465_s9  }
   0x3   : > { %p26_p1 = scmp.ge.s32.totalorder %s24_s12, 2  ;;  %p131_p2 = scmp.lt.s32.totalorder %s407_s11, 3 }
   0x5   : > { %s468_s12 = smov (%p26_p1, %s24_s12), 0  ;;  %p132_p3 = pnand %p333_p0, %p131_p2 }
   0x6   : > { %p159_p4 = scmp.lt.s32.totalorder (!%p132_p3), %s399_s9, 1  ;;  %v409_v0 = vmov (!%p132_p3), 0.0   ;;  %vm410_vm0 = vmmov (!%p132_p3), 0   ;;  %vm199_vm1 = vcmask (!%p132_p3), 1040384   ;;  %v384_v4 = vld [vmem:[%s462_s0] sm:$0xff] (!%p132_p3)   ;;  %vm195_vm2 = vcmask (!%p132_p3), 146432  }
   0x7   : > { %135 = sbr.rel (%p132_p3) target bundleno = 241 (0xf1), region = 28  ;;  %347 = vmatprep.subr.bf16.mxu0 (!%p132_p3), %v409_v0  ;;  %351 = vmatprep.mubr.msk.bf16.mxu0 (!%p132_p3), %vm410_vm0, %v409_v0 }
   0xe   : > { %s470_s9 = smov (!%p159_p4, %s399_s9), 1 }
   0xf   : > { %s355_s13 = smul.u32 12, %s470_s9  ;;  %s343_s19 = sshll.u32 %s470_s9, 4 }
  0x10   : > { %s174_s22 = scalar_lea.vmem %s464_s2, %s343_s19 }
  0x11   : > { %s166_s16 = scalar_lea.vmem %s463_s1, %s355_s13 }
  0x12   : > { %v382_v1 = vld [vmem:[%s166_s16] sm:$0xff]   ;;  %v383_v2 = vld [vmem:[%s166_s16 + $0x8] ss:$0 sps:$4 sm:$0x11]  }
  0x13   : > { %348 = vmatpush3.bf16.msra.mxu0 %v382_v1  ;;  %v201_v3 = vsel %vm199_vm1, %v383_v2, 0 }
  0x14   : > { %349 = vmatprep.subr.bf16.mxu0 %v409_v0 }
  0x17   : > { %350 = vmatpush3.bf16.msra.mxu0 %v201_v3 }
  0x1a   : > { %352 = vmatmul.mubr.msk.bf16.vlgmr.msra.gmra.mrb[0].mxu0 %vm195_vm2, %v384_v4 }
  0xed   : > { %v237_v5 = vpop.f32.mrb[0].mxu0 }
  0xee   : > { %244 = vst [vmem:[%s174_s22] sm:$0xff] %v237_v5  ;;  %v353_v6 = vpop.f32.mrb[1].mxu0 }
  0xef   : > { %v240_v7 = vpop.f32.mrb[2].mxu0 }
  0xf0   : > { %245 = vst [vmem:[%s174_s22 + $0x8] sm:$0xff] %v240_v7  ;;  %v354_v8 = vpop.f32.mrb[3].mxu0 }
  0xf1 PF: > { %s12_s11 = sadd.s32 1, %s407_s11   ;;  %s465_s9 = smov %s403_s10 }
  0xf2   : > { %p9_p5 = scmp.ge.s32.totalorder %s12_s11, 4   ;;  %s466_s10 = smov %s468_s12 }
  0xf4   :  { %11 = sbr.rel (!%p9_p5) target bundleno = 2 (0x2), region = 58 }

</bundles_post_ra>
